<compile_context>
chip_gen: v6e
topology: v6e:2x2x1
jax: 0.10.0
libtpu: 0.0.40
codegen_flags: <defaults>
</compile_context>

<pallas_src>
import functools
import math

import jax
import jax.numpy as jnp
from jax.experimental import pallas as pl
from jax.experimental.pallas import tpu as pltpu

_INV_SQRT2 = 1.0 / math.sqrt(2.0)


def _tpu_vmem_capacity_bytes():
    try:
        return int(pltpu.get_tpu_info().vmem_capacity_bytes)
    except Exception:
        return 128 * 1024 * 1024


_VMEM_CAP = _tpu_vmem_capacity_bytes()
if _VMEM_CAP <= 64 * 1024 * 1024:          # v7x-class: 64 MiB VMEM per TensorCore
    TM, TN = 256, 256
    VMEM_LIMIT = 48 * 1024 * 1024          # leave ~25% headroom of physical VMEM
else:                                       # v5e / v6e: 128 MiB physical VMEM
    TM, TN = 512, 512
    VMEM_LIMIT = 64 * 1024 * 1024


def _pick_tile(dim, target):
    """Largest 'nice' (128-aligned) tile that evenly divides dim, else full dim."""
    for t in (target, 512, 384, 256, 128):
        if t <= dim and dim % t == 0:
            return t
    return dim


def _round_up(x, m):
    return ((x + m - 1) // m) * m


def _padded_rows(m):
    return _round_up(m, 128) if m > 128 else _round_up(m, 8)


def _pad_rows(x, m_pad):
    m = x.shape[0]
    return x if m == m_pad else jnp.pad(x, ((0, m_pad - m), (0, 0)))


# ----------------------------------------------------------------------------
# Single-pass tiled linear (+ optional fused GELU). Full-K contraction per block.
# ----------------------------------------------------------------------------
def _linear_kernel(x_ref, w_ref, b_ref, o_ref, *, activation):
    y = jnp.dot(x_ref[...], w_ref[...], preferred_element_type=jnp.float32)
    y = y + b_ref[...]
    if activation == "gelu":
        # exact (erf) GELU, matching torch.nn.functional.gelu default
        y = 0.5 * y * (1.0 + jax.lax.erf(y * _INV_SQRT2))
    o_ref[...] = y.astype(o_ref.dtype)


def linear(x, w, b, activation=None, *, out_dtype=jnp.bfloat16):
    """x:(M,K) bf16 @ w:(K,N) bf16 + b:(1,N) f32, optional fused GELU. bf16 out."""
    M, K = x.shape
    N = w.shape[1]
    Mp = _padded_rows(M)
    xp = _pad_rows(x, Mp)
    tm, tn = _pick_tile(Mp, TM), _pick_tile(N, TN)
    out = pl.pallas_call(
        functools.partial(_linear_kernel, activation=activation),
        out_shape=jax.ShapeDtypeStruct((Mp, N), out_dtype),
        grid_spec=pltpu.PrefetchScalarGridSpec(
            num_scalar_prefetch=0,
            grid=(Mp // tm, N // tn),
            in_specs=[
                pl.BlockSpec((tm, K), lambda i, j: (i, 0)),
                pl.BlockSpec((K, tn), lambda i, j: (0, j)),
                pl.BlockSpec((1, tn), lambda i, j: (0, j)),
            ],
            out_specs=pl.BlockSpec((tm, tn), lambda i, j: (i, j)),
        ),
        compiler_params=pltpu.CompilerParams(
            dimension_semantics=("parallel", "parallel"),
            vmem_limit_bytes=VMEM_LIMIT,
        ),
    )(xp, w, b)
    return out[:M] if Mp != M else out


# ----------------------------------------------------------------------------
# Single-pass linear with fused residual-add + LayerNorm epilogue (full K, full N)
# ----------------------------------------------------------------------------
def _linear_res_ln_kernel(x_ref, w_ref, b_ref, r_ref, g_ref, beta_ref, o_ref, *, eps):
    y = jnp.dot(x_ref[...], w_ref[...], preferred_element_type=jnp.float32)
    y = y + b_ref[...] + r_ref[...].astype(jnp.float32)
    mean = jnp.mean(y, axis=-1, keepdims=True)
    var = jnp.mean(jnp.square(y - mean), axis=-1, keepdims=True)
    y = (y - mean) * jax.lax.rsqrt(var + eps)
    o_ref[...] = (y * g_ref[...] + beta_ref[...]).astype(o_ref.dtype)


def linear_res_ln(x, w, b, res, g, beta, *, eps=1e-12, out_dtype=jnp.bfloat16):
    """LayerNorm(x @ w + b + res) fused in one pass. N is one block (D=768-class)."""
    M, K = x.shape
    N = w.shape[1]
    Mp = _padded_rows(M)
    xp, rp = _pad_rows(x, Mp), _pad_rows(res, Mp)
    tm = _pick_tile(Mp, TM)
    out = pl.pallas_call(
        functools.partial(_linear_res_ln_kernel, eps=eps),
        out_shape=jax.ShapeDtypeStruct((Mp, N), out_dtype),
        grid_spec=pltpu.PrefetchScalarGridSpec(
            num_scalar_prefetch=0,
            grid=(Mp // tm,),
            in_specs=[
                pl.BlockSpec((tm, K), lambda i: (i, 0)),
                pl.BlockSpec((K, N), lambda i: (0, 0)),
                pl.BlockSpec((1, N), lambda i: (0, 0)),
                pl.BlockSpec((tm, N), lambda i: (i, 0)),
                pl.BlockSpec((1, N), lambda i: (0, 0)),
                pl.BlockSpec((1, N), lambda i: (0, 0)),
            ],
            out_specs=pl.BlockSpec((tm, N), lambda i: (i, 0)),
        ),
        compiler_params=pltpu.CompilerParams(
            dimension_semantics=("parallel",),
            vmem_limit_bytes=VMEM_LIMIT,
        ),
    )(xp, w, b, rp, g, beta)
    return out[:M] if Mp != M else out


# ----------------------------------------------------------------------------
# Embedding: fused (token + position) add + LayerNorm (no f32 HBM round-trip)
# ----------------------------------------------------------------------------
def _emb_add_ln_kernel(tok_ref, pos_ref, g_ref, b_ref, o_ref, *, eps):
    x = tok_ref[0].astype(jnp.float32) + pos_ref[...]
    mean = jnp.mean(x, axis=-1, keepdims=True)
    var = jnp.mean(jnp.square(x - mean), axis=-1, keepdims=True)
    y = (x - mean) * jax.lax.rsqrt(var + eps)
    o_ref[0] = (y * g_ref[...] + b_ref[...]).astype(o_ref.dtype)


def embed_add_layer_norm(tok, pos, g, b, *, eps=1e-12, out_dtype=jnp.bfloat16):
    """tok:(B,S,D) bf16 (gathered word emb), pos:(S,D) f32 -> LN(tok+pos):(B,S,D) bf16."""
    B, S, D = tok.shape
    ts = _pick_tile(S, 256)
    return pl.pallas_call(
        functools.partial(_emb_add_ln_kernel, eps=eps),
        out_shape=jax.ShapeDtypeStruct((B, S, D), out_dtype),
        grid_spec=pltpu.PrefetchScalarGridSpec(
            num_scalar_prefetch=0,
            grid=(B, S // ts),
            in_specs=[
                pl.BlockSpec((1, ts, D), lambda bi, si: (bi, si, 0)),
                pl.BlockSpec((ts, D), lambda bi, si: (si, 0)),
                pl.BlockSpec((1, D), lambda bi, si: (0, 0)),
                pl.BlockSpec((1, D), lambda bi, si: (0, 0)),
            ],
            out_specs=pl.BlockSpec((1, ts, D), lambda bi, si: (bi, si, 0)),
        ),
        compiler_params=pltpu.CompilerParams(
            dimension_semantics=("parallel", "parallel"),
            vmem_limit_bytes=VMEM_LIMIT,
        ),
    )(tok, pos, g, b)


# ----------------------------------------------------------------------------
# Multi-head attention on the fused QKV slab.
# Grid = (batch, 128-lane head group, q-tile); BlockSpecs pull lane-aligned
# 128-wide column panels of Q/K/V; output written lane-dense in (B, S, D).
# ----------------------------------------------------------------------------
def _attn_kernel(q_ref, k_ref, v_ref, o_ref, *, heads_per_group, dh, scale):
    outs = []
    for h in range(heads_per_group):
        q = q_ref[0, :, h * dh:(h + 1) * dh] * scale      # scale folded into (tq, dh) q
        k = k_ref[0, :, h * dh:(h + 1) * dh]
        v = v_ref[0, :, h * dh:(h + 1) * dh]
        s = jax.lax.dot_general(q, k, (((1,), (1,)), ((), ())),
                                preferred_element_type=jnp.float32)   # (tq, S)
        s = s - jnp.max(s, axis=-1, keepdims=True)
        p = jnp.exp(s)
        p = p * pl.reciprocal(jnp.sum(p, axis=-1, keepdims=True), approx=True)
        o = jnp.dot(p.astype(v.dtype), v, preferred_element_type=jnp.float32)
        outs.append(o.astype(o_ref.dtype))
    # one dense (tq, group_width) store -> unmasked lane-dense writeback
    o_ref[0] = outs[0] if heads_per_group == 1 else jnp.concatenate(outs, axis=-1)
    # TODO(synk): no attention / padding mask (token-ids-only forward); for very
    # long S convert to online-softmax with a KV grid axis (flash form).


def attention(qkv, num_heads):
    """qkv: (B, S, 3*D) bf16 with column layout [Q | K | V].  Returns (B, S, D) bf16."""
    B, S, threeD = qkv.shape
    D = threeD // 3
    dh = D // num_heads
    # group heads into 128-lane panels when the geometry allows (DistilBERT: dh=64 -> pairs)
    if dh <= 128 and 128 % dh == 0 and D % 128 == 0:
        gw = 128
    else:
        gw = D                                   # fallback: single full-width group
    heads_per_group = gw // dh
    n_groups = D // gw
    tq = _pick_tile(S, 256)                      # bounds the live (tq, S) score tensor
    k_base, v_base = n_groups, 2 * n_groups

    return pl.pallas_call(
        functools.partial(_attn_kernel, heads_per_group=heads_per_group, dh=dh,
                          scale=1.0 / math.sqrt(dh)),
        out_shape=jax.ShapeDtypeStruct((B, S, D), qkv.dtype),
        grid_spec=pltpu.PrefetchScalarGridSpec(
            num_scalar_prefetch=0,
            grid=(B, n_groups, S // tq),
            in_specs=[
                pl.BlockSpec((1, tq, gw), lambda b, g, qi: (b, qi, g)),
                pl.BlockSpec((1, S, gw), lambda b, g, qi: (b, 0, k_base + g)),
                pl.BlockSpec((1, S, gw), lambda b, g, qi: (b, 0, v_base + g)),
            ],
            out_specs=pl.BlockSpec((1, tq, gw), lambda b, g, qi: (b, qi, g)),
        ),
        compiler_params=pltpu.CompilerParams(
            dimension_semantics=("parallel", "parallel", "parallel"),
            vmem_limit_bytes=VMEM_LIMIT,
        ),
    )(qkv, qkv, qkv)


# ----------------------------------------------------------------------------
# Synthetic DistilBERT parameters + forward (glue in plain JAX)
# ----------------------------------------------------------------------------
def init_params(key, *, vocab, max_pos, D, H, FFN, L):
    def w_bf16(k, shape):
        return (0.02 * jax.random.normal(k, shape, dtype=jnp.float32)).astype(jnp.bfloat16)

    def w_f32(k, shape):
        return 0.02 * jax.random.normal(k, shape, dtype=jnp.float32)

    keys = jax.random.split(key, 2 + L)
    params = {
        "word_emb": w_f32(keys[0], (vocab, D)),
        "pos_emb": w_f32(keys[1], (max_pos, D)),
        "emb_ln_g": jnp.ones((1, D), jnp.float32),
        "emb_ln_b": jnp.zeros((1, D), jnp.float32),
        "layers": [],
    }
    for li in range(L):
        ks = jax.random.split(keys[2 + li], 4)
        layer = {
            # fused QKV projection: columns [0:D]=Q, [D:2D]=K, [2D:3D]=V
            "w_qkv": w_bf16(ks[0], (D, 3 * D)),
            "b_qkv": jnp.zeros((1, 3 * D), jnp.float32),
            "wo": w_bf16(ks[1], (D, D)), "bo": jnp.zeros((1, D), jnp.float32),
            "sa_ln_g": jnp.ones((1, D), jnp.float32),
            "sa_ln_b": jnp.zeros((1, D), jnp.float32),
            "w1": w_bf16(ks[2], (D, FFN)), "b1": jnp.zeros((1, FFN), jnp.float32),
            "w2": w_bf16(ks[3], (FFN, D)), "b2": jnp.zeros((1, D), jnp.float32),
            "ffn_ln_g": jnp.ones((1, D), jnp.float32),
            "ffn_ln_b": jnp.zeros((1, D), jnp.float32),
        }
        params["layers"].append(layer)
    return params


def transformer_block(h, p, B, S, H):
    # h: (B*S, D) bf16
    D = h.shape[1]

    qkv = linear(h, p["w_qkv"], p["b_qkv"])                 # (B*S, 3D) bf16, one pass over h
    ctx = attention(qkv.reshape(B, S, 3 * D), H)            # (B, S, D) bf16, no transposes
    ctx = ctx.reshape(B * S, D)

    # attention output projection + residual + LayerNorm (fused epilogue)
    h = linear_res_ln(ctx, p["wo"], p["bo"], h, p["sa_ln_g"], p["sa_ln_b"])

    # FFN: w1 with fused GELU, then w2 + residual + LayerNorm (fused epilogue)
    ffn = linear(h, p["w1"], p["b1"], activation="gelu")
    h = linear_res_ln(ffn, p["w2"], p["b2"], h, p["ffn_ln_g"], p["ffn_ln_b"])
    return h


def bert_embedding_forward(params, input_ids, *, num_heads):
    """Equivalent of BertEmbedding.forward: bert(x)['last_hidden_state'] then
    dropout (identity at inference)."""
    B, S = input_ids.shape
    D = params["word_emb"].shape[1]

    # embedding gather (XLA), cast to bf16 for the DMA; add + LN fused in-kernel
    tok = jnp.take(params["word_emb"], input_ids, axis=0).astype(jnp.bfloat16)  # (B,S,D)
    pos = params["pos_emb"][:S]                                                  # (S,D) f32
    h = embed_add_layer_norm(tok, pos, params["emb_ln_g"], params["emb_ln_b"])
    h = h.reshape(B * S, D)                                                      # (B*S,D) bf16

    for layer in params["layers"]:
        h = transformer_block(h, layer, B, S, num_heads)

    emb = h.reshape(B, S, D).astype(jnp.float32)
    # TODO(synk): nn.Dropout is identity in eval/inference; training-mode
    # bernoulli masking intentionally omitted.
    return emb


# ----------------------------------------------------------------------------
if __name__ == "__main__":
    # small config, but with DistilBERT's per-head geometry (dh=64 -> 128-lane head pairs)
    B, S = 2, 16
    D, H, FFN, L = 256, 4, 512, 2
    VOCAB, MAX_POS = 128, 64

    key = jax.random.PRNGKey(0)
    k_param, k_ids = jax.random.split(key)

    params = init_params(k_param, vocab=VOCAB, max_pos=MAX_POS, D=D, H=H, FFN=FFN, L=L)
    input_ids = jax.random.randint(k_ids, (B, S), minval=0, maxval=VOCAB, dtype=jnp.int32)

    fwd = jax.jit(functools.partial(bert_embedding_forward, num_heads=H))
    out = fwd(params, input_ids)
    out = jax.block_until_ready(out)

    assert out.shape == (B, S, D) and out.dtype == jnp.float32
    assert bool(jnp.all(jnp.isfinite(out)))
    print("KERNEL_OK")
</pallas_src>

<mosaic_0001>
module attributes {stable_mosaic.version = 11 : i64} {
  func.func @_linear_kernel(%arg0: i32, %arg1: i32, %arg2: memref<32x256xbf16, #tpu.memory_space<vmem>>, %arg3: memref<256x384xbf16, #tpu.memory_space<vmem>>, %arg4: memref<1x384xf32, #tpu.memory_space<vmem>>, %arg5: memref<32x384xbf16, #tpu.memory_space<vmem>>) attributes {dimension_semantics = [#tpu.dimension_semantics<parallel>, #tpu.dimension_semantics<parallel>], iteration_bounds = array<i64: 1, 2>, scalar_prefetch = 0 : i64, scratch_operands = 0 : i64, tpu.core_type = #tpu.core_type<tc>, window_params = [{transform_indices = @transform_0, window_bounds = array<i64: 32, 256>}, {transform_indices = @transform_1, window_bounds = array<i64: 256, 384>}, {transform_indices = @transform_2, window_bounds = array<i64: 1, 384>}, {transform_indices = @transform_3, window_bounds = array<i64: 32, 384>}]} {
    %c0 = arith.constant 0 : index
    %c0_0 = arith.constant 0 : index
    %0 = vector.load %arg2[%c0, %c0_0] : memref<32x256xbf16, #tpu.memory_space<vmem>>, vector<32x256xbf16>
    %c0_1 = arith.constant 0 : index
    %c0_2 = arith.constant 0 : index
    %1 = vector.load %arg3[%c0_1, %c0_2] : memref<256x384xbf16, #tpu.memory_space<vmem>>, vector<256x384xbf16>
    %cst = arith.constant dense<0.000000e+00> : vector<32x384xf32>
    %2 = tpu.matmul %0, %1, %cst {dimension_numbers = #tpu.dot_dimension_numbers<[1], [0], [0], [1], [0, 0, 1, 1], [], []>} : vector<32x256xbf16>, vector<256x384xbf16>, vector<32x384xf32> -> vector<32x384xf32>
    %c0_3 = arith.constant 0 : index
    %c0_4 = arith.constant 0 : index
    %3 = vector.load %arg4[%c0_3, %c0_4] : memref<1x384xf32, #tpu.memory_space<vmem>>, vector<1x384xf32>
    %4 = vector.broadcast %3 : vector<1x384xf32> to vector<32x384xf32>
    %5 = arith.addf %2, %4 : vector<32x384xf32>
    %6 = arith.truncf %5 : vector<32x384xf32> to vector<32x384xbf16>
    %c0_5 = arith.constant 0 : index
    %c0_6 = arith.constant 0 : index
    %7 = vector.load %arg5[%c0_5, %c0_6] : memref<32x384xbf16, #tpu.memory_space<vmem>>, vector<32x384xbf16>
    tpu.vector_store %arg5[%c0_5, %c0_6], %6 {strides = array<i32>} : memref<32x384xbf16, #tpu.memory_space<vmem>>, vector<32x384xbf16>,
    return
  }
  func.func @transform_0(%arg0: i32, %arg1: i32) -> (i32, i32) {
    %c0_i32 = arith.constant 0 : i32
    %c0_i32_0 = arith.constant 0 : i32
    return %arg0, %c0_i32 : i32, i32
  }
  func.func @transform_1(%arg0: i32, %arg1: i32) -> (i32, i32) {
    %c0_i32 = arith.constant 0 : i32
    %c0_i32_0 = arith.constant 0 : i32
    return %c0_i32, %arg1 : i32, i32
  }
  func.func @transform_2(%arg0: i32, %arg1: i32) -> (i32, i32) {
    %c0_i32 = arith.constant 0 : i32
    %c0_i32_0 = arith.constant 0 : i32
    return %c0_i32, %arg1 : i32, i32
  }
  func.func @transform_3(%arg0: i32, %arg1: i32) -> (i32, i32) {
    %c0_i32 = arith.constant 0 : i32
    return %arg0, %arg1 : i32, i32
  }
}

module attributes {stable_mosaic.version = 11 : i64} {
  func.func @_emb_add_ln_kernel(%arg0: i32, %arg1: i32, %arg2: memref<1x16x256xbf16, #tpu.memory_space<vmem>>, %arg3: memref<16x256xf32, #tpu.memory_space<vmem>>, %arg4: memref<1x256xf32, #tpu.memory_space<vmem>>, %arg5: memref<1x256xf32, #tpu.memory_space<vmem>>, %arg6: memref<1x16x256xbf16, #tpu.memory_space<vmem>>) attributes {dimension_semantics = [#tpu.dimension_semantics<parallel>, #tpu.dimension_semantics<parallel>], iteration_bounds = array<i64: 2, 1>, scalar_prefetch = 0 : i64, scratch_operands = 0 : i64, tpu.core_type = #tpu.core_type<tc>, window_params = [{transform_indices = @transform_0, window_bounds = array<i64: 1, 16, 256>}, {transform_indices = @transform_1, window_bounds = array<i64: 16, 256>}, {pipeline_mode = #tpu.pipeline_mode<synchronous>, transform_indices = @transform_2, window_bounds = array<i64: 1, 256>}, {pipeline_mode = #tpu.pipeline_mode<synchronous>, transform_indices = @transform_3, window_bounds = array<i64: 1, 256>}, {transform_indices = @transform_4, window_bounds = array<i64: 1, 16, 256>}]} {
    %c0 = arith.constant 0 : index
    %c0_0 = arith.constant 0 : index
    %c0_1 = arith.constant 0 : index
    %0 = vector.load %arg2[%c0, %c0_0, %c0_1] : memref<1x16x256xbf16, #tpu.memory_space<vmem>>, vector<1x16x256xbf16>
    %1 = vector.shape_cast %0 : vector<1x16x256xbf16> to vector<16x256xbf16>
    %2 = arith.extf %1 : vector<16x256xbf16> to vector<16x256xf32>
    %c0_2 = arith.constant 0 : index
    %c0_3 = arith.constant 0 : index
    %3 = vector.load %arg3[%c0_2, %c0_3] : memref<16x256xf32, #tpu.memory_space<vmem>>, vector<16x256xf32>
    %4 = arith.addf %2, %3 : vector<16x256xf32>
    %cst = arith.constant dense<0.000000e+00> : vector<16xf32>
    %5 = vector.multi_reduction <add>, %4, %cst [1] : vector<16x256xf32> to vector<16xf32>
    %6 = vector.shape_cast %5 : vector<16xf32> to vector<16x1xf32>
    %cst_4 = arith.constant 2.560000e+02 : f32
    %7 = vector.broadcast %cst_4 : f32 to vector<16x1xf32>
    %8 = arith.divf %6, %7 : vector<16x1xf32>
    %9 = vector.broadcast %8 : vector<16x1xf32> to vector<16x256xf32>
    %10 = arith.subf %4, %9 : vector<16x256xf32>
    %11 = arith.mulf %10, %10 : vector<16x256xf32>
    %cst_5 = arith.constant dense<0.000000e+00> : vector<16xf32>
    %12 = vector.multi_reduction <add>, %11, %cst_5 [1] : vector<16x256xf32> to vector<16xf32>
    %13 = vector.shape_cast %12 : vector<16xf32> to vector<16x1xf32>
    %cst_6 = arith.constant 2.560000e+02 : f32
    %14 = vector.broadcast %cst_6 : f32 to vector<16x1xf32>
    %15 = arith.divf %13, %14 : vector<16x1xf32>
    %16 = vector.broadcast %8 : vector<16x1xf32> to vector<16x256xf32>
    %17 = arith.subf %4, %16 : vector<16x256xf32>
    %cst_7 = arith.constant 9.99999996E-13 : f32
    %18 = vector.broadcast %cst_7 : f32 to vector<16x1xf32>
    %19 = arith.addf %15, %18 : vector<16x1xf32>
    %20 = math.rsqrt %19 : vector<16x1xf32>
    %21 = vector.broadcast %20 : vector<16x1xf32> to vector<16x256xf32>
    %22 = arith.mulf %17, %21 : vector<16x256xf32>
    %c0_8 = arith.constant 0 : index
    %c0_9 = arith.constant 0 : index
    %23 = vector.load %arg4[%c0_8, %c0_9] : memref<1x256xf32, #tpu.memory_space<vmem>>, vector<1x256xf32>
    %24 = vector.broadcast %23 : vector<1x256xf32> to vector<16x256xf32>
    %25 = arith.mulf %22, %24 : vector<16x256xf32>
    %c0_10 = arith.constant 0 : index
    %c0_11 = arith.constant 0 : index
    %26 = vector.load %arg5[%c0_10, %c0_11] : memref<1x256xf32, #tpu.memory_space<vmem>>, vector<1x256xf32>
    %27 = vector.broadcast %26 : vector<1x256xf32> to vector<16x256xf32>
    %28 = arith.addf %25, %27 : vector<16x256xf32>
    %29 = arith.truncf %28 : vector<16x256xf32> to vector<16x256xbf16>
    %c0_12 = arith.constant 0 : index
    %c0_13 = arith.constant 0 : index
    %c0_14 = arith.constant 0 : index
    %30 = vector.load %arg6[%c0_12, %c0_13, %c0_14] : memref<1x16x256xbf16, #tpu.memory_space<vmem>>, vector<1x16x256xbf16>
    %31 = vector.shape_cast %30 : vector<1x16x256xbf16> to vector<16x256xbf16>
    %32 = vector.shape_cast %29 : vector<16x256xbf16> to vector<1x16x256xbf16>
    tpu.vector_store %arg6[%c0_12, %c0_13, %c0_14], %32 {strides = array<i32>} : memref<1x16x256xbf16, #tpu.memory_space<vmem>>, vector<1x16x256xbf16>,
    return
  }
  func.func @transform_0(%arg0: i32, %arg1: i32) -> (i32, i32, i32) {
    %c0_i32 = arith.constant 0 : i32
    %c0_i32_0 = arith.constant 0 : i32
    return %arg0, %arg1, %c0_i32 : i32, i32, i32
  }
  func.func @transform_1(%arg0: i32, %arg1: i32) -> (i32, i32) {
    %c0_i32 = arith.constant 0 : i32
    %c0_i32_0 = arith.constant 0 : i32
    return %arg1, %c0_i32 : i32, i32
  }
  func.func @transform_2(%arg0: i32, %arg1: i32) -> (i32, i32) {
    %c0_i32 = arith.constant 0 : i32
    %c0_i32_0 = arith.constant 0 : i32
    %c0_i32_1 = arith.constant 0 : i32
    return %c0_i32, %c0_i32_0 : i32, i32
  }
  func.func @transform_3(%arg0: i32, %arg1: i32) -> (i32, i32) {
    %c0_i32 = arith.constant 0 : i32
    %c0_i32_0 = arith.constant 0 : i32
    %c0_i32_1 = arith.constant 0 : i32
    return %c0_i32, %c0_i32_0 : i32, i32
  }
  func.func @transform_4(%arg0: i32, %arg1: i32) -> (i32, i32, i32) {
    %c0_i32 = arith.constant 0 : i32
    %c0_i32_0 = arith.constant 0 : i32
    return %arg0, %arg1, %c0_i32 : i32, i32, i32
  }
}

module attributes {stable_mosaic.version = 11 : i64} {
  func.func @_attn_kernel(%arg0: i32, %arg1: i32, %arg2: i32, %arg3: memref<1x16x128xbf16, #tpu.memory_space<vmem>>, %arg4: memref<1x16x128xbf16, #tpu.memory_space<vmem>>, %arg5: memref<1x16x128xbf16, #tpu.memory_space<vmem>>, %arg6: memref<1x16x128xbf16, #tpu.memory_space<vmem>>) attributes {dimension_semantics = [#tpu.dimension_semantics<parallel>, #tpu.dimension_semantics<parallel>, #tpu.dimension_semantics<parallel>], iteration_bounds = array<i64: 2, 2, 1>, scalar_prefetch = 0 : i64, scratch_operands = 0 : i64, tpu.core_type = #tpu.core_type<tc>, window_params = [{transform_indices = @transform_0, window_bounds = array<i64: 1, 16, 128>}, {transform_indices = @transform_1, window_bounds = array<i64: 1, 16, 128>}, {transform_indices = @transform_2, window_bounds = array<i64: 1, 16, 128>}, {transform_indices = @transform_3, window_bounds = array<i64: 1, 16, 128>}]} {
    %c0 = arith.constant 0 : index
    %c0_0 = arith.constant 0 : index
    %c0_1 = arith.constant 0 : index
    %0 = vector.load %arg3[%c0, %c0_0, %c0_1] : memref<1x16x128xbf16, #tpu.memory_space<vmem>>, vector<1x16x64xbf16>
    %1 = vector.shape_cast %0 : vector<1x16x64xbf16> to vector<16x64xbf16>
    %cst = arith.constant 1.250000e-01 : bf16
    %2 = vector.broadcast %cst : bf16 to vector<16x64xbf16>
    %3 = arith.mulf %1, %2 : vector<16x64xbf16>
    %c0_2 = arith.constant 0 : index
    %c0_3 = arith.constant 0 : index
    %c0_4 = arith.constant 0 : index
    %4 = vector.load %arg4[%c0_2, %c0_3, %c0_4] : memref<1x16x128xbf16, #tpu.memory_space<vmem>>, vector<1x16x64xbf16>
    %5 = vector.shape_cast %4 : vector<1x16x64xbf16> to vector<16x64xbf16>
    %c0_5 = arith.constant 0 : index
    %c0_6 = arith.constant 0 : index
    %c0_7 = arith.constant 0 : index
    %6 = vector.load %arg5[%c0_5, %c0_6, %c0_7] : memref<1x16x128xbf16, #tpu.memory_space<vmem>>, vector<1x16x64xbf16>
    %7 = vector.shape_cast %6 : vector<1x16x64xbf16> to vector<16x64xbf16>
    %cst_8 = arith.constant dense<0.000000e+00> : vector<16x16xf32>
    %8 = tpu.matmul %3, %5, %cst_8 {dimension_numbers = #tpu.dot_dimension_numbers<[1], [1], [0], [0], [0, 0, 1, 0], [], []>} : vector<16x64xbf16>, vector<16x64xbf16>, vector<16x16xf32> -> vector<16x16xf32>
    %cst_9 = arith.constant dense<0xFF800000> : vector<16xf32>
    %9 = vector.multi_reduction <maximumf>, %8, %cst_9 [1] : vector<16x16xf32> to vector<16xf32>
    %10 = vector.shape_cast %9 : vector<16xf32> to vector<16x1xf32>
    %11 = vector.broadcast %10 : vector<16x1xf32> to vector<16x16xf32>
    %12 = arith.subf %8, %11 : vector<16x16xf32>
    %13 = math.exp %12 : vector<16x16xf32>
    %cst_10 = arith.constant dense<0.000000e+00> : vector<16xf32>
    %14 = vector.multi_reduction <add>, %13, %cst_10 [1] : vector<16x16xf32> to vector<16xf32>
    %15 = vector.shape_cast %14 : vector<16xf32> to vector<16x1xf32>
    %16 = tpu.reciprocal %15 {approx = true} : vector<16x1xf32> -> vector<16x1xf32>
    %17 = vector.broadcast %16 : vector<16x1xf32> to vector<16x16xf32>
    %18 = arith.mulf %13, %17 : vector<16x16xf32>
    %19 = arith.truncf %18 : vector<16x16xf32> to vector<16x16xbf16>
    %cst_11 = arith.constant dense<0.000000e+00> : vector<16x64xf32>
    %20 = tpu.matmul %19, %7, %cst_11 {dimension_numbers = #tpu.dot_dimension_numbers<[1], [0], [0], [1], [0, 0, 1, 1], [], []>} : vector<16x16xbf16>, vector<16x64xbf16>, vector<16x64xf32> -> vector<16x64xf32>
    %21 = arith.truncf %20 : vector<16x64xf32> to vector<16x64xbf16>
    %c0_12 = arith.constant 0 : index
    %c0_13 = arith.constant 0 : index
    %c64 = arith.constant 64 : index
    %22 = vector.load %arg3[%c0_12, %c0_13, %c64] : memref<1x16x128xbf16, #tpu.memory_space<vmem>>, vector<1x16x64xbf16>
    %23 = vector.shape_cast %22 : vector<1x16x64xbf16> to vector<16x64xbf16>
    %cst_14 = arith.constant 1.250000e-01 : bf16
    %24 = vector.broadcast %cst_14 : bf16 to vector<16x64xbf16>
    %25 = arith.mulf %23, %24 : vector<16x64xbf16>
    %c0_15 = arith.constant 0 : index
    %c0_16 = arith.constant 0 : index
    %c64_17 = arith.constant 64 : index
    %26 = vector.load %arg4[%c0_15, %c0_16, %c64_17] : memref<1x16x128xbf16, #tpu.memory_space<vmem>>, vector<1x16x64xbf16>
    %27 = vector.shape_cast %26 : vector<1x16x64xbf16> to vector<16x64xbf16>
    %c0_18 = arith.constant 0 : index
    %c0_19 = arith.constant 0 : index
    %c64_20 = arith.constant 64 : index
    %28 = vector.load %arg5[%c0_18, %c0_19, %c64_20] : memref<1x16x128xbf16, #tpu.memory_space<vmem>>, vector<1x16x64xbf16>
    %29 = vector.shape_cast %28 : vector<1x16x64xbf16> to vector<16x64xbf16>
    %cst_21 = arith.constant dense<0.000000e+00> : vector<16x16xf32>
    %30 = tpu.matmul %25, %27, %cst_21 {dimension_numbers = #tpu.dot_dimension_numbers<[1], [1], [0], [0], [0, 0, 1, 0], [], []>} : vector<16x64xbf16>, vector<16x64xbf16>, vector<16x16xf32> -> vector<16x16xf32>
    %cst_22 = arith.constant dense<0xFF800000> : vector<16xf32>
    %31 = vector.multi_reduction <maximumf>, %30, %cst_22 [1] : vector<16x16xf32> to vector<16xf32>
    %32 = vector.shape_cast %31 : vector<16xf32> to vector<16x1xf32>
    %33 = vector.broadcast %32 : vector<16x1xf32> to vector<16x16xf32>
    %34 = arith.subf %30, %33 : vector<16x16xf32>
    %35 = math.exp %34 : vector<16x16xf32>
    %cst_23 = arith.constant dense<0.000000e+00> : vector<16xf32>
    %36 = vector.multi_reduction <add>, %35, %cst_23 [1] : vector<16x16xf32> to vector<16xf32>
    %37 = vector.shape_cast %36 : vector<16xf32> to vector<16x1xf32>
    %38 = tpu.reciprocal %37 {approx = true} : vector<16x1xf32> -> vector<16x1xf32>
    %39 = vector.broadcast %38 : vector<16x1xf32> to vector<16x16xf32>
    %40 = arith.mulf %35, %39 : vector<16x16xf32>
    %41 = arith.truncf %40 : vector<16x16xf32> to vector<16x16xbf16>
    %cst_24 = arith.constant dense<0.000000e+00> : vector<16x64xf32>
    %42 = tpu.matmul %41, %29, %cst_24 {dimension_numbers = #tpu.dot_dimension_numbers<[1], [0], [0], [1], [0, 0, 1, 1], [], []>} : vector<16x16xbf16>, vector<16x64xbf16>, vector<16x64xf32> -> vector<16x64xf32>
    %43 = arith.truncf %42 : vector<16x64xf32> to vector<16x64xbf16>
    %44 = tpu.concatenate %21, %43 in 1 : vector<16x64xbf16>, vector<16x64xbf16> -> vector<16x128xbf16>
    %c0_25 = arith.constant 0 : index
    %c0_26 = arith.constant 0 : index
    %c0_27 = arith.constant 0 : index
    %45 = vector.load %arg6[%c0_25, %c0_26, %c0_27] : memref<1x16x128xbf16, #tpu.memory_space<vmem>>, vector<1x16x128xbf16>
    %46 = vector.shape_cast %45 : vector<1x16x128xbf16> to vector<16x128xbf16>
    %47 = vector.shape_cast %44 : vector<16x128xbf16> to vector<1x16x128xbf16>
    tpu.vector_store %arg6[%c0_25, %c0_26, %c0_27], %47 {strides = array<i32>} : memref<1x16x128xbf16, #tpu.memory_space<vmem>>, vector<1x16x128xbf16>,
    return
  }
  func.func @transform_0(%arg0: i32, %arg1: i32, %arg2: i32) -> (i32, i32, i32) {
    %c0_i32 = arith.constant 0 : i32
    return %arg0, %arg2, %arg1 : i32, i32, i32
  }
  func.func @transform_1(%arg0: i32, %arg1: i32, %arg2: i32) -> (i32, i32, i32) {
    %c2_i32 = arith.constant 2 : i32
    %0 = arith.addi %c2_i32, %arg1 : i32
    %c0_i32 = arith.constant 0 : i32
    %c0_i32_0 = arith.constant 0 : i32
    return %arg0, %c0_i32, %0 : i32, i32, i32
  }
  func.func @transform_2(%arg0: i32, %arg1: i32, %arg2: i32) -> (i32, i32, i32) {
    %c4_i32 = arith.constant 4 : i32
    %0 = arith.addi %c4_i32, %arg1 : i32
    %c0_i32 = arith.constant 0 : i32
    %c0_i32_0 = arith.constant 0 : i32
    return %arg0, %c0_i32, %0 : i32, i32, i32
  }
  func.func @transform_3(%arg0: i32, %arg1: i32, %arg2: i32) -> (i32, i32, i32) {
    %c0_i32 = arith.constant 0 : i32
    return %arg0, %arg2, %arg1 : i32, i32, i32
  }
}

module attributes {stable_mosaic.version = 11 : i64} {
  func.func @_linear_res_ln_kernel(%arg0: i32, %arg1: memref<32x256xbf16, #tpu.memory_space<vmem>>, %arg2: memref<256x256xbf16, #tpu.memory_space<vmem>>, %arg3: memref<1x256xf32, #tpu.memory_space<vmem>>, %arg4: memref<32x256xbf16, #tpu.memory_space<vmem>>, %arg5: memref<1x256xf32, #tpu.memory_space<vmem>>, %arg6: memref<1x256xf32, #tpu.memory_space<vmem>>, %arg7: memref<32x256xbf16, #tpu.memory_space<vmem>>) attributes {dimension_semantics = [#tpu.dimension_semantics<parallel>], iteration_bounds = array<i64: 1>, scalar_prefetch = 0 : i64, scratch_operands = 0 : i64, tpu.core_type = #tpu.core_type<tc>, window_params = [{transform_indices = @transform_0, window_bounds = array<i64: 32, 256>}, {pipeline_mode = #tpu.pipeline_mode<synchronous>, transform_indices = @transform_1, window_bounds = array<i64: 256, 256>}, {pipeline_mode = #tpu.pipeline_mode<synchronous>, transform_indices = @transform_2, window_bounds = array<i64: 1, 256>}, {transform_indices = @transform_3, window_bounds = array<i64: 32, 256>}, {pipeline_mode = #tpu.pipeline_mode<synchronous>, transform_indices = @transform_4, window_bounds = array<i64: 1, 256>}, {pipeline_mode = #tpu.pipeline_mode<synchronous>, transform_indices = @transform_5, window_bounds = array<i64: 1, 256>}, {transform_indices = @transform_6, window_bounds = array<i64: 32, 256>}]} {
    %c0 = arith.constant 0 : index
    %c0_0 = arith.constant 0 : index
    %0 = vector.load %arg1[%c0, %c0_0] : memref<32x256xbf16, #tpu.memory_space<vmem>>, vector<32x256xbf16>
    %c0_1 = arith.constant 0 : index
    %c0_2 = arith.constant 0 : index
    %1 = vector.load %arg2[%c0_1, %c0_2] : memref<256x256xbf16, #tpu.memory_space<vmem>>, vector<256x256xbf16>
    %cst = arith.constant dense<0.000000e+00> : vector<32x256xf32>
    %2 = tpu.matmul %0, %1, %cst {dimension_numbers = #tpu.dot_dimension_numbers<[1], [0], [0], [1], [0, 0, 1, 1], [], []>} : vector<32x256xbf16>, vector<256x256xbf16>, vector<32x256xf32> -> vector<32x256xf32>
    %c0_3 = arith.constant 0 : index
    %c0_4 = arith.constant 0 : index
    %3 = vector.load %arg3[%c0_3, %c0_4] : memref<1x256xf32, #tpu.memory_space<vmem>>, vector<1x256xf32>
    %4 = vector.broadcast %3 : vector<1x256xf32> to vector<32x256xf32>
    %5 = arith.addf %2, %4 : vector<32x256xf32>
    %c0_5 = arith.constant 0 : index
    %c0_6 = arith.constant 0 : index
    %6 = vector.load %arg4[%c0_5, %c0_6] : memref<32x256xbf16, #tpu.memory_space<vmem>>, vector<32x256xbf16>
    %7 = arith.extf %6 : vector<32x256xbf16> to vector<32x256xf32>
    %8 = arith.addf %5, %7 : vector<32x256xf32>
    %cst_7 = arith.constant dense<0.000000e+00> : vector<32xf32>
    %9 = vector.multi_reduction <add>, %8, %cst_7 [1] : vector<32x256xf32> to vector<32xf32>
    %10 = vector.shape_cast %9 : vector<32xf32> to vector<32x1xf32>
    %cst_8 = arith.constant 2.560000e+02 : f32
    %11 = vector.broadcast %cst_8 : f32 to vector<32x1xf32>
    %12 = arith.divf %10, %11 : vector<32x1xf32>
    %13 = vector.broadcast %12 : vector<32x1xf32> to vector<32x256xf32>
    %14 = arith.subf %8, %13 : vector<32x256xf32>
    %15 = arith.mulf %14, %14 : vector<32x256xf32>
    %cst_9 = arith.constant dense<0.000000e+00> : vector<32xf32>
    %16 = vector.multi_reduction <add>, %15, %cst_9 [1] : vector<32x256xf32> to vector<32xf32>
    %17 = vector.shape_cast %16 : vector<32xf32> to vector<32x1xf32>
    %cst_10 = arith.constant 2.560000e+02 : f32
    %18 = vector.broadcast %cst_10 : f32 to vector<32x1xf32>
    %19 = arith.divf %17, %18 : vector<32x1xf32>
    %20 = vector.broadcast %12 : vector<32x1xf32> to vector<32x256xf32>
    %21 = arith.subf %8, %20 : vector<32x256xf32>
    %cst_11 = arith.constant 9.99999996E-13 : f32
    %22 = vector.broadcast %cst_11 : f32 to vector<32x1xf32>
    %23 = arith.addf %19, %22 : vector<32x1xf32>
    %24 = math.rsqrt %23 : vector<32x1xf32>
    %25 = vector.broadcast %24 : vector<32x1xf32> to vector<32x256xf32>
    %26 = arith.mulf %21, %25 : vector<32x256xf32>
    %c0_12 = arith.constant 0 : index
    %c0_13 = arith.constant 0 : index
    %27 = vector.load %arg5[%c0_12, %c0_13] : memref<1x256xf32, #tpu.memory_space<vmem>>, vector<1x256xf32>
    %28 = vector.broadcast %27 : vector<1x256xf32> to vector<32x256xf32>
    %29 = arith.mulf %26, %28 : vector<32x256xf32>
    %c0_14 = arith.constant 0 : index
    %c0_15 = arith.constant 0 : index
    %30 = vector.load %arg6[%c0_14, %c0_15] : memref<1x256xf32, #tpu.memory_space<vmem>>, vector<1x256xf32>
    %31 = vector.broadcast %30 : vector<1x256xf32> to vector<32x256xf32>
    %32 = arith.addf %29, %31 : vector<32x256xf32>
    %33 = arith.truncf %32 : vector<32x256xf32> to vector<32x256xbf16>
    %c0_16 = arith.constant 0 : index
    %c0_17 = arith.constant 0 : index
    %34 = vector.load %arg7[%c0_16, %c0_17] : memref<32x256xbf16, #tpu.memory_space<vmem>>, vector<32x256xbf16>
    tpu.vector_store %arg7[%c0_16, %c0_17], %33 {strides = array<i32>} : memref<32x256xbf16, #tpu.memory_space<vmem>>, vector<32x256xbf16>,
    return
  }
  func.func @transform_0(%arg0: i32) -> (i32, i32) {
    %c0_i32 = arith.constant 0 : i32
    %c0_i32_0 = arith.constant 0 : i32
    return %arg0, %c0_i32 : i32, i32
  }
  func.func @transform_1(%arg0: i32) -> (i32, i32) {
    %c0_i32 = arith.constant 0 : i32
    %c0_i32_0 = arith.constant 0 : i32
    %c0_i32_1 = arith.constant 0 : i32
    return %c0_i32, %c0_i32_0 : i32, i32
  }
  func.func @transform_2(%arg0: i32) -> (i32, i32) {
    %c0_i32 = arith.constant 0 : i32
    %c0_i32_0 = arith.constant 0 : i32
    %c0_i32_1 = arith.constant 0 : i32
    return %c0_i32, %c0_i32_0 : i32, i32
  }
  func.func @transform_3(%arg0: i32) -> (i32, i32) {
    %c0_i32 = arith.constant 0 : i32
    %c0_i32_0 = arith.constant 0 : i32
    return %arg0, %c0_i32 : i32, i32
  }
  func.func @transform_4(%arg0: i32) -> (i32, i32) {
    %c0_i32 = arith.constant 0 : i32
    %c0_i32_0 = arith.constant 0 : i32
    %c0_i32_1 = arith.constant 0 : i32
    return %c0_i32, %c0_i32_0 : i32, i32
  }
  func.func @transform_5(%arg0: i32) -> (i32, i32) {
    %c0_i32 = arith.constant 0 : i32
    %c0_i32_0 = arith.constant 0 : i32
    %c0_i32_1 = arith.constant 0 : i32
    return %c0_i32, %c0_i32_0 : i32, i32
  }
  func.func @transform_6(%arg0: i32) -> (i32, i32) {
    %c0_i32 = arith.constant 0 : i32
    %c0_i32_0 = arith.constant 0 : i32
    return %arg0, %c0_i32 : i32, i32
  }
}

module attributes {stable_mosaic.version = 11 : i64} {
  func.func @_linear_kernel(%arg0: i32, %arg1: i32, %arg2: memref<32x256xbf16, #tpu.memory_space<vmem>>, %arg3: memref<256x512xbf16, #tpu.memory_space<vmem>>, %arg4: memref<1x512xf32, #tpu.memory_space<vmem>>, %arg5: memref<32x512xbf16, #tpu.memory_space<vmem>>) attributes {dimension_semantics = [#tpu.dimension_semantics<parallel>, #tpu.dimension_semantics<parallel>], iteration_bounds = array<i64: 1, 1>, scalar_prefetch = 0 : i64, scratch_operands = 0 : i64, tpu.core_type = #tpu.core_type<tc>, window_params = [{transform_indices = @transform_0, window_bounds = array<i64: 32, 256>}, {transform_indices = @transform_1, window_bounds = array<i64: 256, 512>}, {transform_indices = @transform_2, window_bounds = array<i64: 1, 512>}, {transform_indices = @transform_3, window_bounds = array<i64: 32, 512>}]} {
    %c0 = arith.constant 0 : index
    %c0_0 = arith.constant 0 : index
    %0 = vector.load %arg2[%c0, %c0_0] : memref<32x256xbf16, #tpu.memory_space<vmem>>, vector<32x256xbf16>
    %c0_1 = arith.constant 0 : index
    %c0_2 = arith.constant 0 : index
    %1 = vector.load %arg3[%c0_1, %c0_2] : memref<256x512xbf16, #tpu.memory_space<vmem>>, vector<256x512xbf16>
    %cst = arith.constant dense<0.000000e+00> : vector<32x512xf32>
    %2 = tpu.matmul %0, %1, %cst {dimension_numbers = #tpu.dot_dimension_numbers<[1], [0], [0], [1], [0, 0, 1, 1], [], []>} : vector<32x256xbf16>, vector<256x512xbf16>, vector<32x512xf32> -> vector<32x512xf32>
    %c0_3 = arith.constant 0 : index
    %c0_4 = arith.constant 0 : index
    %3 = vector.load %arg4[%c0_3, %c0_4] : memref<1x512xf32, #tpu.memory_space<vmem>>, vector<1x512xf32>
    %4 = vector.broadcast %3 : vector<1x512xf32> to vector<32x512xf32>
    %5 = arith.addf %2, %4 : vector<32x512xf32>
    %cst_5 = arith.constant 5.000000e-01 : f32
    %6 = vector.broadcast %cst_5 : f32 to vector<32x512xf32>
    %7 = arith.mulf %6, %5 : vector<32x512xf32>
    %cst_6 = arith.constant 0.707106769 : f32
    %8 = vector.broadcast %cst_6 : f32 to vector<32x512xf32>
    %9 = arith.mulf %5, %8 : vector<32x512xf32>
    %10 = math.erf %9 : vector<32x512xf32>
    %cst_7 = arith.constant 1.000000e+00 : f32
    %11 = vector.broadcast %cst_7 : f32 to vector<32x512xf32>
    %12 = arith.addf %11, %10 : vector<32x512xf32>
    %13 = arith.mulf %7, %12 : vector<32x512xf32>
    %14 = arith.truncf %13 : vector<32x512xf32> to vector<32x512xbf16>
    %c0_8 = arith.constant 0 : index
    %c0_9 = arith.constant 0 : index
    %15 = vector.load %arg5[%c0_8, %c0_9] : memref<32x512xbf16, #tpu.memory_space<vmem>>, vector<32x512xbf16>
    tpu.vector_store %arg5[%c0_8, %c0_9], %14 {strides = array<i32>} : memref<32x512xbf16, #tpu.memory_space<vmem>>, vector<32x512xbf16>,
    return
  }
  func.func @transform_0(%arg0: i32, %arg1: i32) -> (i32, i32) {
    %c0_i32 = arith.constant 0 : i32
    %c0_i32_0 = arith.constant 0 : i32
    return %arg0, %c0_i32 : i32, i32
  }
  func.func @transform_1(%arg0: i32, %arg1: i32) -> (i32, i32) {
    %c0_i32 = arith.constant 0 : i32
    %c0_i32_0 = arith.constant 0 : i32
    return %c0_i32, %arg1 : i32, i32
  }
  func.func @transform_2(%arg0: i32, %arg1: i32) -> (i32, i32) {
    %c0_i32 = arith.constant 0 : i32
    %c0_i32_0 = arith.constant 0 : i32
    return %c0_i32, %arg1 : i32, i32
  }
  func.func @transform_3(%arg0: i32, %arg1: i32) -> (i32, i32) {
    %c0_i32 = arith.constant 0 : i32
    return %arg0, %arg1 : i32, i32
  }
}

module attributes {stable_mosaic.version = 11 : i64} {
  func.func @_linear_res_ln_kernel(%arg0: i32, %arg1: memref<32x512xbf16, #tpu.memory_space<vmem>>, %arg2: memref<512x256xbf16, #tpu.memory_space<vmem>>, %arg3: memref<1x256xf32, #tpu.memory_space<vmem>>, %arg4: memref<32x256xbf16, #tpu.memory_space<vmem>>, %arg5: memref<1x256xf32, #tpu.memory_space<vmem>>, %arg6: memref<1x256xf32, #tpu.memory_space<vmem>>, %arg7: memref<32x256xbf16, #tpu.memory_space<vmem>>) attributes {dimension_semantics = [#tpu.dimension_semantics<parallel>], iteration_bounds = array<i64: 1>, scalar_prefetch = 0 : i64, scratch_operands = 0 : i64, tpu.core_type = #tpu.core_type<tc>, window_params = [{transform_indices = @transform_0, window_bounds = array<i64: 32, 512>}, {pipeline_mode = #tpu.pipeline_mode<synchronous>, transform_indices = @transform_1, window_bounds = array<i64: 512, 256>}, {pipeline_mode = #tpu.pipeline_mode<synchronous>, transform_indices = @transform_2, window_bounds = array<i64: 1, 256>}, {transform_indices = @transform_3, window_bounds = array<i64: 32, 256>}, {pipeline_mode = #tpu.pipeline_mode<synchronous>, transform_indices = @transform_4, window_bounds = array<i64: 1, 256>}, {pipeline_mode = #tpu.pipeline_mode<synchronous>, transform_indices = @transform_5, window_bounds = array<i64: 1, 256>}, {transform_indices = @transform_6, window_bounds = array<i64: 32, 256>}]} {
    %c0 = arith.constant 0 : index
    %c0_0 = arith.constant 0 : index
    %0 = vector.load %arg1[%c0, %c0_0] : memref<32x512xbf16, #tpu.memory_space<vmem>>, vector<32x512xbf16>
    %c0_1 = arith.constant 0 : index
    %c0_2 = arith.constant 0 : index
    %1 = vector.load %arg2[%c0_1, %c0_2] : memref<512x256xbf16, #tpu.memory_space<vmem>>, vector<512x256xbf16>
    %cst = arith.constant dense<0.000000e+00> : vector<32x256xf32>
    %2 = tpu.matmul %0, %1, %cst {dimension_numbers = #tpu.dot_dimension_numbers<[1], [0], [0], [1], [0, 0, 1, 1], [], []>} : vector<32x512xbf16>, vector<512x256xbf16>, vector<32x256xf32> -> vector<32x256xf32>
    %c0_3 = arith.constant 0 : index
    %c0_4 = arith.constant 0 : index
    %3 = vector.load %arg3[%c0_3, %c0_4] : memref<1x256xf32, #tpu.memory_space<vmem>>, vector<1x256xf32>
    %4 = vector.broadcast %3 : vector<1x256xf32> to vector<32x256xf32>
    %5 = arith.addf %2, %4 : vector<32x256xf32>
    %c0_5 = arith.constant 0 : index
    %c0_6 = arith.constant 0 : index
    %6 = vector.load %arg4[%c0_5, %c0_6] : memref<32x256xbf16, #tpu.memory_space<vmem>>, vector<32x256xbf16>
    %7 = arith.extf %6 : vector<32x256xbf16> to vector<32x256xf32>
    %8 = arith.addf %5, %7 : vector<32x256xf32>
    %cst_7 = arith.constant dense<0.000000e+00> : vector<32xf32>
    %9 = vector.multi_reduction <add>, %8, %cst_7 [1] : vector<32x256xf32> to vector<32xf32>
    %10 = vector.shape_cast %9 : vector<32xf32> to vector<32x1xf32>
    %cst_8 = arith.constant 2.560000e+02 : f32
    %11 = vector.broadcast %cst_8 : f32 to vector<32x1xf32>
    %12 = arith.divf %10, %11 : vector<32x1xf32>
    %13 = vector.broadcast %12 : vector<32x1xf32> to vector<32x256xf32>
    %14 = arith.subf %8, %13 : vector<32x256xf32>
    %15 = arith.mulf %14, %14 : vector<32x256xf32>
    %cst_9 = arith.constant dense<0.000000e+00> : vector<32xf32>
    %16 = vector.multi_reduction <add>, %15, %cst_9 [1] : vector<32x256xf32> to vector<32xf32>
    %17 = vector.shape_cast %16 : vector<32xf32> to vector<32x1xf32>
    %cst_10 = arith.constant 2.560000e+02 : f32
    %18 = vector.broadcast %cst_10 : f32 to vector<32x1xf32>
    %19 = arith.divf %17, %18 : vector<32x1xf32>
    %20 = vector.broadcast %12 : vector<32x1xf32> to vector<32x256xf32>
    %21 = arith.subf %8, %20 : vector<32x256xf32>
    %cst_11 = arith.constant 9.99999996E-13 : f32
    %22 = vector.broadcast %cst_11 : f32 to vector<32x1xf32>
    %23 = arith.addf %19, %22 : vector<32x1xf32>
    %24 = math.rsqrt %23 : vector<32x1xf32>
    %25 = vector.broadcast %24 : vector<32x1xf32> to vector<32x256xf32>
    %26 = arith.mulf %21, %25 : vector<32x256xf32>
    %c0_12 = arith.constant 0 : index
    %c0_13 = arith.constant 0 : index
    %27 = vector.load %arg5[%c0_12, %c0_13] : memref<1x256xf32, #tpu.memory_space<vmem>>, vector<1x256xf32>
    %28 = vector.broadcast %27 : vector<1x256xf32> to vector<32x256xf32>
    %29 = arith.mulf %26, %28 : vector<32x256xf32>
    %c0_14 = arith.constant 0 : index
    %c0_15 = arith.constant 0 : index
    %30 = vector.load %arg6[%c0_14, %c0_15] : memref<1x256xf32, #tpu.memory_space<vmem>>, vector<1x256xf32>
    %31 = vector.broadcast %30 : vector<1x256xf32> to vector<32x256xf32>
    %32 = arith.addf %29, %31 : vector<32x256xf32>
    %33 = arith.truncf %32 : vector<32x256xf32> to vector<32x256xbf16>
    %c0_16 = arith.constant 0 : index
    %c0_17 = arith.constant 0 : index
    %34 = vector.load %arg7[%c0_16, %c0_17] : memref<32x256xbf16, #tpu.memory_space<vmem>>, vector<32x256xbf16>
    tpu.vector_store %arg7[%c0_16, %c0_17], %33 {strides = array<i32>} : memref<32x256xbf16, #tpu.memory_space<vmem>>, vector<32x256xbf16>,
    return
  }
  func.func @transform_0(%arg0: i32) -> (i32, i32) {
    %c0_i32 = arith.constant 0 : i32
    %c0_i32_0 = arith.constant 0 : i32
    return %arg0, %c0_i32 : i32, i32
  }
  func.func @transform_1(%arg0: i32) -> (i32, i32) {
    %c0_i32 = arith.constant 0 : i32
    %c0_i32_0 = arith.constant 0 : i32
    %c0_i32_1 = arith.constant 0 : i32
    return %c0_i32, %c0_i32_0 : i32, i32
  }
  func.func @transform_2(%arg0: i32) -> (i32, i32) {
    %c0_i32 = arith.constant 0 : i32
    %c0_i32_0 = arith.constant 0 : i32
    %c0_i32_1 = arith.constant 0 : i32
    return %c0_i32, %c0_i32_0 : i32, i32
  }
  func.func @transform_3(%arg0: i32) -> (i32, i32) {
    %c0_i32 = arith.constant 0 : i32
    %c0_i32_0 = arith.constant 0 : i32
    return %arg0, %c0_i32 : i32, i32
  }
  func.func @transform_4(%arg0: i32) -> (i32, i32) {
    %c0_i32 = arith.constant 0 : i32
    %c0_i32_0 = arith.constant 0 : i32
    %c0_i32_1 = arith.constant 0 : i32
    return %c0_i32, %c0_i32_0 : i32, i32
  }
  func.func @transform_5(%arg0: i32) -> (i32, i32) {
    %c0_i32 = arith.constant 0 : i32
    %c0_i32_0 = arith.constant 0 : i32
    %c0_i32_1 = arith.constant 0 : i32
    return %c0_i32, %c0_i32_0 : i32, i32
  }
  func.func @transform_6(%arg0: i32) -> (i32, i32) {
    %c0_i32 = arith.constant 0 : i32
    %c0_i32_0 = arith.constant 0 : i32
    return %arg0, %c0_i32 : i32, i32
  }
}

module attributes {stable_mosaic.version = 11 : i64} {
  func.func @_linear_kernel(%arg0: i32, %arg1: i32, %arg2: memref<32x256xbf16, #tpu.memory_space<vmem>>, %arg3: memref<256x384xbf16, #tpu.memory_space<vmem>>, %arg4: memref<1x384xf32, #tpu.memory_space<vmem>>, %arg5: memref<32x384xbf16, #tpu.memory_space<vmem>>) attributes {dimension_semantics = [#tpu.dimension_semantics<parallel>, #tpu.dimension_semantics<parallel>], iteration_bounds = array<i64: 1, 2>, scalar_prefetch = 0 : i64, scratch_operands = 0 : i64, tpu.core_type = #tpu.core_type<tc>, window_params = [{transform_indices = @transform_0, window_bounds = array<i64: 32, 256>}, {transform_indices = @transform_1, window_bounds = array<i64: 256, 384>}, {transform_indices = @transform_2, window_bounds = array<i64: 1, 384>}, {transform_indices = @transform_3, window_bounds = array<i64: 32, 384>}]} {
    %c0 = arith.constant 0 : index
    %c0_0 = arith.constant 0 : index
    %0 = vector.load %arg2[%c0, %c0_0] : memref<32x256xbf16, #tpu.memory_space<vmem>>, vector<32x256xbf16>
    %c0_1 = arith.constant 0 : index
    %c0_2 = arith.constant 0 : index
    %1 = vector.load %arg3[%c0_1, %c0_2] : memref<256x384xbf16, #tpu.memory_space<vmem>>, vector<256x384xbf16>
    %cst = arith.constant dense<0.000000e+00> : vector<32x384xf32>
    %2 = tpu.matmul %0, %1, %cst {dimension_numbers = #tpu.dot_dimension_numbers<[1], [0], [0], [1], [0, 0, 1, 1], [], []>} : vector<32x256xbf16>, vector<256x384xbf16>, vector<32x384xf32> -> vector<32x384xf32>
    %c0_3 = arith.constant 0 : index
    %c0_4 = arith.constant 0 : index
    %3 = vector.load %arg4[%c0_3, %c0_4] : memref<1x384xf32, #tpu.memory_space<vmem>>, vector<1x384xf32>
    %4 = vector.broadcast %3 : vector<1x384xf32> to vector<32x384xf32>
    %5 = arith.addf %2, %4 : vector<32x384xf32>
    %6 = arith.truncf %5 : vector<32x384xf32> to vector<32x384xbf16>
    %c0_5 = arith.constant 0 : index
    %c0_6 = arith.constant 0 : index
    %7 = vector.load %arg5[%c0_5, %c0_6] : memref<32x384xbf16, #tpu.memory_space<vmem>>, vector<32x384xbf16>
    tpu.vector_store %arg5[%c0_5, %c0_6], %6 {strides = array<i32>} : memref<32x384xbf16, #tpu.memory_space<vmem>>, vector<32x384xbf16>,
    return
  }
  func.func @transform_0(%arg0: i32, %arg1: i32) -> (i32, i32) {
    %c0_i32 = arith.constant 0 : i32
    %c0_i32_0 = arith.constant 0 : i32
    return %arg0, %c0_i32 : i32, i32
  }
  func.func @transform_1(%arg0: i32, %arg1: i32) -> (i32, i32) {
    %c0_i32 = arith.constant 0 : i32
    %c0_i32_0 = arith.constant 0 : i32
    return %c0_i32, %arg1 : i32, i32
  }
  func.func @transform_2(%arg0: i32, %arg1: i32) -> (i32, i32) {
    %c0_i32 = arith.constant 0 : i32
    %c0_i32_0 = arith.constant 0 : i32
    return %c0_i32, %arg1 : i32, i32
  }
  func.func @transform_3(%arg0: i32, %arg1: i32) -> (i32, i32) {
    %c0_i32 = arith.constant 0 : i32
    return %arg0, %arg1 : i32, i32
  }
}

</mosaic_0001>

<bundles_post_ra>
// kernel: bert_embedding_forward.11
= control target key start
LH: loop header
LB: loop body
LE: loop exit
PB: predicated region body
PF: predicated region fallthrough
CT: control target
= control target key end

     0   :  { %s566_s15 = smov 0   ;;  %s568_s16 = smov 0   ;;  %s624_s0 = inlined_call_operand.vmem [shape: bf16[2,16,256], index: 0, kind: input, shape index: {}]   ;;  %s625_s1 = inlined_call_operand.vmem [shape: f32[16,256], index: 1, kind: input, shape index: {}]   ;;  %s626_s2 = inlined_call_operand.vmem [shape: f32[1,256], index: 2, kind: input, shape index: {}]   ;;  %s627_s3 = inlined_call_operand.vmem [shape: f32[1,256], index: 3, kind: input, shape index: {}]   ;;  %s628_s4 = inlined_call_operand.vmem [shape: bf16[2,16,256], index: 4, kind: output, shape index: {}]  }
   0x1   :  { %s570_s17 = smov 0  }
   0x2 LB: > { %s26_s18 = sadd.s32 1, %s535_s16  ;;  %p476_p0 = scmp.ge.s32.totalorder %s539_s17, 1  ;;  %s539_s17 = sphi %s570_s17, %s14_s17   ;;  %s535_s16 = sphi %s568_s16, %s630_s16   ;;  %s531_s15 = sphi %s566_s15, %s629_s15  }
   0x3   : > { %p28_p1 = scmp.ge.s32.totalorder %s26_s18, 2  ;;  %p196_p2 = scmp.lt.s32.totalorder %s539_s17, 3 }
   0x5   : > { %s632_s18 = smov (%p28_p1, %s26_s18), 0  ;;  %p197_p3 = pnand %p476_p0, %p196_p2 }
   0x6   : > { %p239_p4 = scmp.lt.s32.totalorder (!%p197_p3), %s531_s15, 1 }
   0x7   : > { %200 = sbr.rel (%p197_p3) target bundleno = 337 (0x151), region = 36 }
   0xc   : > { %s634_s15 = smov (!%p239_p4, %s531_s15), 1  ;;  %v273_v0 = vld [vmem:[%s625_s1] sm:$0xff]  ;;  %v274_v1 = vld [vmem:[%s625_s1 + $0x8] sm:$0xff]  ;;  %v275_v2 = vld [vmem:[%s625_s1 + $0x10] sm:$0xff]  ;;  %v316_v34 = vlaneseq }
   0xd   : > { %s485_s19 = sshll.u32 %s634_s15, 4  ;;  %v276_v5 = vld [vmem:[%s625_s1 + $0x18] sm:$0xff]  ;;  %v314_v40 = vld [vmem:[%s626_s2] sm:$0x3] }
   0xe   : > { %s247_s22 = scalar_lea.vmem %s624_s0, %s485_s19  ;;  %v317_v37 = vshrl.u32 %v316_v34, 7  ;;  %v330_v41 = vld [vmem:[%s627_s3] sm:$0x3]  ;;  %s265_s11 = scalar_lea.vmem %s628_s4, %s485_s19 }
   0xf   : > { %v267_v3 = vld [vmem:[%s247_s22] sm:$0xff]  ;;  %v268_v4 = vld [vmem:[%s247_s22 + $0x8] sm:$0xff] }
  0x10   : > { %v269_v6 = vunpack.c.l.bf16 %v267_v3  ;;  %v270_v7 = vunpack.c.h.bf16 %v267_v3  ;;  %v271_v8 = vunpack.c.l.bf16 %v268_v4  ;;  %v272_v9 = vunpack.c.h.bf16 %v268_v4 }
  0x11   : > { %v318_v38 = vsub.s32 0, %v317_v37  ;;  %v322_v39 = vsub.s32 1, %v317_v37 }
  0x12   : > { %v277_v10 = vadd.f32 %v273_v0, %v269_v6  ;;  %v278_v11 = vadd.f32 %v274_v1, %v270_v7  ;;  %v279_v12 = vadd.f32 %v275_v2, %v271_v8  ;;  %v280_v13 = vadd.f32 %v276_v5, %v272_v9 }
  0x13   : > { %v319_v42 = vrot.slane %v314_v40, %v318_v38  ;;  %v323_v43 = vrot.slane %v314_v40, %v322_v39  ;;  %v335_v45 = vrot.slane %v330_v41, %v318_v38  ;;  %v339_v46 = vrot.slane %v330_v41, %v322_v39 }
  0x14   : > { %v281_v14 = vadd.f32 %v278_v11, %v277_v10  ;;  %v284_v15 = vadd.f32 %v280_v13, %v279_v12 }
  0x16   : > { %282 = vadd.xlane.f32.xlu0 %v281_v14 }
  0x1a   : > { %285 = vadd.xlane.f32.xlu0 %v284_v15 }
  0x9f   : > { %v283_v16 = vpop.xlane.xlu0 %282 }
  0xa0   : > { %v288_v17 = vmul.f32 0.00390625, %v283_v16 }
  0xa2   : > { %v290_v18 = vsub.f32 %v277_v10, %v288_v17  ;;  %v291_v19 = vsub.f32 %v278_v11, %v288_v17 }
  0xa3   : > { %v286_v20 = vpop.xlane.xlu0 %285 }
  0xa4   : > { %v289_v21 = vmul.f32 0.00390625, %v286_v20  ;;  %v294_v22 = vmul.f32 %v290_v18, %v290_v18  ;;  %v295_v23 = vmul.f32 %v291_v19, %v291_v19 }
  0xa6   : > { %v292_v24 = vsub.f32 %v279_v12, %v289_v21  ;;  %v293_v25 = vsub.f32 %v280_v13, %v289_v21  ;;  %v298_v26 = vadd.f32 %v295_v23, %v294_v22 }
  0xa8   : > { %299 = vadd.xlane.f32.xlu1 %v298_v26  ;;  %v296_v27 = vmul.f32 %v292_v24, %v292_v24  ;;  %v297_v28 = vmul.f32 %v293_v25, %v293_v25 }
  0xaa   : > { %v301_v29 = vadd.f32 %v297_v28, %v296_v27 }
  0xac   : > { %302 = vadd.xlane.f32.xlu1 %v301_v29 }
 0x131   : > { %v300_v30 = vpop.xlane.xlu1 %299 }
 0x132   : > { %v304_v31 = vmul.f32 0.00390625, %v300_v30 }
 0x134   : > { %v306_v32 = vadd.f32 1e-12, %v304_v31 }
 0x135   : > { %v303_v33 = vpop.xlane.xlu1 %302 }
 0x136   : > { %513 = vrsqrt.f32 %v306_v32  ;;  %v305_v35 = vmul.f32 0.00390625, %v303_v33 }
 0x138   : > { %v307_v36 = vadd.f32 1e-12, %v305_v35 }
 0x13a   : > { %515 = vrsqrt.f32 %v307_v36 }
 0x143   : > { %v514_v44 = vpop.eup %513 }
 0x144   : > { %v310_v47 = vmul.f32 %v514_v44, %v290_v18  ;;  %v311_v48 = vmul.f32 %v514_v44, %v291_v19 }
 0x146   : > { %v326_v49 = vmul.f32 %v319_v42, %v310_v47  ;;  %v327_v50 = vmul.f32 %v323_v43, %v311_v48 }
 0x147   : > { %v516_v51 = vpop.eup %515 }
 0x148   : > { %v342_v52 = vadd.f32 %v335_v45, %v326_v49  ;;  %v343_v53 = vadd.f32 %v339_v46, %v327_v50  ;;  %v312_v54 = vmul.f32 %v516_v51, %v292_v24  ;;  %v313_v55 = vmul.f32 %v516_v51, %v293_v25 }
 0x14a   : > { %v487_v56 = vpack.c.bf16 %v343_v53, %v342_v52  ;;  %v328_v57 = vmul.f32 %v319_v42, %v312_v54  ;;  %v329_v58 = vmul.f32 %v323_v43, %v313_v55 }
 0x14c   : > { %358 = vst [vmem:[%s265_s11] sm:$0xff] %v487_v56  ;;  %v344_v59 = vadd.f32 %v335_v45, %v328_v57  ;;  %v345_v60 = vadd.f32 %v339_v46, %v329_v58 }
 0x14e   : > { %v488_v61 = vpack.c.bf16 %v345_v60, %v344_v59 }
 0x150   : > { %359 = vst [vmem:[%s265_s11 + $0x8] sm:$0xff] %v488_v61 }
 0x151 PF: > { %s14_s17 = sadd.s32 1, %s539_s17   ;;  %s629_s15 = smov %s535_s16 }
 0x152   : > { %p11_p5 = scmp.ge.s32.totalorder %s14_s17, 4   ;;  %s630_s16 = smov %s632_s18 }
 0x154   :  { %13 = sbr.rel (!%p11_p5) target bundleno = 2 (0x2), region = 69 }

// kernel: bert_embedding_forward.13
= control target key start
LH: loop header
LB: loop body
LE: loop exit
PB: predicated region body
PF: predicated region fallthrough
CT: control target
= control target key end

     0   :  { %s1367_s0 = inlined_call_operand.vmem [shape: bf16[2,16,768], index: 0, kind: input, shape index: {}, may-alias: {0,1,2}]   ;;  %s1368_s1 = inlined_call_operand.vmem [shape: bf16[2,16,768], index: 1, kind: input, shape index: {}, may-alias: {0,1,2}]   ;;  %s1369_s2 = inlined_call_operand.vmem [shape: bf16[2,16,768], index: 2, kind: input, shape index: {}, may-alias: {0,1,2}]   ;;  %s1370_s3 = inlined_call_operand.vmem [shape: bf16[2,16,256], index: 3, kind: output, shape index: {}]  }
   0x1   :  { %1373 = sst [smem:[#allocation9_spill]] %s1370_s3 }
   0x2   :  { %s1142_s12 = smov 0   ;;  %s1144_s13 = smov 0  }
   0x3   :  { %s1146_s14 = smov 0   ;;  %s1148_s15 = smov 0  }
   0x4   :  { %s1150_s16 = smov 0   ;;  %s1152_s17 = smov 0  }
   0x5   :  { %s1154_s18 = smov 0   ;;  %s1156_s19 = smov 0  }
   0x6   :  { %s1158_s20 = smov 0   ;;  %s1160_s21 = smov 0  }
   0x7   :  { %s1162_s22 = smov 0  }
   0x8 LB: > { %s28_s24 = sadd.s32 1, %s1109_s20  ;;  %s32_s25 = sadd.s32 1, %s1113_s21  ;;  %s1117_s22 = sphi %s1162_s22, %s13_s22   ;;  %s1113_s21 = sphi %s1160_s21, %s1395_s21   ;;  %s1109_s20 = sphi %s1158_s20, %s1394_s20   ;;  %s1105_s19 = sphi %s1156_s19, %s1393_s19   ;;  %s1101_s18 = sphi %s1154_s18, %s1392_s18   ;;  %s1097_s17 = sphi %s1152_s17, %s1391_s17   ;;  %s1093_s16 = sphi %s1150_s16, %s1390_s16   ;;  %s1089_s15 = sphi %s1148_s15, %s1389_s15   ;;  %s1085_s14 = sphi %s1146_s14, %s1388_s14   ;;  %s1081_s13 = sphi %s1144_s13, %s1387_s13   ;;  %s1077_s12 = sphi %s1142_s12, %s1386_s12  }
   0x9   : > { %p30_p0 = scmp.ge.s32.totalorder %s28_s24, 2  ;;  %s43_s26 = sadd.s32 1, %s1097_s17 }
   0xa   : > { %p50_p1 = scmp.ne.s32.totalorder %s1097_s17, %s1093_s16  ;;  %p51_p2 = scmp.eq.s32.totalorder %s1117_s22, 0 }
   0xb   : > { %s1397_s24 = smov (%p30_p0, %s28_s24), 0  ;;  %s1399_s25 = smov (!%p30_p0, %s32_s25), %s1113_s21 }
   0xc   : > { %1374 = sst [smem:[#allocation6_spill]] %s1397_s24  ;;  %s39_s27 = ssub.s32 %s1109_s20, %s1397_s24 }
   0xd   : > { %p34_p3 = scmp.ge.s32.totalorder %s1399_s25, 2  ;;  %s66_s28 = sadd.s32 2, %s1109_s20 }
   0xe   : > { %p1215_p4 = por %p51_p2, %p50_p1  ;;  %s67_s30 = sadd.s32 2, %s1397_s24 }
   0xf   : > { %s1401_s25 = smov (%p34_p3, %s1399_s25), 0  ;;  %s69_s4 = ssub.s32 %s66_s28, %s67_s30 }
  0x10   : > { %1376 = sst [smem:[#allocation7_spill]] %s1401_s25  ;;  %s73_s5 = sadd.s32 1, %s1089_s15 }
  0x11   : > { %s36_s6 = ssub.s32 %s1113_s21, %s1401_s25  ;;  %p80_p5 = scmp.ne.s32.totalorder %s1089_s15, %s1085_s14 }
  0x12   : > { %s40_s7 = sor.u32 %s39_s27, %s36_s6  ;;  %s70_s8 = sor.u32 %s69_s4, %s36_s6 }
  0x13   : > { %p41_p6 = scmp.eq.s32.totalorder %s40_s7, 0  ;;  %p71_p7 = scmp.eq.s32.totalorder %s70_s8, 0 }
  0x14   : > { %p1229_p8 = por %p80_p5, %p51_p2  ;;  %s96_s10 = sadd.s32 4, %s1109_s20 }
  0x15   : > { %s1235_s11 = scalar_select %p41_p6, %s1097_s17, %s43_s26  }
  0x16   : > { %s1238_s28 = scalar_select %p71_p7, %s1089_s15, %s73_s5  }
  0x17   : > { %1378 = sst [smem:[#allocation8_spill]] %s1235_s11  ;;  %s97_s30 = sadd.s32 4, %s1397_s24 }
  0x18   : > { %s103_s23 = sadd.s32 1, %s1081_s13  ;;  %s99_s25 = ssub.s32 %s96_s10, %s97_s30 }
  0x19   : > { %p110_p9 = scmp.ne.s32.totalorder %s1081_s13, %s1077_s12  ;;  %s100_s27 = sor.u32 %s99_s25, %s36_s6 }
  0x1a   : > { %s1379_s3 = sadd.s32 4294967295, %s1117_s22   ;;  %p101_p11 = scmp.eq.s32.totalorder %s100_s27, 0 }
  0x1b   : > { %p144_p10 = scmp.eq.s32.totalorder %s1379_s3, 3  ;;  %p1248_p12 = por %p110_p9, %p51_p2 }
  0x1c   : > { %s1260_s26 = scalar_select %p101_p11, %s1081_s13, %s103_s23  }
  0x1d   : > { %p1255_p13 = por %p144_p10, %p50_p1  ;;  %p859_p0 = scmp.ge.s32.totalorder %s1117_s22, 4 }
  0x1f   : > { %166 = sbr.rel (%p859_p0) target bundleno = 60 (0x3c), region = 16 }
  0x24   : > { %169 = sbr.rel (!%p1215_p4) target bundleno = 44 (0x2c), region = 20  ;;  %s171_s3 = sand.u32 (%p1215_p4), 1, %s1097_s17  }
  0x25   : > { %s921_s25 = smul.u32 (%p1215_p4), 12, %s1113_s21  ;;  %s860_s5 = sshll.u32 (%p1215_p4), %s171_s3, 3 }
  0x26   : > { %s173_s23 = scalar_lea.vmem (%p1215_p4), [#allocation2], %s860_s5 }
  0x27   : > { %s178_s6 = sadd.s32 (%p1215_p4), %s1109_s20, %s921_s25 }
  0x28   : > { %s861_s8 = sshll.u32 (%p1215_p4), %s178_s6, 2 }
  0x29   : > { %s180_s27 = scalar_lea.vmem %s1367_s0, %s861_s8 }
  0x2a   : > { %v197_v0 = vld [vmem:[%s180_s27] sm:$0xf]  ;;  %v199_v1 = vld [vmem:[%s180_s27 + $0x18] sm:$0xf] }
  0x2b   : > { %198 = vst [vmem:[%s173_s23] sm:$0xf] %v197_v0  ;;  %200 = vst [vmem:[%s173_s23 + $0x4] sm:$0xf] %v199_v1 }
  0x2c PF: > { %228 = sbr.rel (!%p1229_p8) target bundleno = 52 (0x34), region = 61  ;;  %s230_s29 = sand.u32 (%p1229_p8), 1, %s1089_s15  }
  0x2d   : > { %s757_s3 = smul.u32 (%p1229_p8), 12, %s1113_s21  ;;  %s862_s25 = sshll.u32 (%p1229_p8), %s230_s29, 3 }
  0x2e   : > { %s232_s5 = scalar_lea.vmem (%p1229_p8), [#allocation3], %s862_s25 }
  0x2f   : > { %s758_s6 = sadd.s32 (%p1229_p8), %s1109_s20, %s757_s3 }
  0x30   : > { %s863_s24 = sshll.u32 (%p1229_p8), %s758_s6, 2 }
  0x31   : > { %s760_s8 = scalar_lea.vmem %s1368_s1, %s863_s24 }
  0x32   : > { %v864_v2 = vld [vmem:[%s760_s8 + $0x8] sm:$0xf]  ;;  %v865_v3 = vld [vmem:[%s760_s8 + $0x20] sm:$0xf] }
  0x33   : > { %255 = vst [vmem:[%s232_s5] sm:$0xf] %v864_v2  ;;  %257 = vst [vmem:[%s232_s5 + $0x4] sm:$0xf] %v865_v3 }
  0x34 PF: > { %285 = sbr.rel (!%p1248_p12) target bundleno = 60 (0x3c), region = 102  ;;  %s287_s9 = sand.u32 (%p1248_p12), 1, %s1081_s13  }
  0x35   : > { %s764_s30 = smul.u32 (%p1248_p12), 12, %s1113_s21  ;;  %s866_s27 = sshll.u32 (%p1248_p12), %s287_s9, 3 }
  0x36   : > { %s289_s25 = scalar_lea.vmem (%p1248_p12), [#allocation4], %s866_s27 }
  0x37   : > { %s765_s23 = sadd.s32 (%p1248_p12), %s1109_s20, %s764_s30 }
  0x38   : > { %s867_s29 = sshll.u32 (%p1248_p12), %s765_s23, 2 }
  0x39   : > { %s767_s24 = scalar_lea.vmem %s1369_s2, %s867_s29 }
  0x3a   : > { %v868_v4 = vld [vmem:[%s767_s24 + $0x10] sm:$0xf]  ;;  %v869_v5 = vld [vmem:[%s767_s24 + $0x28] sm:$0xf] }
  0x3b   : > { %312 = vst [vmem:[%s289_s25] sm:$0xf] %v868_v4  ;;  %314 = vst [vmem:[%s289_s25 + $0x4] sm:$0xf] %v869_v5 }
  0x3c PF: > { %p870_p1 = scmp.ge.s32.totalorder %s1117_s22, 1  ;;  %p341_p2 = scmp.lt.s32.totalorder %s1117_s22, 5 }
  0x3e   : > { %p342_p3 = pnand %p870_p1, %p341_p2 }
  0x3f   : > { %s355_s4 = sand.u32 (!%p342_p3), 1, %s1085_s14   ;;  %s348_s6 = sand.u32 (!%p342_p3), 1, %s1093_s16  }
  0x40   : > { %345 = sbr.rel (%p342_p3) target bundleno = 1435 (0x59b), region = 143  ;;  %s872_s10 = sshll.u32 (!%p342_p3), %s355_s4, 3 }
  0x41   : > { %s1294_s8 = sshll.u32 (!%p342_p3), %s348_s6, 3  ;;  %s357_s5 = scalar_lea.vmem (!%p342_p3), [#allocation3], %s872_s10 }
  0x42   : > { %s350_s14 = scalar_lea.vmem (!%p342_p3), [#allocation2], %s1294_s8  ;;  %s1121_s16 = smov (!%p342_p3), 64  }
  0x43   : > { %s362_s9 = sand.u32 (!%p342_p3), 1, %s1077_s12   ;;  %s391_s12 = scalar_lea.vmem (!%p342_p3), [#allocation5], %s1294_s8 }
  0x44   : > { %s873_s30 = sshll.u32 (!%p342_p3), %s362_s9, 3 }
  0x45   : > { %v1119_v6 = vmov 0.0   ;;  %vm1120_vm0 = vmmov 0   ;;  %vm416_vm1 = vcmask 523264   ;;  %v1013_v7 = vld [vmem:[%s357_s5] sm:$0xff]   ;;  %v398_v8 = vld [vmem:[%s350_s14] sm:$0xf] }
  0x46   : > { %897 = vmatprep.subr.bf16.mxu0 %v1119_v6  ;;  %899 = vmatprep.mubr.msk.bf16.mxu0 %vm1120_vm0, %v1119_v6  ;;  %v399_v9 = vld [vmem:[%s350_s14 + $0x4] sm:$0xf]  ;;  %v421_v10 = vsel %vm416_vm1, %v1013_v7, 0  ;;  %v400_v11 = vmul.bf16 1040203264, %v398_v8  ;;  %vm464_vm2 = vcmask 130048  }
  0x47   : > { %903 = vmatprep.subr.bf16.mxu1 %v1119_v6  ;;  %905 = vmatprep.mubr.msk.bf16.mxu1 %vm1120_vm0, %v1119_v6  ;;  %v401_v12 = vmul.bf16 1040203264, %v399_v9  ;;  %s364_s27 = scalar_lea.vmem [#allocation4], %s873_s30  ;;  %s885_s23 = sshll.u32 (%p1255_p13), %s1105_s19, 2 }
  0x48   : > { %898 = vmatpush3.bf16.xpose.msra.mxu0 %v421_v10  ;;  %v1014_v30 = vld [vmem:[%s364_s27] sm:$0xff]   ;;  %s687_s29 = sadd.s32 (%p1255_p13), %s1101_s18, %s885_s23  ;;  %s1382_s25 = sld [smem:[#allocation9_spill]] (%p1255_p13) }
  0x49   : > { %915 = vmatprep.subr.bf16.mxu0 %v1119_v6  ;;  %v875_v13 = vcombine.low %v400_v11, %v401_v12  ;;  %904 = vmatpush3.bf16.msra.mxu1 %v1014_v30  ;;  %s886_s3 = sshll.u32 (%p1255_p13), %s687_s29, 2 }
  0x4a   : > { %909 = vmatprep.subr.bf16.mxu1 %v1119_v6 }
  0x4e   : > { %s689_s4 = scalar_lea.vmem (%p1255_p13), %s1382_s25, %s886_s3 }
  0x4f   : > { %900 = vmatmul.mubr.msk.bf16.vlgmr.msra.gmra.mxu0 %vm416_vm1, %v875_v13 }
  0x50   : > { %917 = vmatprep.mubr.msk.bf16.mxu0 %vm1120_vm0, %v1119_v6 }
 0x10f   : > { %v457_v14 = vpop.f32.mrf.mxu0 }
 0x110   : > { %v465_v15 = vsel %vm464_vm2, %v457_v14, -inf }
 0x111   : > { %466 = vmax.xlane.f32.xlu0 %v465_v15  ;;  %v901_v16 = vpop.f32.mrf.mxu0 }
 0x113   : > { %v460_v17 = vpop.f32.mrf.mxu0 }
 0x114   : > { %v468_v18 = vsel %vm464_vm2, %v460_v17, -inf }
 0x115   : > { %469 = vmax.xlane.f32.xlu0 %v468_v18  ;;  %v902_v19 = vpop.f32.mrf.mxu0 }
 0x12b   : > { %541 = vrot.lane.b32.xlu0 %v1013_v7, %s1121_s16 }
 0x19a   : > { %v467_v20 = vpop.xlane.xlu0 %466 }
 0x19b   : > { %v471_v21 = vsub.f32 %v457_v14, %v467_v20 }
 0x19d   : > { %v473_v22 = vmul.f32 1.442695, %v471_v21 }
 0x19e   : > { %v470_v23 = vpop.xlane.xlu0 %469 }
 0x19f   : > { %1015 = vpow2.f32 %v473_v22  ;;  %v472_v24 = vsub.f32 %v460_v17, %v470_v23 }
 0x1a1   : > { %v475_v25 = vmul.f32 1.442695, %v472_v24 }
 0x1a2   : > { %v542_v35 = vpop.permute.xlu0 %541 }
 0x1a3   : > { %1017 = vpow2.f32 %v475_v25  ;;  %v547_v38 = vsel %vm416_vm1, %v542_v35, 0 }
 0x1ac   : > { %v1016_v26 = vpop.eup %1015 }
 0x1ad   : > { %v477_v27 = vsel %vm464_vm2, %v1016_v26, 0.0 }
 0x1ae   : > { %478 = vadd.xlane.f32.xlu1 %v477_v27 }
 0x1b0   : > { %v1018_v28 = vpop.eup %1017 }
 0x1b1   : > { %v480_v29 = vsel %vm464_vm2, %v1018_v28, 0.0 }
 0x1b2   : > { %481 = vadd.xlane.f32.xlu1 %v480_v29 }
 0x1c3   : > { %539 = vrot.lane.b32.xlu1 %v875_v13, %s1121_s16 }
 0x237   : > { %v479_v31 = vpop.xlane.xlu1 %478 }
 0x238   : > { %1019 = vrcp.f32 %v479_v31 }
 0x23b   : > { %v482_v32 = vpop.xlane.xlu1 %481 }
 0x23c   : > { %1021 = vrcp.f32 %v482_v32 }
 0x23f   : > { %v540_v40 = vpop.permute.xlu1 %539 }
 0x245   : > { %v1020_v33 = vpop.eup %1019 }
 0x246   : > { %v485_v36 = vmul.f32 %v1020_v33, %v1016_v26 }
 0x249   : > { %v1022_v34 = vpop.eup %1021 }
 0x24a   : > { %v486_v37 = vmul.f32 %v1022_v34, %v1018_v28 }
 0x24c   : > { %v487_v39 = vpack.c.bf16 %v486_v37, %v485_v36 }
 0x24e   : > { %906 = vmatmul.mubr.msk.bf16.vlgmr.msra.gmra.mxu1 %vm464_vm2, %v487_v39 }
 0x24f   : > { %910 = vmatpush3.bf16.xpose.msra.mxu1 %v547_v38  ;;  %911 = vmatprep.mubr.msk.bf16.mxu1 %vm1120_vm0, %v1119_v6 }
 0x256   : > { %912 = vmatmul.mubr.msk.bf16.vlgmr.msra.gmra.mxu1 %vm416_vm1, %v540_v40 }
 0x30e   : > { %v531_v41 = vpop.f32.mrf.mxu1 }
 0x310   : > { %v907_v42 = vpop.f32.mrf.mxu1 }
 0x312   : > { %v534_v43 = vpop.f32.mrf.mxu1 }
 0x313   : > { %v538_v44 = vpack.c.bf16 %v534_v43, %v531_v41 }
 0x314   : > { %v908_v45 = vpop.f32.mrf.mxu1 }
 0x316   : > { %v583_v46 = vpop.f32.mrf.mxu1 }
 0x317   : > { %v590_v47 = vsel %vm464_vm2, %v583_v46, -inf }
 0x318   : > { %591 = vmax.xlane.f32.xlu1 %v590_v47  ;;  %v913_v48 = vpop.f32.mrf.mxu1 }
 0x31a   : > { %v586_v49 = vpop.f32.mrf.mxu1 }
 0x31b   : > { %v593_v50 = vsel %vm464_vm2, %v586_v49, -inf }
 0x31c   : > { %594 = vmax.xlane.f32.xlu0 %v593_v50  ;;  %v914_v51 = vpop.f32.mrf.mxu1 }
 0x3a1   : > { %v592_v52 = vpop.xlane.xlu1 %591 }
 0x3a2   : > { %v596_v53 = vsub.f32 %v583_v46, %v592_v52 }
 0x3a4   : > { %v598_v54 = vmul.f32 1.442695, %v596_v53 }
 0x3a5   : > { %v595_v55 = vpop.xlane.xlu0 %594 }
 0x3a6   : > { %1023 = vpow2.f32 %v598_v54  ;;  %v597_v56 = vsub.f32 %v586_v49, %v595_v55 }
 0x3a8   : > { %v600_v57 = vmul.f32 1.442695, %v597_v56 }
 0x3aa   : > { %1025 = vpow2.f32 %v600_v57 }
 0x3b3   : > { %v1024_v58 = vpop.eup %1023 }
 0x3b4   : > { %v602_v59 = vsel %vm464_vm2, %v1024_v58, 0.0 }
 0x3b5   : > { %603 = vadd.xlane.f32.xlu0 %v602_v59 }
 0x3b7   : > { %v1026_v60 = vpop.eup %1025 }
 0x3b8   : > { %v605_v61 = vsel %vm464_vm2, %v1026_v60, 0.0 }
 0x3b9   : > { %606 = vadd.xlane.f32.xlu1 %v605_v61 }
 0x3cb   : > { %613 = vrot.lane.b32.xlu0 %v1014_v30, %s1121_s16 }
 0x43e   : > { %v604_v62 = vpop.xlane.xlu0 %603 }
 0x43f   : > { %1027 = vrcp.f32 %v604_v62 }
 0x442   : > { %v607_v63 = vpop.xlane.xlu1 %606  ;;  %v614_v0 = vpop.permute.xlu0 %613 }
 0x443   : > { %1029 = vrcp.f32 %v607_v63  ;;  %916 = vmatpush3.bf16.msra.mxu0 %v614_v0 }
 0x44c   : > { %v1028_v1 = vpop.eup %1027 }
 0x44d   : > { %v610_v3 = vmul.f32 %v1028_v1, %v1024_v58 }
 0x450   : > { %v1030_v2 = vpop.eup %1029 }
 0x451   : > { %v611_v4 = vmul.f32 %v1030_v2, %v1026_v60 }
 0x453   : > { %v612_v5 = vpack.c.bf16 %v611_v4, %v610_v3 }
 0x455   : > { %918 = vmatmul.mubr.msk.bf16.vlgmr.msra.gmra.mxu0 %vm464_vm2, %v612_v5 }
 0x515   : > { %v653_v6 = vpop.f32.mrf.mxu0 }
 0x517   : > { %v919_v7 = vpop.f32.mrf.mxu0 }
 0x519   : > { %v656_v8 = vpop.f32.mrf.mxu0 }
 0x51a   : > { %v660_v9 = vpack.c.bf16 %v656_v8, %v653_v6 }
 0x51b   : > { %v920_v10 = vpop.f32.mrf.mxu0 }
 0x51c   : > { %662 = vrot.lane.b32.xlu1 %v660_v9, %s1121_s16 }
 0x58e   : > { %v663_v11 = vpop.permute.xlu1 %662  ;;  %682 = sbr.rel (!%p1255_p13) target bundleno = 1435 (0x59b), region = 159 }
 0x58f   : > { %v666_v12 = vsel %vm416_vm1, %v538_v44, %v663_v11 }
 0x590   : > { %v882_v13 = vcombine.low %v666_v12, %v666_v12  ;;  %v883_v14 = vcombine.high %v666_v12, %v666_v12 }
 0x592   : > { %674 = vst [vmem:[%s391_s12] sm:$0xf] %v882_v13  ;;  %675 = vst [vmem:[%s391_s12 + $0x4] sm:$0xf] %v883_v14 }
 0x599   : > { %v706_v15 = vld [vmem:[%s391_s12] sm:$0xf]  ;;  %v708_v16 = vld [vmem:[%s391_s12 + $0x4] sm:$0xf] }
 0x59a   : > { %707 = vst [vmem:[%s689_s4] sm:$0xf] %v706_v15  ;;  %709 = vst [vmem:[%s689_s4 + $0x8] sm:$0xf] %v708_v16 }
 0x59b PF: > { %s13_s22 = sadd.s32 1, %s1117_s22   ;;  %s1383_s18 = sld [smem:[#allocation8_spill]] }
 0x59c   : > { %p10_p4 = scmp.ge.s32.totalorder %s13_s22, 6   ;;  %s1384_s7 = sld [smem:[#allocation6_spill]] }
 0x59d   : > { %s1385_s6 = sld [smem:[#allocation7_spill]]  ;;  %s1386_s12 = smov %s1081_s13 }
 0x59e   : > { %s1387_s13 = smov %s1260_s26  ;;  %s1388_s14 = smov %s1089_s15 }
 0x59f   : > { %s1389_s15 = smov %s1238_s28  ;;  %s1390_s16 = smov %s1097_s17 }
 0x5a0   : > { %s1393_s19 = smov %s1113_s21  ;;  %12 = sbr.rel (!%p10_p4) target bundleno = 8 (0x8), region = 247 }
 0x5a1   : > { %s1391_s17 = smov %s1383_s18  ;;  %s1392_s18 = smov %s1109_s20 }
 0x5a2   : > { %s1394_s20 = smov %s1384_s7 }
 0x5a3   : > { %s1395_s21 = smov %s1385_s6 }

// kernel: bert_embedding_forward.14
= control target key start
LH: loop header
LB: loop body
LE: loop exit
PB: predicated region body
PF: predicated region fallthrough
CT: control target
= control target key end

     0   :  { %v61_v36 = vlaneseq  ;;  %s795_s1 = inlined_call_operand.vmem [shape: bf16[256,256], index: 1, kind: input, shape index: {}]   ;;  %s796_s0 = inlined_call_operand.vmem [shape: bf16[32,256], index: 0, kind: input, shape index: {}]   ;;  %s797_s2 = inlined_call_operand.vmem [shape: f32[1,256], index: 2, kind: input, shape index: {}]   ;;  %s798_s3 = inlined_call_operand.vmem [shape: bf16[32,256], index: 3, kind: input, shape index: {}]   ;;  %s799_s4 = inlined_call_operand.vmem [shape: f32[1,256], index: 4, kind: input, shape index: {}]   ;;  %s800_s5 = inlined_call_operand.vmem [shape: f32[1,256], index: 5, kind: input, shape index: {}]   ;;  %s801_s6 = inlined_call_operand.vmem [shape: bf16[32,256], index: 6, kind: output, shape index: {}]  }
   0x1   :  { %v537_v0 = vld [vmem:[%s795_s1 + $0x74] ss:$8 sps:$4 sm:$0xff]   ;;  %v539_v1 = vld [vmem:[%s795_s1 + $0x70] ss:$8 sps:$4 sm:$0xff]   ;;  %v540_v2 = vld [vmem:[%s795_s1 + $0x64] ss:$8 sps:$4 sm:$0xff]  }
   0x2   :  { %251 = vmatprep.subr.bf16.mxu0 %v537_v0  ;;  %505 = vmatprep.subr.bf16.mxu1 %v537_v0  ;;  %v542_v3 = vld [vmem:[%s795_s1 + $0x60] ss:$8 sps:$4 sm:$0xff]   ;;  %v543_v4 = vld [vmem:[%s795_s1 + $0x54] ss:$8 sps:$4 sm:$0xff]   ;;  %v545_v5 = vld [vmem:[%s795_s1 + $0x50] ss:$8 sps:$4 sm:$0xff]  }
   0x3   :  { %252 = vmatpush1.bf16.msra.mxu0 %v539_v1  ;;  %521 = vmatpush1.bf16.msra.mxu1 %v539_v1  ;;  %v546_v6 = vld [vmem:[%s795_s1 + $0x44] ss:$8 sps:$4 sm:$0xff]   ;;  %v548_v7 = vld [vmem:[%s795_s1 + $0x40] ss:$8 sps:$4 sm:$0xff]   ;;  %v549_v8 = vld [vmem:[%s795_s1 + $0x34] ss:$8 sps:$4 sm:$0xff]  }
   0x4   :  { %253 = vmatprep.subr.bf16.mxu0 %v540_v2  ;;  %506 = vmatprep.subr.bf16.mxu1 %v540_v2  ;;  %v551_v9 = vld [vmem:[%s795_s1 + $0x30] ss:$8 sps:$4 sm:$0xff]   ;;  %v552_v10 = vld [vmem:[%s795_s1 + $0x24] ss:$8 sps:$4 sm:$0xff]   ;;  %v554_v11 = vld [vmem:[%s795_s1 + $0x20] ss:$8 sps:$4 sm:$0xff]  }
   0x5   :  { %v555_v12 = vld [vmem:[%s795_s1 + $0x14] ss:$8 sps:$4 sm:$0xff]   ;;  %v587_v13 = vld [vmem:[%s796_s0 + $0x4] ss:$8 sps:$4 sm:$0xff]   ;;  %v557_v14 = vld [vmem:[%s795_s1 + $0x10] ss:$8 sps:$4 sm:$0xff]  }
   0x6   :  { %v590_v15 = vld [vmem:[%s796_s0 + $0x14] ss:$8 sps:$4 sm:$0xff]   ;;  %v558_v16 = vld [vmem:[%s795_s1 + $0x4] ss:$8 sps:$4 sm:$0xff]   ;;  %283 = vmatprep.mubr.bf16.mxu0 %v587_v13  ;;  %v560_v17 = vld [vmem:[%s795_s1] ss:$8 sps:$4 sm:$0xff]  }
   0x7   :  { %254 = vmatpush1.bf16.msra.mxu0 %v542_v3  ;;  %522 = vmatpush1.bf16.msra.mxu1 %v542_v3  ;;  %v561_v18 = vld [vmem:[%s795_s1 + $0xf4] ss:$8 sps:$4 sm:$0xff]   ;;  %v563_v19 = vld [vmem:[%s795_s1 + $0xf0] ss:$8 sps:$4 sm:$0xff]   ;;  %v564_v20 = vld [vmem:[%s795_s1 + $0xe4] ss:$8 sps:$4 sm:$0xff]  }
   0x8   :  { %255 = vmatprep.subr.bf16.mxu0 %v543_v4  ;;  %507 = vmatprep.subr.bf16.mxu1 %v543_v4  ;;  %v566_v21 = vld [vmem:[%s795_s1 + $0xe0] ss:$8 sps:$4 sm:$0xff]   ;;  %v567_v22 = vld [vmem:[%s795_s1 + $0xd4] ss:$8 sps:$4 sm:$0xff]   ;;  %v569_v23 = vld [vmem:[%s795_s1 + $0xd0] ss:$8 sps:$4 sm:$0xff]  }
   0x9   :  { %293 = vmatprep.mubr.bf16.mxu1 %v590_v15  ;;  %v570_v24 = vld [vmem:[%s795_s1 + $0xc4] ss:$8 sps:$4 sm:$0xff]   ;;  %v572_v25 = vld [vmem:[%s795_s1 + $0xc0] ss:$8 sps:$4 sm:$0xff]   ;;  %v573_v26 = vld [vmem:[%s795_s1 + $0xb4] ss:$8 sps:$4 sm:$0xff]  }
   0xa   :  { %v575_v27 = vld [vmem:[%s795_s1 + $0xb0] ss:$8 sps:$4 sm:$0xff]   ;;  %v576_v28 = vld [vmem:[%s795_s1 + $0xa4] ss:$8 sps:$4 sm:$0xff]   ;;  %v578_v29 = vld [vmem:[%s795_s1 + $0xa0] ss:$8 sps:$4 sm:$0xff]  }
   0xb   :  { %256 = vmatpush1.bf16.msra.mxu0 %v545_v5  ;;  %523 = vmatpush1.bf16.msra.mxu1 %v545_v5  ;;  %v579_v30 = vld [vmem:[%s795_s1 + $0x94] ss:$8 sps:$4 sm:$0xff]   ;;  %v581_v31 = vld [vmem:[%s795_s1 + $0x90] ss:$8 sps:$4 sm:$0xff]   ;;  %v582_v32 = vld [vmem:[%s795_s1 + $0x84] ss:$8 sps:$4 sm:$0xff]  }
   0xc   :  { %257 = vmatprep.subr.bf16.mxu0 %v546_v6  ;;  %508 = vmatprep.subr.bf16.mxu1 %v546_v6  ;;  %v584_v33 = vld [vmem:[%s795_s1 + $0x80] ss:$8 sps:$4 sm:$0xff]   ;;  %v588_v35 = vld [vmem:[%s796_s0 + $0x10] ss:$8 sps:$4 sm:$0xff]   ;;  %v62_v37 = vshrl.u32 %v61_v36, 7 }
   0xd   :  { %v585_v34 = vld [vmem:[%s796_s0] ss:$8 sps:$4 sm:$0xff]   ;;  %v306_v41 = vld [vmem:[%s798_s3 + $0x10] sm:$0xff]  ;;  %v307_v50 = vld [vmem:[%s798_s3 + $0x18] sm:$0xff] }
   0xe   :  { %v742_v38 = vsub.s32 0, %v62_v37  ;;  %v59_v39 = vld [vmem:[%s797_s2] sm:$0x3]  ;;  %v747_v40 = vsub.s32 1, %v62_v37  ;;  %v305_v47 = vld [vmem:[%s798_s3 + $0x8] sm:$0xff]  ;;  %v312_v48 = vunpack.c.l.bf16 %v306_v41  ;;  %v313_v51 = vunpack.c.h.bf16 %v306_v41 }
   0xf   :  { %258 = vmatpush1.bf16.msra.mxu0 %v548_v7  ;;  %524 = vmatpush1.bf16.msra.mxu1 %v548_v7  ;;  %v304_v44 = vld [vmem:[%s798_s3] sm:$0xff]  ;;  %v310_v59 = vunpack.c.l.bf16 %v305_v47  ;;  %v314_v62 = vunpack.c.l.bf16 %v307_v50  ;;  %v311_v63 = vunpack.c.h.bf16 %v305_v47  ;;  %v315_v0 = vunpack.c.h.bf16 %v307_v50 }
  0x10   :  { %259 = vmatprep.subr.bf16.mxu0 %v549_v8  ;;  %509 = vmatprep.subr.bf16.mxu1 %v549_v8  ;;  %v64_v42 = vrot.slane %v59_v39, %v742_v38  ;;  %v68_v43 = vrot.slane %v59_v39, %v747_v40  ;;  %v309_v52 = vunpack.c.h.bf16 %v304_v44  ;;  %v308_v56 = vunpack.c.l.bf16 %v304_v44 }
  0x13   :  { %260 = vmatpush1.bf16.msra.mxu0 %v551_v9  ;;  %525 = vmatpush1.bf16.msra.mxu1 %v551_v9 }
  0x14   :  { %261 = vmatprep.subr.bf16.mxu0 %v552_v10  ;;  %510 = vmatprep.subr.bf16.mxu1 %v552_v10 }
  0x17   :  { %262 = vmatpush1.bf16.msra.mxu0 %v554_v11  ;;  %526 = vmatpush1.bf16.msra.mxu1 %v554_v11 }
  0x18   :  { %263 = vmatprep.subr.bf16.mxu0 %v555_v12  ;;  %511 = vmatprep.subr.bf16.mxu1 %v555_v12 }
  0x1b   :  { %264 = vmatpush1.bf16.msra.mxu0 %v557_v14  ;;  %527 = vmatpush1.bf16.msra.mxu1 %v557_v14 }
  0x1c   :  { %265 = vmatprep.subr.bf16.mxu0 %v558_v16  ;;  %512 = vmatprep.subr.bf16.mxu1 %v558_v16 }
  0x1f   :  { %266 = vmatpush1.bf16.msra.mxu0 %v560_v17  ;;  %528 = vmatpush1.bf16.msra.mxu1 %v560_v17 }
  0x20   :  { %267 = vmatprep.subr.bf16.mxu0 %v561_v18  ;;  %513 = vmatprep.subr.bf16.mxu1 %v561_v18 }
  0x23   :  { %268 = vmatpush2.bf16.msra.mxu0 %v563_v19  ;;  %529 = vmatpush2.bf16.msra.mxu1 %v563_v19 }
  0x24   :  { %269 = vmatprep.subr.bf16.mxu0 %v564_v20  ;;  %514 = vmatprep.subr.bf16.mxu1 %v564_v20 }
  0x27   :  { %270 = vmatpush2.bf16.msra.mxu0 %v566_v21  ;;  %530 = vmatpush2.bf16.msra.mxu1 %v566_v21 }
  0x28   :  { %271 = vmatprep.subr.bf16.mxu0 %v567_v22  ;;  %515 = vmatprep.subr.bf16.mxu1 %v567_v22 }
  0x2b   :  { %272 = vmatpush2.bf16.msra.mxu0 %v569_v23  ;;  %531 = vmatpush2.bf16.msra.mxu1 %v569_v23 }
  0x2c   :  { %273 = vmatprep.subr.bf16.mxu0 %v570_v24  ;;  %516 = vmatprep.subr.bf16.mxu1 %v570_v24 }
  0x2f   :  { %274 = vmatpush2.bf16.msra.mxu0 %v572_v25  ;;  %532 = vmatpush2.bf16.msra.mxu1 %v572_v25 }
  0x30   :  { %275 = vmatprep.subr.bf16.mxu0 %v573_v26  ;;  %517 = vmatprep.subr.bf16.mxu1 %v573_v26 }
  0x33   :  { %276 = vmatpush2.bf16.msra.mxu0 %v575_v27  ;;  %533 = vmatpush2.bf16.msra.mxu1 %v575_v27 }
  0x34   :  { %277 = vmatprep.subr.bf16.mxu0 %v576_v28  ;;  %518 = vmatprep.subr.bf16.mxu1 %v576_v28 }
  0x37   :  { %278 = vmatpush2.bf16.msra.mxu0 %v578_v29  ;;  %534 = vmatpush2.bf16.msra.mxu1 %v578_v29 }
  0x38   :  { %279 = vmatprep.subr.bf16.mxu0 %v579_v30  ;;  %519 = vmatprep.subr.bf16.mxu1 %v579_v30 }
  0x3b   :  { %280 = vmatpush2.bf16.msra.mxu0 %v581_v31  ;;  %535 = vmatpush2.bf16.msra.mxu1 %v581_v31 }
  0x3c   :  { %281 = vmatprep.subr.bf16.mxu0 %v582_v32  ;;  %520 = vmatprep.subr.bf16.mxu1 %v582_v32 }
  0x3f   :  { %282 = vmatpush2.bf16.msra.mxu0 %v584_v33  ;;  %536 = vmatpush2.bf16.msra.mxu1 %v584_v33 }
  0x42   :  { %284 = vmatmul.mubr.bf16.vlgmr.msra.gmra.mxu0 %v585_v34  ;;  %294 = vmatmul.mubr.bf16.vlgmr.msra.gmra.mxu1 %v588_v35 }
 0x102   :  { %v285_v45 = vpop.f32.mrf.mxu0  ;;  %v295_v46 = vpop.f32.mrf.mxu1 }
 0x103   :  { %v296_v49 = vadd.f32 %v295_v46, %v64_v42  ;;  %v286_v53 = vadd.f32 %v285_v45, %v64_v42 }
 0x104   :  { %v287_v54 = vpop.f32.mrf.mxu0  ;;  %v297_v55 = vpop.f32.mrf.mxu1 }
 0x105   :  { %v288_v57 = vadd.f32 %v287_v54, %v68_v43  ;;  %v298_v58 = vadd.f32 %v297_v55, %v68_v43  ;;  %v320_v1 = vadd.f32 %v312_v48, %v296_v49  ;;  %v316_v8 = vadd.f32 %v308_v56, %v286_v53 }
 0x106   :  { %v289_v60 = vpop.f32.mrf.mxu0  ;;  %v299_v61 = vpop.f32.mrf.mxu1 }
 0x107   :  { %v290_v2 = vadd.f32 %v289_v60, %v64_v42  ;;  %v300_v3 = vadd.f32 %v299_v61, %v64_v42  ;;  %v321_v4 = vadd.f32 %v313_v51, %v298_v58  ;;  %v317_v5 = vadd.f32 %v309_v52, %v288_v57  ;;  %v389_v61 = vld [vmem:[%s799_s4] sm:$0x3] }
 0x108   :  { %v291_v6 = vpop.f32.mrf.mxu0  ;;  %v301_v7 = vpop.f32.mrf.mxu1 }
 0x109   :  { %v292_v9 = vadd.f32 %v291_v6, %v68_v43  ;;  %v302_v10 = vadd.f32 %v301_v7, %v68_v43  ;;  %v330_v11 = vadd.f32 %v321_v4, %v320_v1  ;;  %v324_v12 = vadd.f32 %v317_v5, %v316_v8 }
 0x10a   :  { %v318_v13 = vadd.f32 %v310_v59, %v290_v2  ;;  %v322_v14 = vadd.f32 %v314_v62, %v300_v3  ;;  %v409_v62 = vld [vmem:[%s800_s5] sm:$0x3] }
 0x10b   :  { %v319_v15 = vadd.f32 %v311_v63, %v292_v9  ;;  %v323_v16 = vadd.f32 %v315_v0, %v302_v10  ;;  %331 = vadd.xlane.f32.xlu1 %v330_v11  ;;  %325 = vadd.xlane.f32.xlu0 %v324_v12  ;;  %v394_v63 = vrot.slane %v389_v61, %v742_v38 }
 0x10c   :  { %v398_v0 = vrot.slane %v389_v61, %v747_v40  ;;  %v414_v2 = vrot.slane %v409_v62, %v742_v38  ;;  %v418_v3 = vrot.slane %v409_v62, %v747_v40 }
 0x10d   :  { %v333_v17 = vadd.f32 %v323_v16, %v322_v14  ;;  %v327_v18 = vadd.f32 %v319_v15, %v318_v13 }
 0x10f   :  { %334 = vadd.xlane.f32.xlu1 %v333_v17  ;;  %328 = vadd.xlane.f32.xlu0 %v327_v18 }
 0x194   :  { %v332_v19 = vpop.xlane.xlu1 %331  ;;  %v326_v20 = vpop.xlane.xlu0 %325 }
 0x195   :  { %v339_v21 = vmul.f32 0.00390625, %v332_v19  ;;  %v337_v22 = vmul.f32 0.00390625, %v326_v20 }
 0x197   :  { %v341_v23 = vsub.f32 %v316_v8, %v337_v22  ;;  %v342_v24 = vsub.f32 %v317_v5, %v337_v22  ;;  %v345_v25 = vsub.f32 %v320_v1, %v339_v21  ;;  %v346_v26 = vsub.f32 %v321_v4, %v339_v21 }
 0x198   :  { %v335_v27 = vpop.xlane.xlu1 %334  ;;  %v329_v28 = vpop.xlane.xlu0 %328 }
 0x199   :  { %v340_v29 = vmul.f32 0.00390625, %v335_v27  ;;  %v338_v30 = vmul.f32 0.00390625, %v329_v28  ;;  %v349_v31 = vmul.f32 %v341_v23, %v341_v23  ;;  %v350_v32 = vmul.f32 %v342_v24, %v342_v24 }
 0x19a   :  { %v353_v39 = vmul.f32 %v345_v25, %v345_v25  ;;  %v354_v41 = vmul.f32 %v346_v26, %v346_v26 }
 0x19b   :  { %v763_v33 = vsub.f32 %v322_v14, %v340_v29  ;;  %v765_v34 = vsub.f32 %v323_v16, %v340_v29  ;;  %v343_v35 = vsub.f32 %v318_v13, %v338_v30  ;;  %v344_v36 = vsub.f32 %v319_v15, %v338_v30 }
 0x19c   :  { %v357_v37 = vadd.f32 %v350_v32, %v349_v31  ;;  %v363_v47 = vadd.f32 %v354_v41, %v353_v39 }
 0x19d   :  { %v351_v42 = vmul.f32 %v343_v35, %v343_v35  ;;  %v352_v43 = vmul.f32 %v344_v36, %v344_v36  ;;  %v355_v45 = vmul.f32 %v763_v33, %v763_v33  ;;  %v356_v46 = vmul.f32 %v765_v34, %v765_v34 }
 0x19e   :  { %358 = vadd.xlane.f32.xlu0 %v357_v37 }
 0x19f   :  { %v360_v44 = vadd.f32 %v352_v43, %v351_v42  ;;  %v366_v48 = vadd.f32 %v356_v46, %v355_v45 }
 0x1a1   :  { %361 = vadd.xlane.f32.xlu1 %v360_v44 }
 0x1a2   :  { %364 = vadd.xlane.f32.xlu0 %v363_v47 }
 0x1a5   :  { %367 = vadd.xlane.f32.xlu1 %v366_v48 }
 0x227   :  { %v359_v49 = vpop.xlane.xlu0 %358 }
 0x228   :  { %v369_v50 = vmul.f32 0.00390625, %v359_v49 }
 0x22a   :  { %v373_v51 = vadd.f32 1e-12, %v369_v50  ;;  %v362_v52 = vpop.xlane.xlu1 %361 }
 0x22b   :  { %v370_v53 = vmul.f32 0.00390625, %v362_v52  ;;  %v365_v54 = vpop.xlane.xlu0 %364 }
 0x22c   :  { %591 = vrsqrt.f32 %v373_v51  ;;  %v371_v55 = vmul.f32 0.00390625, %v365_v54 }
 0x22d   :  { %v374_v56 = vadd.f32 1e-12, %v370_v53 }
 0x22e   :  { %v375_v57 = vadd.f32 1e-12, %v371_v55  ;;  %v368_v58 = vpop.xlane.xlu1 %367 }
 0x22f   :  { %593 = vrsqrt.f32 %v374_v56  ;;  %v372_v59 = vmul.f32 0.00390625, %v368_v58 }
 0x230   :  { %595 = vrsqrt.f32 %v375_v57 }
 0x231   :  { %v376_v60 = vadd.f32 1e-12, %v372_v59 }
 0x233   :  { %597 = vrsqrt.f32 %v376_v60 }
 0x239   :  { %v592_v1 = vpop.eup %591 }
 0x23a   :  { %v381_v4 = vmul.f32 %v592_v1, %v341_v23  ;;  %v382_v5 = vmul.f32 %v592_v1, %v342_v24 }
 0x23c   :  { %v594_v6 = vpop.eup %593  ;;  %v401_v7 = vmul.f32 %v394_v63, %v381_v4  ;;  %v402_v8 = vmul.f32 %v398_v0, %v382_v5 }
 0x23d   :  { %v596_v9 = vpop.eup %595  ;;  %v383_v10 = vmul.f32 %v594_v6, %v343_v35  ;;  %v384_v11 = vmul.f32 %v594_v6, %v344_v36 }
 0x23e   :  { %v421_v12 = vadd.f32 %v414_v2, %v401_v7  ;;  %v422_v13 = vadd.f32 %v418_v3, %v402_v8  ;;  %v385_v14 = vmul.f32 %v596_v9, %v345_v25  ;;  %v386_v15 = vmul.f32 %v596_v9, %v346_v26 }
 0x23f   :  { %v403_v16 = vmul.f32 %v394_v63, %v383_v10  ;;  %v404_v17 = vmul.f32 %v398_v0, %v384_v11 }
 0x240   :  { %v598_v18 = vpop.eup %597  ;;  %v501_v19 = vpack.c.bf16 %v422_v13, %v421_v12  ;;  %v405_v20 = vmul.f32 %v394_v63, %v385_v14  ;;  %v406_v38 = vmul.f32 %v398_v0, %v386_v15 }
 0x241   :  { %v423_v21 = vadd.f32 %v414_v2, %v403_v16  ;;  %v424_v40 = vadd.f32 %v418_v3, %v404_v17  ;;  %v387_v22 = vmul.f32 %v598_v18, %v763_v33  ;;  %v388_v23 = vmul.f32 %v598_v18, %v765_v34 }
 0x242   :  { %453 = vst [vmem:[%s801_s6] sm:$0xff] %v501_v19  ;;  %v425_v24 = vadd.f32 %v414_v2, %v405_v20  ;;  %v426_v27 = vadd.f32 %v418_v3, %v406_v38 }
 0x243   :  { %v502_v25 = vpack.c.bf16 %v424_v40, %v423_v21  ;;  %v407_v26 = vmul.f32 %v394_v63, %v387_v22  ;;  %v408_v28 = vmul.f32 %v398_v0, %v388_v23 }
 0x244   :  { %v503_v29 = vpack.c.bf16 %v426_v27, %v425_v24 }
 0x245   :  { %454 = vst [vmem:[%s801_s6 + $0x8] sm:$0xff] %v502_v25  ;;  %v427_v30 = vadd.f32 %v414_v2, %v407_v26  ;;  %v428_v31 = vadd.f32 %v418_v3, %v408_v28 }
 0x246   :  { %455 = vst [vmem:[%s801_s6 + $0x10] sm:$0xff] %v503_v29 }
 0x247   :  { %v504_v32 = vpack.c.bf16 %v428_v31, %v427_v30 }
 0x249   :  { %456 = vst [vmem:[%s801_s6 + $0x18] sm:$0xff] %v504_v32 }

// kernel: bert_embedding_forward.12
= control target key start
LH: loop header
LB: loop body
LE: loop exit
PB: predicated region body
PF: predicated region fallthrough
CT: control target
= control target key end

     0   :  { %8 = vsyncpa [#allocation3], 0  ;;  %s1456_s0 = inlined_call_operand.vmem [shape: bf16[32,256], index: 0, kind: input, shape index: {}]   ;;  %s1457_s1 = inlined_call_operand.hbm [shape: bf16[256,768], index: 1, kind: input, shape index: {}]   ;;  %s1458_s2 = inlined_call_operand.vmem [shape: f32[1,768], index: 2, kind: input, shape index: {}]   ;;  %s1459_s3 = inlined_call_operand.vmem [shape: bf16[32,768], index: 3, kind: output, shape index: {}]  }
   0x1   :  { %10 = vsyncpa [#allocation3 + $0x1], 0  ;;  %s1264_s12 = smov 0   ;;  %s1266_s13 = smov 0  }
   0x2   :  { %s1268_s14 = smov 0   ;;  %s1270_s15 = smov 0  }
   0x3   :  { %s1272_s16 = smov 0   ;;  %s1274_s17 = smov 0  }
   0x4 LB: > { %s913_s18 = sadd.s32 4294967295, %s1238_s17   ;;  %s25_s19 = sadd.s32 1, %s1234_s16  ;;  %s1238_s17 = sphi %s1274_s17, %s16_s17   ;;  %s1234_s16 = sphi %s1272_s16, %s1468_s16   ;;  %s1230_s15 = sphi %s1270_s15, %s1467_s15   ;;  %s1226_s14 = sphi %s1268_s14, %s1466_s14   ;;  %s1222_s13 = sphi %s1266_s13, %s1465_s13   ;;  %s1218_s12 = sphi %s1264_s12, %s1464_s12  }
   0x5   : > { %p26_p0 = scmp.ge.s32.totalorder %s25_s19, 2  ;;  %s61_s20 = sadd.s32 1, %s1226_s14 }
   0x6   : > { %p68_p1 = scmp.ne.s32.totalorder %s1226_s14, %s1222_s13  ;;  %p69_p2 = scmp.eq.s32.totalorder %s1238_s17, 0 }
   0x7   : > { %s1470_s19 = smov (%p26_p0, %s25_s19), 0  ;;  %p74_p4 = scmp.ne.s32.totalorder %s1222_s13, %s1218_s12 }
   0x8   : > { %p1300_p3 = por %p69_p2, %p68_p1  ;;  %s58_s22 = ssub.s32 %s1234_s16, %s1470_s19 }
   0x9   : > { %p75_p5 = scmp.eq.s32.totalorder %s913_s18, 0  ;;  %p59_p6 = scmp.eq.s32.totalorder %s58_s22, 0 }
   0xa   : > { %p126_p7 = scmp.eq.s32.totalorder %s913_s18, 1  ;;  %p1038_p10 = scmp.lt.s32.totalorder %s1238_s17, 2 }
   0xb   : > { %p1307_p8 = por %p75_p5, %p74_p4  ;;  %s162_s26 = sand.u32 1, %s1226_s14  }
   0xc   : > { %s1312_s24 = scalar_select %p59_p6, %s1226_s14, %s61_s20  }
   0xd   : > { %p1314_p9 = por %p126_p7, %p68_p1  ;;  %s991_s27 = smul.u32 192, %s1234_s16 }
   0xe   : > { %s1029_s28 = smul.u32 384, %s162_s26  ;;  %p1326_p11 = pnand %p1038_p10, %p1300_p3 }
   0xf   : > { %s172_s4 = scalar_lea.hbm %s1457_s1, %s991_s27  ;;  %p919_p12 = scmp.ge.s32.totalorder %s1238_s17, 1 }
  0x10   : > { %s166_s6 = scalar_lea.vmem [#allocation2], %s1029_s28  ;;  %s163_s8 = scalar_lea.sflag [#allocation3], %s162_s26 }
  0x11   : > { %s173_s7 = sshll.u32 %s166_s6, 4  ;;  %p1162_p13 = pneg %p1326_p11  ;;  %s174_s7 = int_to_ptr.vmem [resolvable:$true] %s173_s7 }
  0x12   : > { %s1173_s9 = scalar_lea.vmem %s174_s7, 6144  ;;  %s1240_s10 = smov [#allocation2]  }
  0x13   : > { %p1174_p0 = scmp.ne.s32.totalorder %s174_s7, %s1173_s9  ;;  %s1178_s11 = sshll.u32 %s1240_s10, 4  ;;  %s1179_s11 = int_to_ptr.vmem [resolvable:$false] %s1178_s11 }
  0x14   : > { %s1180_s12 = scalar_lea.vmem %s1179_s11, 12288  ;;  %p1181_p3 = scmp.lt.s32.totalorder %s174_s7, %s1179_s11 }
  0x15   : > { %p1176_p1 = pnand %p1174_p0, %p1162_p13  ;;  %p1182_p4 = scmp.lt.s32.totalorder %s1180_s12, %s1173_s9 }
  0x17   : > { %p1177_p2 = pneg %p1176_p1  ;;  %p1183_p5 = por %p1182_p4, %p1181_p3 }
  0x19   : > { %p1184_p6 = pnand %p1183_p5, %p1177_p2 }
  0x1b   : > { %1187 = shalt.err (!%p1184_p6)
}
  0x1c   : > { %s1241_s18 = smov 384   ;;  %s1242_s20 = smov 192  }
  0x1d   : > { %s1243_s21 = smov 12   ;;  %p189_p7 = scmp.lt.s32.totalorder %s1238_s17, 3 }
  0x1e   : > { %1037 = dma.hbm_to_vmem [thread:$0]  (!%p1326_p11), %s172_s4, 6144, %s174_s7, %s163_s8, %s1241_s18, %s1242_s20, %s1243_s21  }
  0x1f   : > { %p190_p10 = pnand %p919_p12, %p189_p7 }
  0x20   : > { %s1339_s22 = sand.u32 (!%p190_p10), 1, %s1222_s13  }
  0x21   : > { %193 = sbr.rel (%p190_p10) target bundleno = 324 (0x144), region = 32  ;;  %s196_s27 = scalar_lea.sflag (!%p190_p10), [#allocation3], %s1339_s22 }
  0x22   : > { %s1030_s26 = smul.u32 (!%p190_p10), 384, %s1339_s22 }
  0x24   : > { %s1343_s28 = scalar_lea.vmem (!%p190_p10), [#allocation2], %s1030_s26 }
  0x26   : > { %1213 = dma.done.wait (%p1307_p8), %s196_s27, 6144  }
  0x27   : > { %1215 = vsyncadd (%p1307_p8), %s196_s27, 4294961152  ;;  %v1090_v0 = vld [vmem:[%s1343_s28 + $0xac] ss:$12 sps:$4 sm:$0xff]   ;;  %v1092_v1 = vld [vmem:[%s1343_s28 + $0xa8] ss:$12 sps:$4 sm:$0xff]   ;;  %s239_s9 = smul.u32 3, %s1230_s15  ;;  %v317_v52 = vlaneseq }
  0x28   : > { %608 = vmatprep.subr.bf16.mxu0 %v1090_v0  ;;  %v1093_v2 = vld [vmem:[%s1343_s28 + $0x94] ss:$12 sps:$4 sm:$0xff]   ;;  %v1095_v3 = vld [vmem:[%s1343_s28 + $0x90] ss:$12 sps:$4 sm:$0xff]   ;;  %v1098_v5 = vld [vmem:[%s1343_s28 + $0x78] ss:$12 sps:$4 sm:$0xff]  }
  0x29   : > { %609 = vmatpush1.bf16.msra.mxu0 %v1092_v1  ;;  %v1096_v4 = vld [vmem:[%s1343_s28 + $0x7c] ss:$12 sps:$4 sm:$0xff]   ;;  %v1099_v6 = vld [vmem:[%s1343_s28 + $0x64] ss:$12 sps:$4 sm:$0xff]   ;;  %v1101_v8 = vld [vmem:[%s1343_s28 + $0x60] ss:$12 sps:$4 sm:$0xff]  }
  0x2a   : > { %610 = vmatprep.subr.bf16.mxu0 %v1093_v2  ;;  %v1110_v7 = vld [vmem:[%s1343_s28 + $0x170] ss:$12 sps:$4 sm:$0xff]   ;;  %v1102_v10 = vld [vmem:[%s1343_s28 + $0x4c] ss:$12 sps:$4 sm:$0xff]   ;;  %v1104_v13 = vld [vmem:[%s1343_s28 + $0x48] ss:$12 sps:$4 sm:$0xff]  }
  0x2b   : > { %1001 = vmatprep.subr.bf16.mxu1 %v1110_v7  ;;  %v1112_v9 = vld [vmem:[%s1343_s28 + $0xb0] ss:$12 sps:$4 sm:$0xff]   ;;  %v1115_v11 = vld [vmem:[%s1343_s28 + $0x158] ss:$12 sps:$4 sm:$0xff]   ;;  %v1105_v14 = vld [vmem:[%s1343_s28 + $0x34] ss:$12 sps:$4 sm:$0xff]  }
  0x2c   : > { %1002 = vmatpush3.bf16.msra.mxu1 %v1112_v9  ;;  %v1117_v12 = vld [vmem:[%s1343_s28 + $0x98] ss:$12 sps:$4 sm:$0xff]   ;;  %v1120_v15 = vld [vmem:[%s1343_s28 + $0x140] ss:$12 sps:$4 sm:$0xff]   ;;  %v1107_v17 = vld [vmem:[%s1343_s28 + $0x30] ss:$12 sps:$4 sm:$0xff]  }
  0x2d   : > { %611 = vmatpush1.bf16.msra.mxu0 %v1095_v3  ;;  %1003 = vmatprep.subr.bf16.mxu1 %v1115_v11  ;;  %v1122_v16 = vld [vmem:[%s1343_s28 + $0x80] ss:$12 sps:$4 sm:$0xff]   ;;  %v1125_v18 = vld [vmem:[%s1343_s28 + $0x128] ss:$12 sps:$4 sm:$0xff]   ;;  %v1111_v21 = vld [vmem:[%s1343_s28 + $0x18] ss:$12 sps:$4 sm:$0xff]  }
  0x2e   : > { %612 = vmatprep.subr.bf16.mxu0 %v1096_v4  ;;  %v1108_v19 = vld [vmem:[%s1343_s28 + $0x1c] ss:$12 sps:$4 sm:$0xff]   ;;  %v1113_v23 = vld [vmem:[%s1343_s28 + $0x4] ss:$12 sps:$4 sm:$0xff]   ;;  %v1116_v26 = vld [vmem:[%s1343_s28] ss:$12 sps:$4 sm:$0xff]  }
  0x2f   : > { %v1127_v20 = vld [vmem:[%s1343_s28 + $0x68] ss:$12 sps:$4 sm:$0xff]   ;;  %v1130_v22 = vld [vmem:[%s1343_s28 + $0x110] ss:$12 sps:$4 sm:$0xff]   ;;  %v1135_v25 = vld [vmem:[%s1343_s28 + $0xf8] ss:$12 sps:$4 sm:$0xff]  }
  0x30   : > { %1004 = vmatpush3.bf16.msra.mxu1 %v1117_v12  ;;  %v1132_v24 = vld [vmem:[%s1343_s28 + $0x50] ss:$12 sps:$4 sm:$0xff]   ;;  %v1118_v27 = vld [vmem:[%s1343_s28 + $0x16c] ss:$12 sps:$4 sm:$0xff]   ;;  %v1121_v30 = vld [vmem:[%s1343_s28 + $0x168] ss:$12 sps:$4 sm:$0xff]  }
  0x31   : > { %613 = vmatpush1.bf16.msra.mxu0 %v1098_v5  ;;  %1005 = vmatprep.subr.bf16.mxu1 %v1120_v15  ;;  %v1137_v28 = vld [vmem:[%s1343_s28 + $0x38] ss:$12 sps:$4 sm:$0xff]   ;;  %v1140_v29 = vld [vmem:[%s1343_s28 + $0xe0] ss:$12 sps:$4 sm:$0xff]   ;;  %v1145_v33 = vld [vmem:[%s1343_s28 + $0xc8] ss:$12 sps:$4 sm:$0xff]  }
  0x32   : > { %614 = vmatprep.subr.bf16.mxu0 %v1099_v6  ;;  %v1123_v31 = vld [vmem:[%s1343_s28 + $0x154] ss:$12 sps:$4 sm:$0xff]   ;;  %v1126_v34 = vld [vmem:[%s1343_s28 + $0x150] ss:$12 sps:$4 sm:$0xff]   ;;  %v1150_v35 = vld [vmem:[%s1456_s0 + $0x4] ss:$8 sps:$4 sm:$0xff]  }
  0x33   : > { %v1142_v32 = vld [vmem:[%s1343_s28 + $0x20] ss:$12 sps:$4 sm:$0xff]   ;;  %v1128_v36 = vld [vmem:[%s1343_s28 + $0x13c] ss:$12 sps:$4 sm:$0xff]   ;;  %693 = vmatprep.mubr.bf16.mxu1 %v1150_v35  ;;  %640 = vmatprep.mubr.bf16.mxu0 %v1150_v35  ;;  %v1131_v38 = vld [vmem:[%s1343_s28 + $0x138] ss:$12 sps:$4 sm:$0xff]  }
  0x34   : > { %1006 = vmatpush3.bf16.msra.mxu1 %v1122_v16  ;;  %v1147_v37 = vld [vmem:[%s1343_s28 + $0x8] ss:$12 sps:$4 sm:$0xff]   ;;  %v1133_v39 = vld [vmem:[%s1343_s28 + $0x124] ss:$12 sps:$4 sm:$0xff]   ;;  %v1136_v42 = vld [vmem:[%s1343_s28 + $0x120] ss:$12 sps:$4 sm:$0xff]  }
  0x35   : > { %615 = vmatpush1.bf16.msra.mxu0 %v1101_v8  ;;  %1007 = vmatprep.subr.bf16.mxu1 %v1125_v18  ;;  %v1148_v40 = vld [vmem:[%s1456_s0] ss:$8 sps:$4 sm:$0xff]   ;;  %v1157_v41 = vld [vmem:[%s1456_s0 + $0x14] ss:$8 sps:$4 sm:$0xff]   ;;  %v1138_v43 = vld [vmem:[%s1343_s28 + $0x10c] ss:$12 sps:$4 sm:$0xff]  }
  0x36   : > { %616 = vmatprep.subr.bf16.mxu0 %v1102_v10  ;;  %v1141_v44 = vld [vmem:[%s1343_s28 + $0x108] ss:$12 sps:$4 sm:$0xff]   ;;  %v1159_v46 = vld [vmem:[%s1456_s0 + $0x10] ss:$8 sps:$4 sm:$0xff]   ;;  %v1156_v51 = vld [vmem:[%s1343_s28 + $0xc0] ss:$12 sps:$4 sm:$0xff]  }
  0x37   : > { %v1143_v45 = vld [vmem:[%s1343_s28 + $0xf4] ss:$12 sps:$4 sm:$0xff]   ;;  %v1146_v47 = vld [vmem:[%s1343_s28 + $0xf0] ss:$12 sps:$4 sm:$0xff]   ;;  %v1153_v49 = vld [vmem:[%s1343_s28 + $0xd8] ss:$12 sps:$4 sm:$0xff]  }
  0x38   : > { %1008 = vmatpush3.bf16.msra.mxu1 %v1127_v20  ;;  %v1151_v48 = vld [vmem:[%s1343_s28 + $0xdc] ss:$12 sps:$4 sm:$0xff]   ;;  %v1154_v50 = vld [vmem:[%s1343_s28 + $0xc4] ss:$12 sps:$4 sm:$0xff]   ;;  %p240_p8 = scmp.lt.s32.totalorder %s239_s9, 5  ;;  %v318_v53 = vshrl.u32 %v317_v52, 7 }
  0x39   : > { %617 = vmatpush1.bf16.msra.mxu0 %v1104_v13  ;;  %1009 = vmatprep.subr.bf16.mxu1 %v1130_v22  ;;  %s1031_s18 = smul.u32 48, %s1339_s22 }
  0x3a   : > { %618 = vmatprep.subr.bf16.mxu0 %v1105_v14  ;;  %s1472_s9 = smov (!%p240_p8, %s239_s9), 5  ;;  %v327_v54 = vsub.s32 2, %v318_v53  ;;  %v319_v11 = vsub.s32 0, %v318_v53  ;;  %v323_v12 = vsub.s32 1, %v318_v53  ;;  %s1000_s21 = smul.u32 (%p1314_p9), 12, %s1230_s15 }
  0x3b   : > { %s242_s12 = scalar_lea.vmem %s1458_s2, %s1472_s9  ;;  %s1414_s20 = scalar_lea.vmem [#allocation4], %s1031_s18 }
  0x3c   : > { %1010 = vmatpush3.bf16.msra.mxu1 %v1132_v24  ;;  %v315_v55 = vld [vmem:[%s242_s12] sm:$0x7]  ;;  %s770_s25 = scalar_lea.vmem (%p1314_p9), %s1459_s3, %s1000_s21 }
  0x3d   : > { %619 = vmatpush1.bf16.msra.mxu0 %v1107_v17  ;;  %1011 = vmatprep.subr.bf16.mxu1 %v1135_v25  ;;  %v328_v57 = vrot.slane %v315_v55, %v327_v54  ;;  %v320_v15 = vrot.slane %v315_v55, %v319_v11  ;;  %v324_v16 = vrot.slane %v315_v55, %v323_v12 }
  0x3e   : > { %620 = vmatprep.subr.bf16.mxu0 %v1108_v19 }
  0x40   : > { %1012 = vmatpush3.bf16.msra.mxu1 %v1137_v28 }
  0x41   : > { %621 = vmatpush1.bf16.msra.mxu0 %v1111_v21  ;;  %1013 = vmatprep.subr.bf16.mxu1 %v1140_v29 }
  0x42   : > { %622 = vmatprep.subr.bf16.mxu0 %v1113_v23 }
  0x44   : > { %1014 = vmatpush3.bf16.msra.mxu1 %v1142_v32 }
  0x45   : > { %623 = vmatpush1.bf16.msra.mxu0 %v1116_v26  ;;  %1015 = vmatprep.subr.bf16.mxu1 %v1145_v33 }
  0x46   : > { %624 = vmatprep.subr.bf16.mxu0 %v1118_v27 }
  0x48   : > { %1016 = vmatpush3.bf16.msra.mxu1 %v1147_v37 }
  0x49   : > { %625 = vmatpush2.bf16.msra.mxu0 %v1121_v30 }
  0x4a   : > { %626 = vmatprep.subr.bf16.mxu0 %v1123_v31 }
  0x4b   : > { %694 = vmatmul.mubr.bf16.vlgmr.msra.gmra.mxu1 %v1148_v40 }
  0x4c   : > { %701 = vmatprep.mubr.bf16.mxu1 %v1157_v41 }
  0x4d   : > { %627 = vmatpush2.bf16.msra.mxu0 %v1126_v34 }
  0x4e   : > { %628 = vmatprep.subr.bf16.mxu0 %v1128_v36 }
  0x51   : > { %629 = vmatpush2.bf16.msra.mxu0 %v1131_v38 }
  0x52   : > { %630 = vmatprep.subr.bf16.mxu0 %v1133_v39 }
  0x53   : > { %702 = vmatmul.mubr.bf16.gmra.mxu1 %v1159_v46 }
  0x55   : > { %631 = vmatpush2.bf16.msra.mxu0 %v1136_v42 }
  0x56   : > { %632 = vmatprep.subr.bf16.mxu0 %v1138_v43 }
  0x59   : > { %633 = vmatpush2.bf16.msra.mxu0 %v1141_v44 }
  0x5a   : > { %634 = vmatprep.subr.bf16.mxu0 %v1143_v45 }
  0x5d   : > { %635 = vmatpush2.bf16.msra.mxu0 %v1146_v47 }
  0x5e   : > { %636 = vmatprep.subr.bf16.mxu0 %v1151_v48 }
  0x61   : > { %637 = vmatpush2.bf16.msra.mxu0 %v1153_v49 }
  0x62   : > { %638 = vmatprep.subr.bf16.mxu0 %v1154_v50 }
  0x65   : > { %639 = vmatpush2.bf16.msra.mxu0 %v1156_v51 }
  0x68   : > { %641 = vmatmul.mubr.bf16.vlgmr.msra.gmra.mxu0 %v1148_v40 }
  0x69   : > { %650 = vmatprep.mubr.bf16.mxu0 %v1157_v41 }
  0x70   : > { %651 = vmatmul.mubr.bf16.gmra.mxu0 %v1159_v46 }
 0x10b   : > { %v1017_v56 = vpop.f32.mrf.mxu1 }
 0x10d   : > { %v1018_v58 = vpop.f32.mrf.mxu1 }
 0x10e   : > { %v1019_v59 = vadd.f32 %v1018_v58, %v1017_v56 }
 0x10f   : > { %v1020_v60 = vpop.f32.mrf.mxu1 }
 0x110   : > { %v696_v61 = vadd.f32 %v1019_v59, %v328_v57 }
 0x111   : > { %v1021_v62 = vpop.f32.mrf.mxu1 }
 0x112   : > { %v993_v63 = vpack.c.bf16 %v696_v61, %v696_v61  ;;  %v1022_v0 = vadd.f32 %v1021_v62, %v1020_v60 }
 0x113   : > { %v1023_v1 = vpop.f32.mrf.mxu1 }
 0x114   : > { %751 = vst [vmem:[%s1414_s20 + $0x8] sm:$0xf] %v993_v63  ;;  %v699_v2 = vadd.f32 %v1022_v0, %v328_v57 }
 0x115   : > { %v1024_v3 = vpop.f32.mrf.mxu1 }
 0x116   : > { %v995_v4 = vpack.c.bf16 %v699_v2, %v699_v2  ;;  %v1025_v5 = vadd.f32 %v1024_v3, %v1023_v1 }
 0x117   : > { %v1026_v6 = vpop.f32.mrf.mxu1 }
 0x118   : > { %753 = vst [vmem:[%s1414_s20 + $0x14] sm:$0xf] %v995_v4  ;;  %v704_v7 = vadd.f32 %v1025_v5, %v328_v57 }
 0x119   : > { %v1027_v8 = vpop.f32.mrf.mxu1 }
 0x11a   : > { %v997_v9 = vpack.c.bf16 %v704_v7, %v704_v7  ;;  %v1028_v10 = vadd.f32 %v1027_v8, %v1026_v6 }
 0x11b   : > { %v981_v41 = vld [vmem:[%s1414_s20 + $0x8] sm:$0xf] (%p1314_p9) }
 0x11c   : > { %755 = vst [vmem:[%s1414_s20 + $0x20] sm:$0xf] %v997_v9  ;;  %v707_v13 = vadd.f32 %v1028_v10, %v328_v57  ;;  %982 = vst [vmem:[%s770_s25 + $0x8] sm:$0xf] (%p1314_p9), %v981_v41 }
 0x11e   : > { %v999_v14 = vpack.c.bf16 %v707_v13, %v707_v13 }
 0x11f   : > { %v983_v42 = vld [vmem:[%s1414_s20 + $0x14] sm:$0xf] (%p1314_p9) }
 0x120   : > { %757 = vst [vmem:[%s1414_s20 + $0x2c] sm:$0xf] %v999_v14  ;;  %984 = vst [vmem:[%s770_s25 + $0x20] sm:$0xf] (%p1314_p9), %v983_v42 }
 0x123   : > { %v985_v43 = vld [vmem:[%s1414_s20 + $0x20] sm:$0xf] (%p1314_p9) }
 0x124   : > { %986 = vst [vmem:[%s770_s25 + $0x38] sm:$0xf] (%p1314_p9), %v985_v43 }
 0x127   : > { %v987_v44 = vld [vmem:[%s1414_s20 + $0x2c] sm:$0xf] (%p1314_p9) }
 0x128   : > { %v642_v17 = vpop.f32.mrf.mxu0  ;;  %988 = vst [vmem:[%s770_s25 + $0x50] sm:$0xf] (%p1314_p9), %v987_v44 }
 0x129   : > { %v643_v19 = vadd.f32 %v642_v17, %v320_v15 }
 0x12a   : > { %v644_v18 = vpop.f32.mrf.mxu0 }
 0x12b   : > { %v645_v20 = vadd.f32 %v644_v18, %v324_v16 }
 0x12c   : > { %v646_v21 = vpop.f32.mrf.mxu0 }
 0x12d   : > { %v992_v22 = vpack.c.bf16 %v645_v20, %v643_v19  ;;  %v647_v24 = vadd.f32 %v646_v21, %v320_v15 }
 0x12e   : > { %v648_v23 = vpop.f32.mrf.mxu0 }
 0x12f   : > { %750 = vst [vmem:[%s1414_s20] sm:$0xff] %v992_v22  ;;  %v649_v25 = vadd.f32 %v648_v23, %v324_v16 }
 0x130   : > { %v652_v26 = vpop.f32.mrf.mxu0 }
 0x131   : > { %v994_v27 = vpack.c.bf16 %v649_v25, %v647_v24  ;;  %v653_v29 = vadd.f32 %v652_v26, %v320_v15 }
 0x132   : > { %v654_v28 = vpop.f32.mrf.mxu0 }
 0x133   : > { %752 = vst [vmem:[%s1414_s20 + $0xc] sm:$0xff] %v994_v27  ;;  %v655_v30 = vadd.f32 %v654_v28, %v324_v16 }
 0x134   : > { %v656_v31 = vpop.f32.mrf.mxu0 }
 0x135   : > { %v996_v32 = vpack.c.bf16 %v655_v30, %v653_v29  ;;  %v657_v34 = vadd.f32 %v656_v31, %v320_v15 }
 0x136   : > { %v658_v33 = vpop.f32.mrf.mxu0  ;;  %v785_v37 = vld [vmem:[%s1414_s20] sm:$0xff] (%p1314_p9) }
 0x137   : > { %754 = vst [vmem:[%s1414_s20 + $0x18] sm:$0xff] %v996_v32  ;;  %v659_v35 = vadd.f32 %v658_v33, %v324_v16  ;;  %764 = sbr.rel (!%p1314_p9) target bundleno = 324 (0x144), region = 40  ;;  %786 = vst [vmem:[%s770_s25] sm:$0xff] (%p1314_p9), %v785_v37 }
 0x139   : > { %v998_v36 = vpack.c.bf16 %v659_v35, %v657_v34 }
 0x13a   : > { %v787_v38 = vld [vmem:[%s1414_s20 + $0xc] sm:$0xff] (%p1314_p9) }
 0x13b   : > { %756 = vst [vmem:[%s1414_s20 + $0x24] sm:$0xff] %v998_v36  ;;  %788 = vst [vmem:[%s770_s25 + $0x18] sm:$0xff] (%p1314_p9), %v787_v38 }
 0x13e   : > { %v789_v39 = vld [vmem:[%s1414_s20 + $0x18] sm:$0xff] }
 0x13f   : > { %790 = vst [vmem:[%s770_s25 + $0x30] sm:$0xff] %v789_v39 }
 0x142   : > { %v791_v40 = vld [vmem:[%s1414_s20 + $0x24] sm:$0xff] }
 0x143   : > { %792 = vst [vmem:[%s770_s25 + $0x48] sm:$0xff] %v791_v40 }
 0x144 PF: > { %s16_s17 = sadd.s32 1, %s1238_s17   ;;  %s1464_s12 = smov %s1222_s13 }
 0x145   : > { %p13_p9 = scmp.ge.s32.totalorder %s16_s17, 4   ;;  %s1465_s13 = smov %s1226_s14 }
 0x146   : > { %s1466_s14 = smov %s1312_s24  ;;  %s1467_s15 = smov %s1234_s16 }
 0x147   : > { %s1468_s16 = smov %s1470_s19  ;;  %15 = sbr.rel (!%p13_p9) target bundleno = 4 (0x4), region = 110 }
 0x14c   :  { %824 = vsyncpa [#allocation3], 1 }
 0x14d   :  { %826 = vsyncpa [#allocation3 + $0x1], 1 }

// kernel: bert_embedding_forward.15
= control target key start
LH: loop header
LB: loop body
LE: loop exit
PB: predicated region body
PF: predicated region fallthrough
CT: control target
= control target key end

     0   :  { %s1219_s1 = inlined_call_operand.vmem [shape: bf16[256,512], index: 1, kind: input, shape index: {}]   ;;  %s1220_s0 = inlined_call_operand.vmem [shape: bf16[32,256], index: 0, kind: input, shape index: {}]   ;;  %s1221_s2 = inlined_call_operand.vmem [shape: f32[1,512], index: 2, kind: input, shape index: {}]   ;;  %s1222_s3 = inlined_call_operand.vmem [shape: bf16[32,512], index: 3, kind: output, shape index: {}]  }
   0x1   :  { %v774_v0 = vld [vmem:[%s1219_s1 + $0xe4] ss:$16 sps:$4 sm:$0xff]   ;;  %v776_v1 = vld [vmem:[%s1219_s1 + $0xec] ss:$16 sps:$4 sm:$0xff]   ;;  %v778_v2 = vld [vmem:[%s1219_s1 + $0xe0] ss:$16 sps:$4 sm:$0xff]  }
   0x2   :  { %444 = vmatprep.subr.bf16.mxu0 %v774_v0  ;;  %v779_v3 = vld [vmem:[%s1219_s1 + $0xe8] ss:$16 sps:$4 sm:$0xff]   ;;  %497 = vmatprep.subr.bf16.mxu1 %v776_v1  ;;  %v780_v4 = vld [vmem:[%s1219_s1 + $0xc4] ss:$16 sps:$4 sm:$0xff]   ;;  %v782_v5 = vld [vmem:[%s1219_s1 + $0xcc] ss:$16 sps:$4 sm:$0xff]  }
   0x3   :  { %445 = vmatpush1.bf16.msra.mxu0 %v778_v2  ;;  %498 = vmatpush1.bf16.msra.mxu1 %v779_v3  ;;  %v784_v6 = vld [vmem:[%s1219_s1 + $0xc0] ss:$16 sps:$4 sm:$0xff]   ;;  %v785_v7 = vld [vmem:[%s1219_s1 + $0xc8] ss:$16 sps:$4 sm:$0xff]   ;;  %v786_v8 = vld [vmem:[%s1219_s1 + $0xa4] ss:$16 sps:$4 sm:$0xff]  }
   0x4   :  { %446 = vmatprep.subr.bf16.mxu0 %v780_v4  ;;  %499 = vmatprep.subr.bf16.mxu1 %v782_v5  ;;  %v788_v9 = vld [vmem:[%s1219_s1 + $0xac] ss:$16 sps:$4 sm:$0xff]   ;;  %v790_v10 = vld [vmem:[%s1219_s1 + $0xa0] ss:$16 sps:$4 sm:$0xff]   ;;  %v791_v11 = vld [vmem:[%s1219_s1 + $0xa8] ss:$16 sps:$4 sm:$0xff]   ;;  %v84_v4 = vlaneseq }
   0x5   :  { %v792_v12 = vld [vmem:[%s1219_s1 + $0x84] ss:$16 sps:$4 sm:$0xff]   ;;  %v794_v13 = vld [vmem:[%s1219_s1 + $0x8c] ss:$16 sps:$4 sm:$0xff]   ;;  %v796_v14 = vld [vmem:[%s1219_s1 + $0x80] ss:$16 sps:$4 sm:$0xff]  }
   0x6   :  { %v797_v15 = vld [vmem:[%s1219_s1 + $0x88] ss:$16 sps:$4 sm:$0xff]   ;;  %v798_v16 = vld [vmem:[%s1219_s1 + $0x64] ss:$16 sps:$4 sm:$0xff]   ;;  %v800_v17 = vld [vmem:[%s1219_s1 + $0x6c] ss:$16 sps:$4 sm:$0xff]  }
   0x7   :  { %447 = vmatpush1.bf16.msra.mxu0 %v784_v6  ;;  %500 = vmatpush1.bf16.msra.mxu1 %v785_v7  ;;  %v802_v18 = vld [vmem:[%s1219_s1 + $0x60] ss:$16 sps:$4 sm:$0xff]   ;;  %v803_v19 = vld [vmem:[%s1219_s1 + $0x68] ss:$16 sps:$4 sm:$0xff]   ;;  %v804_v20 = vld [vmem:[%s1219_s1 + $0x44] ss:$16 sps:$4 sm:$0xff]  }
   0x8   :  { %448 = vmatprep.subr.bf16.mxu0 %v786_v8  ;;  %501 = vmatprep.subr.bf16.mxu1 %v788_v9  ;;  %v806_v21 = vld [vmem:[%s1219_s1 + $0x4c] ss:$16 sps:$4 sm:$0xff]   ;;  %v808_v22 = vld [vmem:[%s1219_s1 + $0x40] ss:$16 sps:$4 sm:$0xff]   ;;  %v809_v23 = vld [vmem:[%s1219_s1 + $0x48] ss:$16 sps:$4 sm:$0xff]  }
   0x9   :  { %v810_v24 = vld [vmem:[%s1219_s1 + $0x24] ss:$16 sps:$4 sm:$0xff]   ;;  %v812_v25 = vld [vmem:[%s1219_s1 + $0x2c] ss:$16 sps:$4 sm:$0xff]   ;;  %v814_v26 = vld [vmem:[%s1219_s1 + $0x20] ss:$16 sps:$4 sm:$0xff]  }
   0xa   :  { %v815_v27 = vld [vmem:[%s1219_s1 + $0x28] ss:$16 sps:$4 sm:$0xff]   ;;  %v816_v28 = vld [vmem:[%s1219_s1 + $0x4] ss:$16 sps:$4 sm:$0xff]   ;;  %v818_v29 = vld [vmem:[%s1219_s1 + $0xc] ss:$16 sps:$4 sm:$0xff]  }
   0xb   :  { %449 = vmatpush1.bf16.msra.mxu0 %v790_v10  ;;  %502 = vmatpush1.bf16.msra.mxu1 %v791_v11  ;;  %v820_v30 = vld [vmem:[%s1219_s1] ss:$16 sps:$4 sm:$0xff]   ;;  %v821_v31 = vld [vmem:[%s1219_s1 + $0x8] ss:$16 sps:$4 sm:$0xff]   ;;  %v822_v32 = vld [vmem:[%s1219_s1 + $0x1e4] ss:$16 sps:$4 sm:$0xff]  }
   0xc   :  { %450 = vmatprep.subr.bf16.mxu0 %v792_v12  ;;  %503 = vmatprep.subr.bf16.mxu1 %v794_v13  ;;  %v824_v33 = vld [vmem:[%s1219_s1 + $0x1ec] ss:$16 sps:$4 sm:$0xff]   ;;  %v826_v34 = vld [vmem:[%s1219_s1 + $0x1e0] ss:$16 sps:$4 sm:$0xff]   ;;  %v827_v35 = vld [vmem:[%s1219_s1 + $0x1e8] ss:$16 sps:$4 sm:$0xff]  }
   0xd   :  { %v828_v36 = vld [vmem:[%s1219_s1 + $0x1c4] ss:$16 sps:$4 sm:$0xff]   ;;  %v830_v37 = vld [vmem:[%s1219_s1 + $0x1cc] ss:$16 sps:$4 sm:$0xff]   ;;  %v832_v38 = vld [vmem:[%s1219_s1 + $0x1c0] ss:$16 sps:$4 sm:$0xff]  }
   0xe   :  { %v833_v39 = vld [vmem:[%s1219_s1 + $0x1c8] ss:$16 sps:$4 sm:$0xff]   ;;  %v834_v40 = vld [vmem:[%s1219_s1 + $0x1a4] ss:$16 sps:$4 sm:$0xff]   ;;  %v836_v41 = vld [vmem:[%s1219_s1 + $0x1ac] ss:$16 sps:$4 sm:$0xff]  }
   0xf   :  { %451 = vmatpush1.bf16.msra.mxu0 %v796_v14  ;;  %504 = vmatpush1.bf16.msra.mxu1 %v797_v15  ;;  %v838_v42 = vld [vmem:[%s1219_s1 + $0x1a0] ss:$16 sps:$4 sm:$0xff]   ;;  %v839_v43 = vld [vmem:[%s1219_s1 + $0x1a8] ss:$16 sps:$4 sm:$0xff]   ;;  %v840_v44 = vld [vmem:[%s1219_s1 + $0x184] ss:$16 sps:$4 sm:$0xff]  }
  0x10   :  { %452 = vmatprep.subr.bf16.mxu0 %v798_v16  ;;  %505 = vmatprep.subr.bf16.mxu1 %v800_v17  ;;  %v842_v45 = vld [vmem:[%s1219_s1 + $0x18c] ss:$16 sps:$4 sm:$0xff]   ;;  %v844_v46 = vld [vmem:[%s1219_s1 + $0x180] ss:$16 sps:$4 sm:$0xff]   ;;  %v845_v48 = vld [vmem:[%s1219_s1 + $0x188] ss:$16 sps:$4 sm:$0xff]  }
  0x11   :  { %v872_v47 = vld [vmem:[%s1220_s0 + $0x4] ss:$8 sps:$4 sm:$0xff]   ;;  %v850_v51 = vld [vmem:[%s1219_s1 + $0x160] ss:$16 sps:$4 sm:$0xff]   ;;  %v851_v52 = vld [vmem:[%s1219_s1 + $0x168] ss:$16 sps:$4 sm:$0xff]  }
  0x12   :  { %v846_v49 = vld [vmem:[%s1219_s1 + $0x164] ss:$16 sps:$4 sm:$0xff]   ;;  %v848_v50 = vld [vmem:[%s1219_s1 + $0x16c] ss:$16 sps:$4 sm:$0xff]   ;;  %476 = vmatprep.mubr.bf16.mxu0 %v872_v47  ;;  %529 = vmatprep.mubr.bf16.mxu1 %v872_v47  ;;  %v856_v55 = vld [vmem:[%s1219_s1 + $0x140] ss:$16 sps:$4 sm:$0xff]  }
  0x13   :  { %453 = vmatpush1.bf16.msra.mxu0 %v802_v18  ;;  %506 = vmatpush1.bf16.msra.mxu1 %v803_v19  ;;  %v852_v53 = vld [vmem:[%s1219_s1 + $0x144] ss:$16 sps:$4 sm:$0xff]   ;;  %v854_v54 = vld [vmem:[%s1219_s1 + $0x14c] ss:$16 sps:$4 sm:$0xff]   ;;  %v857_v56 = vld [vmem:[%s1219_s1 + $0x148] ss:$16 sps:$4 sm:$0xff]  }
  0x14   :  { %454 = vmatprep.subr.bf16.mxu0 %v804_v20  ;;  %507 = vmatprep.subr.bf16.mxu1 %v806_v21  ;;  %v858_v57 = vld [vmem:[%s1219_s1 + $0x124] ss:$16 sps:$4 sm:$0xff]   ;;  %v860_v58 = vld [vmem:[%s1219_s1 + $0x12c] ss:$16 sps:$4 sm:$0xff]   ;;  %v862_v59 = vld [vmem:[%s1219_s1 + $0x120] ss:$16 sps:$4 sm:$0xff]  }
  0x15   :  { %v863_v60 = vld [vmem:[%s1219_s1 + $0x128] ss:$16 sps:$4 sm:$0xff]   ;;  %v864_v61 = vld [vmem:[%s1219_s1 + $0x104] ss:$16 sps:$4 sm:$0xff]   ;;  %v866_v62 = vld [vmem:[%s1219_s1 + $0x10c] ss:$16 sps:$4 sm:$0xff]  }
  0x16   :  { %v868_v63 = vld [vmem:[%s1219_s1 + $0x100] ss:$16 sps:$4 sm:$0xff]   ;;  %v869_v0 = vld [vmem:[%s1219_s1 + $0x108] ss:$16 sps:$4 sm:$0xff]   ;;  %v873_v2 = vld [vmem:[%s1220_s0 + $0x14] ss:$8 sps:$4 sm:$0xff]  }
  0x17   :  { %455 = vmatpush1.bf16.msra.mxu0 %v808_v22  ;;  %508 = vmatpush1.bf16.msra.mxu1 %v809_v23  ;;  %v870_v1 = vld [vmem:[%s1220_s0] ss:$8 sps:$4 sm:$0xff]   ;;  %v875_v3 = vld [vmem:[%s1220_s0 + $0x10] ss:$8 sps:$4 sm:$0xff]   ;;  %v85_v5 = vshrl.u32 %v84_v4, 7 }
  0x18   :  { %456 = vmatprep.subr.bf16.mxu0 %v810_v24  ;;  %509 = vmatprep.subr.bf16.mxu1 %v812_v25  ;;  %v82_v8 = vld [vmem:[%s1221_s2] sm:$0xf] }
  0x19   :  { %v86_v6 = vsub.s32 0, %v85_v5  ;;  %v94_v7 = vsub.s32 2, %v85_v5  ;;  %v90_v9 = vsub.s32 1, %v85_v5  ;;  %v98_v10 = vsub.s32 3, %v85_v5 }
  0x1b   :  { %457 = vmatpush1.bf16.msra.mxu0 %v814_v26  ;;  %510 = vmatpush1.bf16.msra.mxu1 %v815_v27  ;;  %v87_v11 = vrot.slane %v82_v8, %v86_v6  ;;  %v95_v12 = vrot.slane %v82_v8, %v94_v7  ;;  %v91_v15 = vrot.slane %v82_v8, %v90_v9 }
  0x1c   :  { %458 = vmatprep.subr.bf16.mxu0 %v816_v28  ;;  %511 = vmatprep.subr.bf16.mxu1 %v818_v29  ;;  %v99_v16 = vrot.slane %v82_v8, %v98_v10 }
  0x1f   :  { %459 = vmatpush1.bf16.msra.mxu0 %v820_v30  ;;  %512 = vmatpush1.bf16.msra.mxu1 %v821_v31 }
  0x20   :  { %460 = vmatprep.subr.bf16.mxu0 %v822_v32  ;;  %513 = vmatprep.subr.bf16.mxu1 %v824_v33 }
  0x23   :  { %461 = vmatpush2.bf16.msra.mxu0 %v826_v34  ;;  %514 = vmatpush2.bf16.msra.mxu1 %v827_v35 }
  0x24   :  { %462 = vmatprep.subr.bf16.mxu0 %v828_v36  ;;  %515 = vmatprep.subr.bf16.mxu1 %v830_v37 }
  0x27   :  { %463 = vmatpush2.bf16.msra.mxu0 %v832_v38  ;;  %516 = vmatpush2.bf16.msra.mxu1 %v833_v39 }
  0x28   :  { %464 = vmatprep.subr.bf16.mxu0 %v834_v40  ;;  %517 = vmatprep.subr.bf16.mxu1 %v836_v41 }
  0x2b   :  { %465 = vmatpush2.bf16.msra.mxu0 %v838_v42  ;;  %518 = vmatpush2.bf16.msra.mxu1 %v839_v43 }
  0x2c   :  { %466 = vmatprep.subr.bf16.mxu0 %v840_v44  ;;  %519 = vmatprep.subr.bf16.mxu1 %v842_v45 }
  0x2f   :  { %467 = vmatpush2.bf16.msra.mxu0 %v844_v46  ;;  %520 = vmatpush2.bf16.msra.mxu1 %v845_v48 }
  0x30   :  { %468 = vmatprep.subr.bf16.mxu0 %v846_v49  ;;  %521 = vmatprep.subr.bf16.mxu1 %v848_v50 }
  0x33   :  { %469 = vmatpush2.bf16.msra.mxu0 %v850_v51  ;;  %522 = vmatpush2.bf16.msra.mxu1 %v851_v52 }
  0x34   :  { %470 = vmatprep.subr.bf16.mxu0 %v852_v53  ;;  %523 = vmatprep.subr.bf16.mxu1 %v854_v54 }
  0x37   :  { %471 = vmatpush2.bf16.msra.mxu0 %v856_v55  ;;  %524 = vmatpush2.bf16.msra.mxu1 %v857_v56 }
  0x38   :  { %472 = vmatprep.subr.bf16.mxu0 %v858_v57  ;;  %525 = vmatprep.subr.bf16.mxu1 %v860_v58 }
  0x3b   :  { %473 = vmatpush2.bf16.msra.mxu0 %v862_v59  ;;  %526 = vmatpush2.bf16.msra.mxu1 %v863_v60 }
  0x3c   :  { %474 = vmatprep.subr.bf16.mxu0 %v864_v61  ;;  %527 = vmatprep.subr.bf16.mxu1 %v866_v62 }
  0x3f   :  { %475 = vmatpush2.bf16.msra.mxu0 %v868_v63  ;;  %528 = vmatpush2.bf16.msra.mxu1 %v869_v0 }
  0x42   :  { %477 = vmatmul.mubr.bf16.vlgmr.msra.gmra.mxu0 %v870_v1  ;;  %530 = vmatmul.mubr.bf16.vlgmr.msra.gmra.mxu1 %v870_v1 }
  0x43   :  { %486 = vmatprep.mubr.bf16.mxu0 %v873_v2  ;;  %539 = vmatprep.mubr.bf16.mxu1 %v873_v2 }
  0x4a   :  { %487 = vmatmul.mubr.bf16.gmra.mxu0 %v875_v3  ;;  %540 = vmatmul.mubr.bf16.gmra.mxu1 %v875_v3 }
 0x102   :  { %v478_v13 = vpop.f32.mrf.mxu0  ;;  %v531_v14 = vpop.f32.mrf.mxu1 }
 0x103   :  { %v1135_v17 = vadd.f32 %v478_v13, %v87_v11  ;;  %v1137_v18 = vadd.f32 %v531_v14, %v95_v12 }
 0x104   :  { %v480_v19 = vpop.f32.mrf.mxu0  ;;  %v533_v20 = vpop.f32.mrf.mxu1 }
 0x105   :  { %v566_v21 = vmul.f32 0.70710677, %v1135_v17  ;;  %v568_v22 = vmul.f32 0.70710677, %v1137_v18  ;;  %v481_v23 = vadd.f32 %v480_v19, %v91_v15  ;;  %v1141_v24 = vadd.f32 %v533_v20, %v99_v16 }
 0x106   :  { %v482_v25 = vpop.f32.mrf.mxu0  ;;  %v535_v26 = vpop.f32.mrf.mxu1  ;;  %v550_v5 = vmul.f32 0.5, %v1135_v17  ;;  %v552_v9 = vmul.f32 0.5, %v1137_v18 }
 0x107   :  { %876 = verf.f32 %v566_v21  ;;  %v1143_v27 = vadd.f32 %v482_v25, %v87_v11  ;;  %v1145_v28 = vadd.f32 %v535_v26, %v95_v12  ;;  %v567_v29 = vmul.f32 0.70710677, %v481_v23 }
 0x108   :  { %878 = verf.f32 %v568_v22  ;;  %v484_v30 = vpop.f32.mrf.mxu0  ;;  %v537_v31 = vpop.f32.mrf.mxu1  ;;  %v569_v32 = vmul.f32 0.70710677, %v1141_v24  ;;  %v551_v6 = vmul.f32 0.5, %v481_v23  ;;  %v553_v10 = vmul.f32 0.5, %v1141_v24 }
 0x109   :  { %v570_v33 = vmul.f32 0.70710677, %v1143_v27  ;;  %880 = verf.f32 %v567_v29  ;;  %v572_v34 = vmul.f32 0.70710677, %v1145_v28  ;;  %v1150_v35 = vadd.f32 %v484_v30, %v91_v15 }
 0x10a   :  { %v1152_v36 = vadd.f32 %v537_v31, %v99_v16  ;;  %v488_v37 = vpop.f32.mrf.mxu0  ;;  %v541_v38 = vpop.f32.mrf.mxu1  ;;  %882 = verf.f32 %v569_v32  ;;  %v554_v17 = vmul.f32 0.5, %v1143_v27  ;;  %v556_v24 = vmul.f32 0.5, %v1145_v28 }
 0x10b   :  { %v1154_v39 = vadd.f32 %v488_v37, %v87_v11  ;;  %v1156_v40 = vadd.f32 %v541_v38, %v95_v12  ;;  %884 = verf.f32 %v570_v33  ;;  %v571_v41 = vmul.f32 0.70710677, %v1150_v35 }
 0x10c   :  { %v490_v42 = vpop.f32.mrf.mxu0  ;;  %v543_v43 = vpop.f32.mrf.mxu1  ;;  %886 = verf.f32 %v572_v34  ;;  %v573_v44 = vmul.f32 0.70710677, %v1152_v36  ;;  %v555_v23 = vmul.f32 0.5, %v1150_v35  ;;  %v557_v30 = vmul.f32 0.5, %v1152_v36 }
 0x10d   :  { %v574_v45 = vmul.f32 0.70710677, %v1154_v39  ;;  %888 = verf.f32 %v571_v41  ;;  %v576_v46 = vmul.f32 0.70710677, %v1156_v40  ;;  %v1162_v47 = vadd.f32 %v490_v42, %v91_v15 }
 0x10e   :  { %v492_v48 = vpop.f32.mrf.mxu0  ;;  %v545_v49 = vpop.f32.mrf.mxu1  ;;  %890 = verf.f32 %v573_v44  ;;  %v1164_v50 = vadd.f32 %v543_v43, %v99_v16  ;;  %v558_v36 = vmul.f32 0.5, %v1154_v39 }
 0x10f   :  { %v1166_v51 = vadd.f32 %v492_v48, %v87_v11  ;;  %v1168_v52 = vadd.f32 %v545_v49, %v95_v12  ;;  %892 = verf.f32 %v574_v45  ;;  %v575_v53 = vmul.f32 0.70710677, %v1162_v47 }
 0x110   :  { %v494_v54 = vpop.f32.mrf.mxu0  ;;  %v547_v55 = vpop.f32.mrf.mxu1  ;;  %894 = verf.f32 %v576_v46  ;;  %v577_v56 = vmul.f32 0.70710677, %v1164_v50  ;;  %v559_v43 = vmul.f32 0.5, %v1162_v47  ;;  %v560_v48 = vmul.f32 0.5, %v1156_v40 }
 0x111   :  { %896 = verf.f32 %v575_v53  ;;  %v578_v57 = vmul.f32 0.70710677, %v1166_v51  ;;  %v580_v58 = vmul.f32 0.70710677, %v1168_v52  ;;  %v1174_v59 = vadd.f32 %v494_v54, %v91_v15 }
 0x112   :  { %898 = verf.f32 %v577_v56  ;;  %v1176_v60 = vadd.f32 %v547_v55, %v99_v16  ;;  %v561_v49 = vmul.f32 0.5, %v1164_v50 }
 0x113   :  { %900 = verf.f32 %v578_v57  ;;  %v579_v63 = vmul.f32 0.70710677, %v1174_v59 }
 0x114   :  { %v877_v61 = vpop.eup %876  ;;  %902 = verf.f32 %v580_v58  ;;  %v581_v1 = vmul.f32 0.70710677, %v1176_v60 }
 0x115   :  { %v879_v62 = vpop.eup %878  ;;  %v598_v0 = vadd.f32 1.0, %v877_v61  ;;  %904 = verf.f32 %v579_v63  ;;  %v562_v63 = vmul.f32 0.5, %v1166_v51 }
 0x116   :  { %v881_v2 = vpop.eup %880  ;;  %v600_v3 = vadd.f32 1.0, %v879_v62  ;;  %906 = verf.f32 %v581_v1 }
 0x117   :  { %v883_v4 = vpop.eup %882  ;;  %v599_v7 = vadd.f32 1.0, %v881_v2  ;;  %v614_v13 = vmul.f32 %v598_v0, %v550_v5  ;;  %v563_v0 = vmul.f32 0.5, %v1174_v59  ;;  %v564_v2 = vmul.f32 0.5, %v1168_v52 }
 0x118   :  { %v885_v8 = vpop.eup %884  ;;  %v601_v11 = vadd.f32 1.0, %v883_v4  ;;  %v616_v19 = vmul.f32 %v600_v3, %v552_v9  ;;  %v565_v3 = vmul.f32 0.5, %v1176_v60 }
 0x119   :  { %v887_v12 = vpop.eup %886  ;;  %v615_v14 = vmul.f32 %v599_v7, %v551_v6  ;;  %v602_v15 = vadd.f32 1.0, %v885_v8 }
 0x11a   :  { %v889_v16 = vpop.eup %888  ;;  %v617_v20 = vmul.f32 %v601_v11, %v553_v10  ;;  %v604_v21 = vadd.f32 1.0, %v887_v12 }
 0x11b   :  { %v891_v22 = vpop.eup %890  ;;  %v766_v25 = vpack.c.bf16 %v615_v14, %v614_v13  ;;  %v603_v26 = vadd.f32 1.0, %v889_v16  ;;  %v618_v33 = vmul.f32 %v602_v15, %v554_v17 }
 0x11c   :  { %v893_v29 = vpop.eup %892  ;;  %v767_v18 = vpack.c.bf16 %v617_v20, %v616_v19  ;;  %v605_v31 = vadd.f32 1.0, %v891_v22  ;;  %v620_v27 = vmul.f32 %v604_v21, %v556_v24 }
 0x11d   :  { %v895_v32 = vpop.eup %894  ;;  %678 = vst [vmem:[%s1222_s3] sm:$0xff] %v766_v25  ;;  %v619_v34 = vmul.f32 %v603_v26, %v555_v23  ;;  %v606_v37 = vadd.f32 1.0, %v893_v29 }
 0x11e   :  { %v897_v38 = vpop.eup %896  ;;  %679 = vst [vmem:[%s1222_s3 + $0x8] sm:$0xff] %v767_v18  ;;  %v621_v35 = vmul.f32 %v605_v31, %v557_v30  ;;  %v608_v41 = vadd.f32 1.0, %v895_v32 }
 0x11f   :  { %v899_v28 = vpop.eup %898  ;;  %v768_v42 = vpack.c.bf16 %v619_v34, %v618_v33  ;;  %v607_v44 = vadd.f32 1.0, %v897_v38  ;;  %v622_v55 = vmul.f32 %v606_v37, %v558_v36 }
 0x120   :  { %v901_v45 = vpop.eup %900  ;;  %v769_v46 = vpack.c.bf16 %v621_v35, %v620_v27  ;;  %v609_v53 = vadd.f32 1.0, %v899_v28  ;;  %v624_v39 = vmul.f32 %v608_v41, %v560_v48 }
 0x121   :  { %v903_v54 = vpop.eup %902  ;;  %680 = vst [vmem:[%s1222_s3 + $0x10] sm:$0xff] %v768_v42  ;;  %v623_v56 = vmul.f32 %v607_v44, %v559_v43  ;;  %v610_v57 = vadd.f32 1.0, %v901_v45 }
 0x122   :  { %681 = vst [vmem:[%s1222_s3 + $0x18] sm:$0xff] %v769_v46  ;;  %v625_v47 = vmul.f32 %v609_v53, %v561_v49  ;;  %v905_v58 = vpop.eup %904  ;;  %v612_v40 = vadd.f32 1.0, %v903_v54 }
 0x123   :  { %v770_v61 = vpack.c.bf16 %v623_v56, %v622_v55  ;;  %v907_v62 = vpop.eup %906  ;;  %v611_v1 = vadd.f32 1.0, %v905_v58  ;;  %v626_v5 = vmul.f32 %v610_v57, %v562_v63 }
 0x124   :  { %v771_v50 = vpack.c.bf16 %v625_v47, %v624_v39  ;;  %v613_v4 = vadd.f32 1.0, %v907_v62  ;;  %v628_v7 = vmul.f32 %v612_v40, %v564_v2 }
 0x125   :  { %682 = vst [vmem:[%s1222_s3 + $0x20] sm:$0xff] %v770_v61  ;;  %v627_v6 = vmul.f32 %v611_v1, %v563_v0 }
 0x126   :  { %683 = vst [vmem:[%s1222_s3 + $0x28] sm:$0xff] %v771_v50  ;;  %v629_v51 = vmul.f32 %v613_v4, %v565_v3 }
 0x127   :  { %v772_v8 = vpack.c.bf16 %v627_v6, %v626_v5 }
 0x128   :  { %v773_v59 = vpack.c.bf16 %v629_v51, %v628_v7 }
 0x129   :  { %684 = vst [vmem:[%s1222_s3 + $0x30] sm:$0xff] %v772_v8 }
 0x12a   :  { %685 = vst [vmem:[%s1222_s3 + $0x38] sm:$0xff] %v773_v59 }

// kernel: bert_embedding_forward.17
= control target key start
LH: loop header
LB: loop body
LE: loop exit
PB: predicated region body
PF: predicated region fallthrough
CT: control target
= control target key end

     0   :  { %s1401_s12 = smov 0   ;;  %s1403_s13 = smov 0   ;;  %s1693_s0 = inlined_call_operand.vmem [shape: bf16[32,256], index: 0, kind: input, shape index: {}]   ;;  %s1694_s1 = inlined_call_operand.vmem [shape: bf16[256,768], index: 1, kind: input, shape index: {}]   ;;  %s1695_s2 = inlined_call_operand.vmem [shape: f32[1,768], index: 2, kind: input, shape index: {}]   ;;  %s1696_s3 = inlined_call_operand.vmem [shape: bf16[32,768], index: 3, kind: output, shape index: {}]  }
   0x1   :  { %s1405_s14 = smov 0   ;;  %s1407_s15 = smov 0  }
   0x2   :  { %s1409_s16 = smov 0  }
   0x3 LB: > { %s22_s17 = sadd.s32 1, %s1375_s15  ;;  %s1048_s18 = sadd.s32 4294967295, %s1379_s16   ;;  %s1379_s16 = sphi %s1409_s16, %s13_s16   ;;  %s1375_s15 = sphi %s1407_s15, %s1701_s15   ;;  %s1371_s14 = sphi %s1405_s14, %s1700_s14   ;;  %s1367_s13 = sphi %s1403_s13, %s1699_s13   ;;  %s1363_s12 = sphi %s1401_s12, %s1698_s12  }
   0x4   : > { %p23_p0 = scmp.ge.s32.totalorder %s22_s17, 2  ;;  %p65_p1 = scmp.ne.s32.totalorder %s1367_s13, %s1363_s12 }
   0x5   : > { %p66_p2 = scmp.eq.s32.totalorder %s1379_s16, 0  ;;  %p123_p4 = scmp.eq.s32.totalorder %s1048_s18, 1 }
   0x6   : > { %s1703_s17 = smov (%p23_p0, %s22_s17), 0  ;;  %s58_s20 = sadd.s32 1, %s1367_s13 }
   0x7   : > { %p67_p3 = por %p66_p2, %p65_p1  ;;  %s55_s19 = ssub.s32 %s1375_s15, %s1703_s17 }
   0x8   : > { %p56_p5 = scmp.eq.s32.totalorder %s55_s19, 0  ;;  %p1436_p6 = por %p123_p4, %p65_p1 }
   0x9   : > { %p1052_p7 = scmp.ge.s32.totalorder %s1379_s16, 2 }
   0xa   : > { %s1441_s22 = scalar_select %p56_p5, %s1367_s13, %s58_s20  }
   0xb   : > { %155 = sbr.rel (%p1052_p7) target bundleno = 58 (0x3a), region = 20 }
  0x10   : > { %158 = sbr.rel (!%p67_p3) target bundleno = 58 (0x3a), region = 24  ;;  %s160_s23 = sand.u32 (%p67_p3), 1, %s1367_s13  }
  0x11   : > { %s1190_s24 = smul.u32 (%p67_p3), 12, %s1375_s15 }
  0x12   : > { %s1228_s25 = smul.u32 (%p67_p3), 384, %s160_s23 }
  0x13   : > { %s1449_s28 = scalar_lea.vmem (%p67_p3), %s1694_s1, %s1190_s24 }
  0x14   : > { %v180_v0 = vld [vmem:[%s1449_s28] sm:$0xff] (%p67_p3)  ;;  %v182_v1 = vld [vmem:[%s1449_s28 + $0x18] sm:$0xff] (%p67_p3)  ;;  %v184_v2 = vld [vmem:[%s1449_s28 + $0x30] sm:$0xff] (%p67_p3)  ;;  %s1454_s29 = scalar_lea.vmem (%p67_p3), [#allocation2], %s1228_s25 }
  0x15   : > { %181 = vst [vmem:[%s1454_s29] sm:$0xff] %v180_v0  ;;  %183 = vst [vmem:[%s1454_s29 + $0xc] sm:$0xff] %v182_v1  ;;  %v186_v3 = vld [vmem:[%s1449_s28 + $0x48] sm:$0xff]  ;;  %v188_v4 = vld [vmem:[%s1449_s28 + $0x60] sm:$0xff] }
  0x16   : > { %185 = vst [vmem:[%s1454_s29 + $0x18] sm:$0xff] %v184_v2  ;;  %v190_v5 = vld [vmem:[%s1449_s28 + $0x78] sm:$0xff]  ;;  %187 = vst [vmem:[%s1454_s29 + $0x24] sm:$0xff] %v186_v3  ;;  %v192_v6 = vld [vmem:[%s1449_s28 + $0x90] sm:$0xff] }
  0x17   : > { %189 = vst [vmem:[%s1454_s29 + $0x30] sm:$0xff] %v188_v4  ;;  %191 = vst [vmem:[%s1454_s29 + $0x3c] sm:$0xff] %v190_v5  ;;  %v194_v7 = vld [vmem:[%s1449_s28 + $0xa8] sm:$0xff]  ;;  %v196_v8 = vld [vmem:[%s1449_s28 + $0xc0] sm:$0xff] }
  0x18   : > { %193 = vst [vmem:[%s1454_s29 + $0x48] sm:$0xff] %v192_v6  ;;  %195 = vst [vmem:[%s1454_s29 + $0x54] sm:$0xff] %v194_v7  ;;  %v198_v9 = vld [vmem:[%s1449_s28 + $0xd8] sm:$0xff]  ;;  %v200_v10 = vld [vmem:[%s1449_s28 + $0xf0] sm:$0xff] }
  0x19   : > { %197 = vst [vmem:[%s1454_s29 + $0x60] sm:$0xff] %v196_v8  ;;  %v202_v11 = vld [vmem:[%s1449_s28 + $0x108] sm:$0xff]  ;;  %199 = vst [vmem:[%s1454_s29 + $0x6c] sm:$0xff] %v198_v9  ;;  %v204_v12 = vld [vmem:[%s1449_s28 + $0x120] sm:$0xff] }
  0x1a   : > { %201 = vst [vmem:[%s1454_s29 + $0x78] sm:$0xff] %v200_v10  ;;  %203 = vst [vmem:[%s1454_s29 + $0x84] sm:$0xff] %v202_v11  ;;  %v206_v13 = vld [vmem:[%s1449_s28 + $0x138] sm:$0xff]  ;;  %v208_v14 = vld [vmem:[%s1449_s28 + $0x150] sm:$0xff] }
  0x1b   : > { %205 = vst [vmem:[%s1454_s29 + $0x90] sm:$0xff] %v204_v12  ;;  %207 = vst [vmem:[%s1454_s29 + $0x9c] sm:$0xff] %v206_v13  ;;  %v210_v15 = vld [vmem:[%s1449_s28 + $0x168] sm:$0xff]  ;;  %v212_v16 = vld [vmem:[%s1449_s28 + $0x180] sm:$0xff] }
  0x1c   : > { %209 = vst [vmem:[%s1454_s29 + $0xa8] sm:$0xff] %v208_v14  ;;  %v214_v17 = vld [vmem:[%s1449_s28 + $0x198] sm:$0xff]  ;;  %211 = vst [vmem:[%s1454_s29 + $0xb4] sm:$0xff] %v210_v15  ;;  %v216_v18 = vld [vmem:[%s1449_s28 + $0x1b0] sm:$0xff] }
  0x1d   : > { %213 = vst [vmem:[%s1454_s29 + $0xc0] sm:$0xff] %v212_v16  ;;  %215 = vst [vmem:[%s1454_s29 + $0xcc] sm:$0xff] %v214_v17  ;;  %v218_v19 = vld [vmem:[%s1449_s28 + $0x1c8] sm:$0xff]  ;;  %v220_v20 = vld [vmem:[%s1449_s28 + $0x1e0] sm:$0xff] }
  0x1e   : > { %217 = vst [vmem:[%s1454_s29 + $0xd8] sm:$0xff] %v216_v18  ;;  %219 = vst [vmem:[%s1454_s29 + $0xe4] sm:$0xff] %v218_v19  ;;  %v222_v21 = vld [vmem:[%s1449_s28 + $0x1f8] sm:$0xff]  ;;  %v224_v22 = vld [vmem:[%s1449_s28 + $0x210] sm:$0xff] }
  0x1f   : > { %221 = vst [vmem:[%s1454_s29 + $0xf0] sm:$0xff] %v220_v20  ;;  %v226_v23 = vld [vmem:[%s1449_s28 + $0x228] sm:$0xff]  ;;  %223 = vst [vmem:[%s1454_s29 + $0xfc] sm:$0xff] %v222_v21  ;;  %v228_v24 = vld [vmem:[%s1449_s28 + $0x240] sm:$0xff] }
  0x20   : > { %225 = vst [vmem:[%s1454_s29 + $0x108] sm:$0xff] %v224_v22  ;;  %227 = vst [vmem:[%s1454_s29 + $0x114] sm:$0xff] %v226_v23  ;;  %v230_v25 = vld [vmem:[%s1449_s28 + $0x258] sm:$0xff]  ;;  %v232_v26 = vld [vmem:[%s1449_s28 + $0x270] sm:$0xff] }
  0x21   : > { %229 = vst [vmem:[%s1454_s29 + $0x120] sm:$0xff] %v228_v24  ;;  %231 = vst [vmem:[%s1454_s29 + $0x12c] sm:$0xff] %v230_v25  ;;  %v234_v27 = vld [vmem:[%s1449_s28 + $0x288] sm:$0xff]  ;;  %v236_v28 = vld [vmem:[%s1449_s28 + $0x2a0] sm:$0xff] }
  0x22   : > { %233 = vst [vmem:[%s1454_s29 + $0x138] sm:$0xff] %v232_v26  ;;  %v238_v29 = vld [vmem:[%s1449_s28 + $0x2b8] sm:$0xff]  ;;  %235 = vst [vmem:[%s1454_s29 + $0x144] sm:$0xff] %v234_v27  ;;  %v240_v30 = vld [vmem:[%s1449_s28 + $0x2d0] sm:$0xff] }
  0x23   : > { %237 = vst [vmem:[%s1454_s29 + $0x150] sm:$0xff] %v236_v28  ;;  %239 = vst [vmem:[%s1454_s29 + $0x15c] sm:$0xff] %v238_v29  ;;  %v242_v31 = vld [vmem:[%s1449_s28 + $0x2e8] sm:$0xff]  ;;  %v1056_v33 = vld [vmem:[%s1449_s28 + $0x20] sm:$0xf] }
  0x24   : > { %v1054_v32 = vld [vmem:[%s1449_s28 + $0x8] sm:$0xf]  ;;  %241 = vst [vmem:[%s1454_s29 + $0x168] sm:$0xff] %v240_v30  ;;  %243 = vst [vmem:[%s1454_s29 + $0x174] sm:$0xff] %v242_v31  ;;  %v1058_v34 = vld [vmem:[%s1449_s28 + $0x38] sm:$0xf] }
  0x25   : > { %1055 = vst [vmem:[%s1454_s29 + $0x8] sm:$0xf] %v1054_v32  ;;  %v1060_v35 = vld [vmem:[%s1449_s28 + $0x50] sm:$0xf]  ;;  %1057 = vst [vmem:[%s1454_s29 + $0x14] sm:$0xf] %v1056_v33 }
  0x26   : > { %1059 = vst [vmem:[%s1454_s29 + $0x20] sm:$0xf] %v1058_v34  ;;  %1061 = vst [vmem:[%s1454_s29 + $0x2c] sm:$0xf] %v1060_v35  ;;  %v1062_v36 = vld [vmem:[%s1449_s28 + $0x68] sm:$0xf] }
  0x27   : > { %v1064_v37 = vld [vmem:[%s1449_s28 + $0x80] sm:$0xf]  ;;  %v1066_v38 = vld [vmem:[%s1449_s28 + $0x98] sm:$0xf]  ;;  %1063 = vst [vmem:[%s1454_s29 + $0x38] sm:$0xf] %v1062_v36 }
  0x28   : > { %1065 = vst [vmem:[%s1454_s29 + $0x44] sm:$0xf] %v1064_v37  ;;  %1067 = vst [vmem:[%s1454_s29 + $0x50] sm:$0xf] %v1066_v38  ;;  %v1068_v39 = vld [vmem:[%s1449_s28 + $0xb0] sm:$0xf] }
  0x29   : > { %v1070_v40 = vld [vmem:[%s1449_s28 + $0xc8] sm:$0xf]  ;;  %v1072_v41 = vld [vmem:[%s1449_s28 + $0xe0] sm:$0xf]  ;;  %1069 = vst [vmem:[%s1454_s29 + $0x5c] sm:$0xf] %v1068_v39 }
  0x2a   : > { %1071 = vst [vmem:[%s1454_s29 + $0x68] sm:$0xf] %v1070_v40  ;;  %1073 = vst [vmem:[%s1454_s29 + $0x74] sm:$0xf] %v1072_v41  ;;  %v1074_v42 = vld [vmem:[%s1449_s28 + $0xf8] sm:$0xf] }
  0x2b   : > { %v1076_v43 = vld [vmem:[%s1449_s28 + $0x110] sm:$0xf]  ;;  %v1078_v44 = vld [vmem:[%s1449_s28 + $0x128] sm:$0xf]  ;;  %1075 = vst [vmem:[%s1454_s29 + $0x80] sm:$0xf] %v1074_v42 }
  0x2c   : > { %1077 = vst [vmem:[%s1454_s29 + $0x8c] sm:$0xf] %v1076_v43  ;;  %1079 = vst [vmem:[%s1454_s29 + $0x98] sm:$0xf] %v1078_v44  ;;  %v1080_v45 = vld [vmem:[%s1449_s28 + $0x140] sm:$0xf] }
  0x2d   : > { %v1082_v46 = vld [vmem:[%s1449_s28 + $0x158] sm:$0xf]  ;;  %v1084_v47 = vld [vmem:[%s1449_s28 + $0x170] sm:$0xf]  ;;  %1081 = vst [vmem:[%s1454_s29 + $0xa4] sm:$0xf] %v1080_v45 }
  0x2e   : > { %1083 = vst [vmem:[%s1454_s29 + $0xb0] sm:$0xf] %v1082_v46  ;;  %1085 = vst [vmem:[%s1454_s29 + $0xbc] sm:$0xf] %v1084_v47  ;;  %v1086_v48 = vld [vmem:[%s1449_s28 + $0x188] sm:$0xf] }
  0x2f   : > { %v1088_v49 = vld [vmem:[%s1449_s28 + $0x1a0] sm:$0xf]  ;;  %v1090_v50 = vld [vmem:[%s1449_s28 + $0x1b8] sm:$0xf]  ;;  %1087 = vst [vmem:[%s1454_s29 + $0xc8] sm:$0xf] %v1086_v48 }
  0x30   : > { %1089 = vst [vmem:[%s1454_s29 + $0xd4] sm:$0xf] %v1088_v49  ;;  %1091 = vst [vmem:[%s1454_s29 + $0xe0] sm:$0xf] %v1090_v50  ;;  %v1092_v51 = vld [vmem:[%s1449_s28 + $0x1d0] sm:$0xf] }
  0x31   : > { %v1094_v52 = vld [vmem:[%s1449_s28 + $0x1e8] sm:$0xf]  ;;  %v1096_v53 = vld [vmem:[%s1449_s28 + $0x200] sm:$0xf]  ;;  %1093 = vst [vmem:[%s1454_s29 + $0xec] sm:$0xf] %v1092_v51 }
  0x32   : > { %1095 = vst [vmem:[%s1454_s29 + $0xf8] sm:$0xf] %v1094_v52  ;;  %1097 = vst [vmem:[%s1454_s29 + $0x104] sm:$0xf] %v1096_v53  ;;  %v1098_v54 = vld [vmem:[%s1449_s28 + $0x218] sm:$0xf] }
  0x33   : > { %v1100_v55 = vld [vmem:[%s1449_s28 + $0x230] sm:$0xf]  ;;  %v1102_v56 = vld [vmem:[%s1449_s28 + $0x248] sm:$0xf]  ;;  %1099 = vst [vmem:[%s1454_s29 + $0x110] sm:$0xf] %v1098_v54 }
  0x34   : > { %1101 = vst [vmem:[%s1454_s29 + $0x11c] sm:$0xf] %v1100_v55  ;;  %1103 = vst [vmem:[%s1454_s29 + $0x128] sm:$0xf] %v1102_v56  ;;  %v1104_v57 = vld [vmem:[%s1449_s28 + $0x260] sm:$0xf] }
  0x35   : > { %v1106_v58 = vld [vmem:[%s1449_s28 + $0x278] sm:$0xf]  ;;  %v1108_v59 = vld [vmem:[%s1449_s28 + $0x290] sm:$0xf]  ;;  %1105 = vst [vmem:[%s1454_s29 + $0x134] sm:$0xf] %v1104_v57 }
  0x36   : > { %1107 = vst [vmem:[%s1454_s29 + $0x140] sm:$0xf] %v1106_v58  ;;  %1109 = vst [vmem:[%s1454_s29 + $0x14c] sm:$0xf] %v1108_v59  ;;  %v1110_v60 = vld [vmem:[%s1449_s28 + $0x2a8] sm:$0xf] }
  0x37   : > { %v1112_v61 = vld [vmem:[%s1449_s28 + $0x2c0] sm:$0xf]  ;;  %v1114_v62 = vld [vmem:[%s1449_s28 + $0x2d8] sm:$0xf]  ;;  %1111 = vst [vmem:[%s1454_s29 + $0x158] sm:$0xf] %v1110_v60 }
  0x38   : > { %1113 = vst [vmem:[%s1454_s29 + $0x164] sm:$0xf] %v1112_v61  ;;  %1115 = vst [vmem:[%s1454_s29 + $0x170] sm:$0xf] %v1114_v62  ;;  %v1116_v63 = vld [vmem:[%s1449_s28 + $0x2f0] sm:$0xf] }
  0x39   : > { %1117 = vst [vmem:[%s1454_s29 + $0x17c] sm:$0xf] %v1116_v63 }
  0x3a PF: > { %p1118_p8 = scmp.ge.s32.totalorder %s1379_s16, 1  ;;  %p328_p9 = scmp.lt.s32.totalorder %s1379_s16, 3 }
  0x3c   : > { %p329_p10 = pnand %p1118_p8, %p328_p9 }
  0x3d   : > { %s335_s30 = sand.u32 (!%p329_p10), 1, %s1363_s12   ;;  %s375_s20 = smul.u32 (!%p329_p10), 3, %s1371_s14 }
  0x3e   : > { %332 = sbr.rel (%p329_p10) target bundleno = 353 (0x161), region = 54 }
  0x3f   : > { %s1229_s4 = smul.u32 (!%p329_p10), 384, %s335_s30  ;;  %p376_p11 = scmp.lt.s32.totalorder (!%p329_p10), %s375_s20, 5 }
  0x40   : > { %s1230_s26 = smul.u32 (!%p329_p10), 48, %s335_s30 }
  0x41   : > { %s1589_s7 = scalar_lea.vmem (!%p329_p10), [#allocation2], %s1229_s4 }
  0x42   : > { %s1654_s27 = scalar_lea.vmem (!%p329_p10), [#allocation3], %s1230_s26 }
  0x43   : > { %v1331_v0 = vld [vmem:[%s1693_s0 + $0x4] ss:$8 sps:$4 sm:$0xff]   ;;  %v1273_v2 = vld [vmem:[%s1589_s7 + $0xa8] ss:$12 sps:$4 sm:$0xff]   ;;  %v1276_v4 = vld [vmem:[%s1589_s7 + $0x90] ss:$12 sps:$4 sm:$0xff]   ;;  %v453_v52 = vlaneseq }
  0x44   : > { %829 = vmatprep.mubr.bf16.mxu1 %v1331_v0  ;;  %776 = vmatprep.mubr.bf16.mxu0 %v1331_v0  ;;  %v1271_v1 = vld [vmem:[%s1589_s7 + $0xac] ss:$12 sps:$4 sm:$0xff]   ;;  %v1274_v3 = vld [vmem:[%s1589_s7 + $0x94] ss:$12 sps:$4 sm:$0xff]   ;;  %v1277_v5 = vld [vmem:[%s1589_s7 + $0x7c] ss:$12 sps:$4 sm:$0xff]  }
  0x45   : > { %744 = vmatprep.subr.bf16.mxu0 %v1271_v1  ;;  %v1279_v6 = vld [vmem:[%s1589_s7 + $0x78] ss:$12 sps:$4 sm:$0xff]   ;;  %v1291_v8 = vld [vmem:[%s1589_s7 + $0x170] ss:$12 sps:$4 sm:$0xff]   ;;  %v1282_v9 = vld [vmem:[%s1589_s7 + $0x60] ss:$12 sps:$4 sm:$0xff]  }
  0x46   : > { %745 = vmatpush1.bf16.msra.mxu0 %v1273_v2  ;;  %v1280_v7 = vld [vmem:[%s1589_s7 + $0x64] ss:$12 sps:$4 sm:$0xff]   ;;  %1200 = vmatprep.subr.bf16.mxu1 %v1291_v8  ;;  %v1283_v11 = vld [vmem:[%s1589_s7 + $0x4c] ss:$12 sps:$4 sm:$0xff]   ;;  %v1285_v14 = vld [vmem:[%s1589_s7 + $0x48] ss:$12 sps:$4 sm:$0xff]  }
  0x47   : > { %746 = vmatprep.subr.bf16.mxu0 %v1274_v3  ;;  %v1293_v10 = vld [vmem:[%s1589_s7 + $0xb0] ss:$12 sps:$4 sm:$0xff]   ;;  %v1296_v12 = vld [vmem:[%s1589_s7 + $0x158] ss:$12 sps:$4 sm:$0xff]   ;;  %v1286_v15 = vld [vmem:[%s1589_s7 + $0x34] ss:$12 sps:$4 sm:$0xff]  }
  0x48   : > { %1201 = vmatpush3.bf16.msra.mxu1 %v1293_v10  ;;  %v1298_v13 = vld [vmem:[%s1589_s7 + $0x98] ss:$12 sps:$4 sm:$0xff]   ;;  %v1301_v16 = vld [vmem:[%s1589_s7 + $0x140] ss:$12 sps:$4 sm:$0xff]   ;;  %v1288_v18 = vld [vmem:[%s1589_s7 + $0x30] ss:$12 sps:$4 sm:$0xff]  }
  0x49   : > { %1202 = vmatprep.subr.bf16.mxu1 %v1296_v12  ;;  %v1303_v17 = vld [vmem:[%s1589_s7 + $0x80] ss:$12 sps:$4 sm:$0xff]   ;;  %v1306_v19 = vld [vmem:[%s1589_s7 + $0x128] ss:$12 sps:$4 sm:$0xff]   ;;  %v1292_v22 = vld [vmem:[%s1589_s7 + $0x18] ss:$12 sps:$4 sm:$0xff]  }
  0x4a   : > { %747 = vmatpush1.bf16.msra.mxu0 %v1276_v4  ;;  %v1289_v20 = vld [vmem:[%s1589_s7 + $0x1c] ss:$12 sps:$4 sm:$0xff]   ;;  %v1294_v24 = vld [vmem:[%s1589_s7 + $0x4] ss:$12 sps:$4 sm:$0xff]   ;;  %v1297_v27 = vld [vmem:[%s1589_s7] ss:$12 sps:$4 sm:$0xff]  }
  0x4b   : > { %748 = vmatprep.subr.bf16.mxu0 %v1277_v5  ;;  %v1308_v21 = vld [vmem:[%s1589_s7 + $0x68] ss:$12 sps:$4 sm:$0xff]   ;;  %v1311_v23 = vld [vmem:[%s1589_s7 + $0x110] ss:$12 sps:$4 sm:$0xff]   ;;  %v1316_v26 = vld [vmem:[%s1589_s7 + $0xf8] ss:$12 sps:$4 sm:$0xff]  }
  0x4c   : > { %1203 = vmatpush3.bf16.msra.mxu1 %v1298_v13  ;;  %v1313_v25 = vld [vmem:[%s1589_s7 + $0x50] ss:$12 sps:$4 sm:$0xff]   ;;  %v1299_v28 = vld [vmem:[%s1589_s7 + $0x16c] ss:$12 sps:$4 sm:$0xff]   ;;  %v1302_v31 = vld [vmem:[%s1589_s7 + $0x168] ss:$12 sps:$4 sm:$0xff]  }
  0x4d   : > { %1204 = vmatprep.subr.bf16.mxu1 %v1301_v16  ;;  %v1318_v29 = vld [vmem:[%s1589_s7 + $0x38] ss:$12 sps:$4 sm:$0xff]   ;;  %v1321_v30 = vld [vmem:[%s1589_s7 + $0xe0] ss:$12 sps:$4 sm:$0xff]   ;;  %v1326_v34 = vld [vmem:[%s1589_s7 + $0xc8] ss:$12 sps:$4 sm:$0xff]  }
  0x4e   : > { %749 = vmatpush1.bf16.msra.mxu0 %v1279_v6  ;;  %v1304_v32 = vld [vmem:[%s1589_s7 + $0x154] ss:$12 sps:$4 sm:$0xff]   ;;  %v1307_v35 = vld [vmem:[%s1589_s7 + $0x150] ss:$12 sps:$4 sm:$0xff]   ;;  %v1312_v38 = vld [vmem:[%s1589_s7 + $0x138] ss:$12 sps:$4 sm:$0xff]  }
  0x4f   : > { %750 = vmatprep.subr.bf16.mxu0 %v1280_v7  ;;  %v1323_v33 = vld [vmem:[%s1589_s7 + $0x20] ss:$12 sps:$4 sm:$0xff]   ;;  %v1309_v36 = vld [vmem:[%s1589_s7 + $0x13c] ss:$12 sps:$4 sm:$0xff]   ;;  %v1314_v39 = vld [vmem:[%s1589_s7 + $0x124] ss:$12 sps:$4 sm:$0xff]  }
  0x50   : > { %1205 = vmatpush3.bf16.msra.mxu1 %v1303_v17  ;;  %v1328_v37 = vld [vmem:[%s1589_s7 + $0x8] ss:$12 sps:$4 sm:$0xff]   ;;  %v1317_v42 = vld [vmem:[%s1589_s7 + $0x120] ss:$12 sps:$4 sm:$0xff]   ;;  %v1340_v46 = vld [vmem:[%s1693_s0 + $0x10] ss:$8 sps:$4 sm:$0xff]  }
  0x51   : > { %1206 = vmatprep.subr.bf16.mxu1 %v1306_v19  ;;  %v1329_v40 = vld [vmem:[%s1693_s0] ss:$8 sps:$4 sm:$0xff]   ;;  %v1338_v41 = vld [vmem:[%s1693_s0 + $0x14] ss:$8 sps:$4 sm:$0xff]   ;;  %v1319_v43 = vld [vmem:[%s1589_s7 + $0x10c] ss:$12 sps:$4 sm:$0xff]  }
  0x52   : > { %751 = vmatpush1.bf16.msra.mxu0 %v1282_v9  ;;  %v1322_v44 = vld [vmem:[%s1589_s7 + $0x108] ss:$12 sps:$4 sm:$0xff]   ;;  %v1327_v47 = vld [vmem:[%s1589_s7 + $0xf0] ss:$12 sps:$4 sm:$0xff]   ;;  %v1334_v49 = vld [vmem:[%s1589_s7 + $0xd8] ss:$12 sps:$4 sm:$0xff]  }
  0x53   : > { %752 = vmatprep.subr.bf16.mxu0 %v1283_v11  ;;  %v1324_v45 = vld [vmem:[%s1589_s7 + $0xf4] ss:$12 sps:$4 sm:$0xff]   ;;  %v1332_v48 = vld [vmem:[%s1589_s7 + $0xdc] ss:$12 sps:$4 sm:$0xff]   ;;  %v1335_v50 = vld [vmem:[%s1589_s7 + $0xc4] ss:$12 sps:$4 sm:$0xff]  }
  0x54   : > { %1207 = vmatpush3.bf16.msra.mxu1 %v1308_v21  ;;  %v1337_v51 = vld [vmem:[%s1589_s7 + $0xc0] ss:$12 sps:$4 sm:$0xff]   ;;  %s1705_s20 = smov (!%p376_p11, %s375_s20), 5  ;;  %v454_v53 = vshrl.u32 %v453_v52, 7  ;;  %s1199_s12 = smul.u32 (%p1436_p6), 12, %s1371_s14 }
  0x55   : > { %1208 = vmatprep.subr.bf16.mxu1 %v1311_v23  ;;  %s378_s25 = scalar_lea.vmem %s1695_s2, %s1705_s20 }
  0x56   : > { %753 = vmatpush1.bf16.msra.mxu0 %v1285_v14  ;;  %v463_v54 = vsub.s32 2, %v454_v53  ;;  %v451_v55 = vld [vmem:[%s378_s25] sm:$0x7]  ;;  %v455_v11 = vsub.s32 0, %v454_v53  ;;  %v459_v12 = vsub.s32 1, %v454_v53  ;;  %s906_s21 = scalar_lea.vmem (%p1436_p6), %s1696_s3, %s1199_s12 }
  0x57   : > { %754 = vmatprep.subr.bf16.mxu0 %v1286_v15 }
  0x58   : > { %1209 = vmatpush3.bf16.msra.mxu1 %v1313_v25  ;;  %v464_v57 = vrot.slane %v451_v55, %v463_v54  ;;  %v456_v15 = vrot.slane %v451_v55, %v455_v11  ;;  %v460_v16 = vrot.slane %v451_v55, %v459_v12 }
  0x59   : > { %1210 = vmatprep.subr.bf16.mxu1 %v1316_v26 }
  0x5a   : > { %755 = vmatpush1.bf16.msra.mxu0 %v1288_v18 }
  0x5b   : > { %756 = vmatprep.subr.bf16.mxu0 %v1289_v20 }
  0x5c   : > { %1211 = vmatpush3.bf16.msra.mxu1 %v1318_v29 }
  0x5d   : > { %1212 = vmatprep.subr.bf16.mxu1 %v1321_v30 }
  0x5e   : > { %757 = vmatpush1.bf16.msra.mxu0 %v1292_v22 }
  0x5f   : > { %758 = vmatprep.subr.bf16.mxu0 %v1294_v24 }
  0x60   : > { %1213 = vmatpush3.bf16.msra.mxu1 %v1323_v33 }
  0x61   : > { %1214 = vmatprep.subr.bf16.mxu1 %v1326_v34 }
  0x62   : > { %759 = vmatpush1.bf16.msra.mxu0 %v1297_v27 }
  0x63   : > { %760 = vmatprep.subr.bf16.mxu0 %v1299_v28 }
  0x64   : > { %1215 = vmatpush3.bf16.msra.mxu1 %v1328_v37 }
  0x66   : > { %761 = vmatpush2.bf16.msra.mxu0 %v1302_v31 }
  0x67   : > { %762 = vmatprep.subr.bf16.mxu0 %v1304_v32  ;;  %830 = vmatmul.mubr.bf16.vlgmr.msra.gmra.mxu1 %v1329_v40 }
  0x68   : > { %837 = vmatprep.mubr.bf16.mxu1 %v1338_v41 }
  0x6a   : > { %763 = vmatpush2.bf16.msra.mxu0 %v1307_v35 }
  0x6b   : > { %764 = vmatprep.subr.bf16.mxu0 %v1309_v36 }
  0x6e   : > { %765 = vmatpush2.bf16.msra.mxu0 %v1312_v38 }
  0x6f   : > { %766 = vmatprep.subr.bf16.mxu0 %v1314_v39  ;;  %838 = vmatmul.mubr.bf16.gmra.mxu1 %v1340_v46 }
  0x72   : > { %767 = vmatpush2.bf16.msra.mxu0 %v1317_v42 }
  0x73   : > { %768 = vmatprep.subr.bf16.mxu0 %v1319_v43 }
  0x76   : > { %769 = vmatpush2.bf16.msra.mxu0 %v1322_v44 }
  0x77   : > { %770 = vmatprep.subr.bf16.mxu0 %v1324_v45 }
  0x7a   : > { %771 = vmatpush2.bf16.msra.mxu0 %v1327_v47 }
  0x7b   : > { %772 = vmatprep.subr.bf16.mxu0 %v1332_v48 }
  0x7e   : > { %773 = vmatpush2.bf16.msra.mxu0 %v1334_v49 }
  0x7f   : > { %774 = vmatprep.subr.bf16.mxu0 %v1335_v50 }
  0x82   : > { %775 = vmatpush2.bf16.msra.mxu0 %v1337_v51 }
  0x85   : > { %777 = vmatmul.mubr.bf16.vlgmr.msra.gmra.mxu0 %v1329_v40 }
  0x86   : > { %786 = vmatprep.mubr.bf16.mxu0 %v1338_v41 }
  0x8d   : > { %787 = vmatmul.mubr.bf16.gmra.mxu0 %v1340_v46 }
 0x127   : > { %v1216_v56 = vpop.f32.mrf.mxu1 }
 0x129   : > { %v1217_v58 = vpop.f32.mrf.mxu1 }
 0x12a   : > { %v1218_v59 = vadd.f32 %v1217_v58, %v1216_v56 }
 0x12b   : > { %v1219_v60 = vpop.f32.mrf.mxu1 }
 0x12c   : > { %v832_v61 = vadd.f32 %v1218_v59, %v464_v57 }
 0x12d   : > { %v1220_v62 = vpop.f32.mrf.mxu1 }
 0x12e   : > { %v1192_v63 = vpack.c.bf16 %v832_v61, %v832_v61  ;;  %v1221_v0 = vadd.f32 %v1220_v62, %v1219_v60 }
 0x12f   : > { %v1222_v1 = vpop.f32.mrf.mxu1 }
 0x130   : > { %887 = vst [vmem:[%s1654_s27 + $0x8] sm:$0xf] %v1192_v63  ;;  %v835_v2 = vadd.f32 %v1221_v0, %v464_v57 }
 0x131   : > { %v1223_v3 = vpop.f32.mrf.mxu1 }
 0x132   : > { %v1194_v4 = vpack.c.bf16 %v835_v2, %v835_v2  ;;  %v1224_v5 = vadd.f32 %v1223_v3, %v1222_v1 }
 0x133   : > { %v1225_v6 = vpop.f32.mrf.mxu1 }
 0x134   : > { %889 = vst [vmem:[%s1654_s27 + $0x14] sm:$0xf] %v1194_v4  ;;  %v840_v7 = vadd.f32 %v1224_v5, %v464_v57 }
 0x135   : > { %v1226_v8 = vpop.f32.mrf.mxu1 }
 0x136   : > { %v1196_v9 = vpack.c.bf16 %v840_v7, %v840_v7  ;;  %v1227_v10 = vadd.f32 %v1226_v8, %v1225_v6 }
 0x137   : > { %v1180_v41 = vld [vmem:[%s1654_s27 + $0x8] sm:$0xf] (%p1436_p6) }
 0x138   : > { %891 = vst [vmem:[%s1654_s27 + $0x20] sm:$0xf] %v1196_v9  ;;  %v843_v13 = vadd.f32 %v1227_v10, %v464_v57  ;;  %1181 = vst [vmem:[%s906_s21 + $0x8] sm:$0xf] (%p1436_p6), %v1180_v41 }
 0x13a   : > { %v1198_v14 = vpack.c.bf16 %v843_v13, %v843_v13 }
 0x13b   : > { %v1182_v42 = vld [vmem:[%s1654_s27 + $0x14] sm:$0xf] (%p1436_p6) }
 0x13c   : > { %893 = vst [vmem:[%s1654_s27 + $0x2c] sm:$0xf] %v1198_v14  ;;  %1183 = vst [vmem:[%s906_s21 + $0x20] sm:$0xf] (%p1436_p6), %v1182_v42 }
 0x13f   : > { %v1184_v43 = vld [vmem:[%s1654_s27 + $0x20] sm:$0xf] (%p1436_p6) }
 0x140   : > { %1185 = vst [vmem:[%s906_s21 + $0x38] sm:$0xf] (%p1436_p6), %v1184_v43 }
 0x143   : > { %v1186_v44 = vld [vmem:[%s1654_s27 + $0x2c] sm:$0xf] (%p1436_p6) }
 0x144   : > { %1187 = vst [vmem:[%s906_s21 + $0x50] sm:$0xf] (%p1436_p6), %v1186_v44 }
 0x145   : > { %v778_v17 = vpop.f32.mrf.mxu0 }
 0x146   : > { %v779_v19 = vadd.f32 %v778_v17, %v456_v15 }
 0x147   : > { %v780_v18 = vpop.f32.mrf.mxu0 }
 0x148   : > { %v781_v20 = vadd.f32 %v780_v18, %v460_v16 }
 0x149   : > { %v782_v21 = vpop.f32.mrf.mxu0 }
 0x14a   : > { %v1191_v22 = vpack.c.bf16 %v781_v20, %v779_v19  ;;  %v783_v24 = vadd.f32 %v782_v21, %v456_v15 }
 0x14b   : > { %v784_v23 = vpop.f32.mrf.mxu0 }
 0x14c   : > { %886 = vst [vmem:[%s1654_s27] sm:$0xff] %v1191_v22  ;;  %v785_v25 = vadd.f32 %v784_v23, %v460_v16 }
 0x14d   : > { %v788_v26 = vpop.f32.mrf.mxu0 }
 0x14e   : > { %v1193_v27 = vpack.c.bf16 %v785_v25, %v783_v24  ;;  %v789_v29 = vadd.f32 %v788_v26, %v456_v15 }
 0x14f   : > { %v790_v28 = vpop.f32.mrf.mxu0 }
 0x150   : > { %888 = vst [vmem:[%s1654_s27 + $0xc] sm:$0xff] %v1193_v27  ;;  %v791_v30 = vadd.f32 %v790_v28, %v460_v16 }
 0x151   : > { %v792_v31 = vpop.f32.mrf.mxu0 }
 0x152   : > { %v1195_v32 = vpack.c.bf16 %v791_v30, %v789_v29  ;;  %v793_v34 = vadd.f32 %v792_v31, %v456_v15 }
 0x153   : > { %v794_v33 = vpop.f32.mrf.mxu0  ;;  %v921_v37 = vld [vmem:[%s1654_s27] sm:$0xff] (%p1436_p6) }
 0x154   : > { %890 = vst [vmem:[%s1654_s27 + $0x18] sm:$0xff] %v1195_v32  ;;  %v795_v35 = vadd.f32 %v794_v33, %v460_v16  ;;  %900 = sbr.rel (!%p1436_p6) target bundleno = 353 (0x161), region = 62  ;;  %922 = vst [vmem:[%s906_s21] sm:$0xff] (%p1436_p6), %v921_v37 }
 0x156   : > { %v1197_v36 = vpack.c.bf16 %v795_v35, %v793_v34 }
 0x157   : > { %v923_v38 = vld [vmem:[%s1654_s27 + $0xc] sm:$0xff] (%p1436_p6) }
 0x158   : > { %892 = vst [vmem:[%s1654_s27 + $0x24] sm:$0xff] %v1197_v36  ;;  %924 = vst [vmem:[%s906_s21 + $0x18] sm:$0xff] (%p1436_p6), %v923_v38 }
 0x15b   : > { %v925_v39 = vld [vmem:[%s1654_s27 + $0x18] sm:$0xff] }
 0x15c   : > { %926 = vst [vmem:[%s906_s21 + $0x30] sm:$0xff] %v925_v39 }
 0x15f   : > { %v927_v40 = vld [vmem:[%s1654_s27 + $0x24] sm:$0xff] }
 0x160   : > { %928 = vst [vmem:[%s906_s21 + $0x48] sm:$0xff] %v927_v40 }
 0x161 PF: > { %s13_s16 = sadd.s32 1, %s1379_s16   ;;  %s1698_s12 = smov %s1367_s13 }
 0x162   : > { %p10_p12 = scmp.ge.s32.totalorder %s13_s16, 4   ;;  %s1699_s13 = smov %s1441_s22 }
 0x163   : > { %s1700_s14 = smov %s1375_s15  ;;  %s1701_s15 = smov %s1703_s17 }
 0x164   :  { %12 = sbr.rel (!%p10_p12) target bundleno = 3 (0x3), region = 137 }

// kernel: bert_embedding_forward.16
= control target key start
LH: loop header
LB: loop body
LE: loop exit
PB: predicated region body
PF: predicated region fallthrough
CT: control target
= control target key end

     0   :  { %s1220_s1 = inlined_call_operand.vmem [shape: bf16[512,256], index: 1, kind: input, shape index: {}]   ;;  %s1221_s0 = inlined_call_operand.vmem [shape: bf16[32,512], index: 0, kind: input, shape index: {}]   ;;  %s1222_s2 = inlined_call_operand.vmem [shape: f32[1,256], index: 2, kind: input, shape index: {}]   ;;  %s1223_s3 = inlined_call_operand.vmem [shape: bf16[32,256], index: 3, kind: input, shape index: {}]   ;;  %s1224_s4 = inlined_call_operand.vmem [shape: f32[1,256], index: 4, kind: input, shape index: {}]   ;;  %s1225_s5 = inlined_call_operand.vmem [shape: f32[1,256], index: 5, kind: input, shape index: {}]   ;;  %s1226_s6 = inlined_call_operand.vmem [shape: bf16[32,256], index: 6, kind: output, shape index: {}]  }
   0x1   :  { %v810_v0 = vld [vmem:[%s1220_s1 + $0x74] ss:$8 sps:$4 sm:$0xff]   ;;  %v814_v2 = vld [vmem:[%s1220_s1 + $0x70] ss:$8 sps:$4 sm:$0xff]   ;;  %v816_v4 = vld [vmem:[%s1220_s1 + $0x64] ss:$8 sps:$4 sm:$0xff]  }
   0x2   :  { %v812_v1 = vld [vmem:[%s1220_s1 + $0x174] ss:$8 sps:$4 sm:$0xff]   ;;  %467 = vmatprep.subr.bf16.mxu0 %v810_v0  ;;  %v815_v3 = vld [vmem:[%s1220_s1 + $0x170] ss:$8 sps:$4 sm:$0xff]   ;;  %v818_v5 = vld [vmem:[%s1220_s1 + $0x164] ss:$8 sps:$4 sm:$0xff]  }
   0x3   :  { %520 = vmatprep.subr.bf16.mxu1 %v812_v1  ;;  %468 = vmatpush1.bf16.msra.mxu0 %v814_v2  ;;  %v820_v6 = vld [vmem:[%s1220_s1 + $0x60] ss:$8 sps:$4 sm:$0xff]   ;;  %v822_v8 = vld [vmem:[%s1220_s1 + $0x54] ss:$8 sps:$4 sm:$0xff]   ;;  %v826_v10 = vld [vmem:[%s1220_s1 + $0x50] ss:$8 sps:$4 sm:$0xff]  }
   0x4   :  { %521 = vmatpush1.bf16.msra.mxu1 %v815_v3  ;;  %469 = vmatprep.subr.bf16.mxu0 %v816_v4  ;;  %v821_v7 = vld [vmem:[%s1220_s1 + $0x160] ss:$8 sps:$4 sm:$0xff]   ;;  %v824_v9 = vld [vmem:[%s1220_s1 + $0x154] ss:$8 sps:$4 sm:$0xff]   ;;  %v827_v11 = vld [vmem:[%s1220_s1 + $0x150] ss:$8 sps:$4 sm:$0xff]  }
   0x5   :  { %522 = vmatprep.subr.bf16.mxu1 %v818_v5  ;;  %v828_v12 = vld [vmem:[%s1220_s1 + $0x44] ss:$8 sps:$4 sm:$0xff]   ;;  %v832_v14 = vld [vmem:[%s1220_s1 + $0x40] ss:$8 sps:$4 sm:$0xff]   ;;  %v834_v16 = vld [vmem:[%s1220_s1 + $0x34] ss:$8 sps:$4 sm:$0xff]  }
   0x6   :  { %v830_v13 = vld [vmem:[%s1220_s1 + $0x144] ss:$8 sps:$4 sm:$0xff]   ;;  %v833_v15 = vld [vmem:[%s1220_s1 + $0x140] ss:$8 sps:$4 sm:$0xff]   ;;  %v836_v17 = vld [vmem:[%s1220_s1 + $0x134] ss:$8 sps:$4 sm:$0xff]  }
   0x7   :  { %470 = vmatpush1.bf16.msra.mxu0 %v820_v6  ;;  %v838_v18 = vld [vmem:[%s1220_s1 + $0x30] ss:$8 sps:$4 sm:$0xff]   ;;  %v840_v20 = vld [vmem:[%s1220_s1 + $0x24] ss:$8 sps:$4 sm:$0xff]   ;;  %v844_v22 = vld [vmem:[%s1220_s1 + $0x20] ss:$8 sps:$4 sm:$0xff]  }
   0x8   :  { %523 = vmatpush1.bf16.msra.mxu1 %v821_v7  ;;  %471 = vmatprep.subr.bf16.mxu0 %v822_v8  ;;  %v839_v19 = vld [vmem:[%s1220_s1 + $0x130] ss:$8 sps:$4 sm:$0xff]   ;;  %v842_v21 = vld [vmem:[%s1220_s1 + $0x124] ss:$8 sps:$4 sm:$0xff]   ;;  %v845_v23 = vld [vmem:[%s1220_s1 + $0x120] ss:$8 sps:$4 sm:$0xff]   ;;  %v97_v8 = vlaneseq }
   0x9   :  { %524 = vmatprep.subr.bf16.mxu1 %v824_v9  ;;  %v846_v24 = vld [vmem:[%s1220_s1 + $0x14] ss:$8 sps:$4 sm:$0xff]   ;;  %v850_v26 = vld [vmem:[%s1220_s1 + $0x10] ss:$8 sps:$4 sm:$0xff]   ;;  %v852_v28 = vld [vmem:[%s1220_s1 + $0x4] ss:$8 sps:$4 sm:$0xff]  }
   0xa   :  { %v848_v25 = vld [vmem:[%s1220_s1 + $0x114] ss:$8 sps:$4 sm:$0xff]   ;;  %v851_v27 = vld [vmem:[%s1220_s1 + $0x110] ss:$8 sps:$4 sm:$0xff]   ;;  %v854_v29 = vld [vmem:[%s1220_s1 + $0x104] ss:$8 sps:$4 sm:$0xff]  }
   0xb   :  { %472 = vmatpush1.bf16.msra.mxu0 %v826_v10  ;;  %v856_v30 = vld [vmem:[%s1220_s1] ss:$8 sps:$4 sm:$0xff]   ;;  %v858_v32 = vld [vmem:[%s1220_s1 + $0xf4] ss:$8 sps:$4 sm:$0xff]   ;;  %v862_v34 = vld [vmem:[%s1220_s1 + $0xf0] ss:$8 sps:$4 sm:$0xff]  }
   0xc   :  { %525 = vmatpush1.bf16.msra.mxu1 %v827_v11  ;;  %473 = vmatprep.subr.bf16.mxu0 %v828_v12  ;;  %v857_v31 = vld [vmem:[%s1220_s1 + $0x100] ss:$8 sps:$4 sm:$0xff]   ;;  %v860_v33 = vld [vmem:[%s1220_s1 + $0x1f4] ss:$8 sps:$4 sm:$0xff]   ;;  %v863_v35 = vld [vmem:[%s1220_s1 + $0x1f0] ss:$8 sps:$4 sm:$0xff]  }
   0xd   :  { %526 = vmatprep.subr.bf16.mxu1 %v830_v13  ;;  %v864_v36 = vld [vmem:[%s1220_s1 + $0xe4] ss:$8 sps:$4 sm:$0xff]   ;;  %v868_v38 = vld [vmem:[%s1220_s1 + $0xe0] ss:$8 sps:$4 sm:$0xff]   ;;  %v870_v40 = vld [vmem:[%s1220_s1 + $0xd4] ss:$8 sps:$4 sm:$0xff]  }
   0xe   :  { %v866_v37 = vld [vmem:[%s1220_s1 + $0x1e4] ss:$8 sps:$4 sm:$0xff]   ;;  %v869_v39 = vld [vmem:[%s1220_s1 + $0x1e0] ss:$8 sps:$4 sm:$0xff]   ;;  %v872_v41 = vld [vmem:[%s1220_s1 + $0x1d4] ss:$8 sps:$4 sm:$0xff]  }
   0xf   :  { %474 = vmatpush1.bf16.msra.mxu0 %v832_v14  ;;  %v874_v42 = vld [vmem:[%s1220_s1 + $0xd0] ss:$8 sps:$4 sm:$0xff]   ;;  %v876_v44 = vld [vmem:[%s1220_s1 + $0xc4] ss:$8 sps:$4 sm:$0xff]   ;;  %v880_v46 = vld [vmem:[%s1220_s1 + $0xc0] ss:$8 sps:$4 sm:$0xff]  }
  0x10   :  { %527 = vmatpush1.bf16.msra.mxu1 %v833_v15  ;;  %475 = vmatprep.subr.bf16.mxu0 %v834_v16  ;;  %v875_v43 = vld [vmem:[%s1220_s1 + $0x1d0] ss:$8 sps:$4 sm:$0xff]   ;;  %v878_v45 = vld [vmem:[%s1220_s1 + $0x1c4] ss:$8 sps:$4 sm:$0xff]   ;;  %v881_v47 = vld [vmem:[%s1220_s1 + $0x1c0] ss:$8 sps:$4 sm:$0xff]  }
  0x11   :  { %528 = vmatprep.subr.bf16.mxu1 %v836_v17  ;;  %v882_v48 = vld [vmem:[%s1220_s1 + $0xb4] ss:$8 sps:$4 sm:$0xff]   ;;  %v886_v52 = vld [vmem:[%s1220_s1 + $0xb0] ss:$8 sps:$4 sm:$0xff]   ;;  %v888_v54 = vld [vmem:[%s1220_s1 + $0xa4] ss:$8 sps:$4 sm:$0xff]  }
  0x12   :  { %v908_v49 = vld [vmem:[%s1221_s0 + $0x4] ss:$16 sps:$4 sm:$0xff]   ;;  %v911_v51 = vld [vmem:[%s1221_s0 + $0xc] ss:$16 sps:$4 sm:$0xff]   ;;  %v887_v53 = vld [vmem:[%s1220_s1 + $0x1b0] ss:$8 sps:$4 sm:$0xff]  }
  0x13   :  { %476 = vmatpush1.bf16.msra.mxu0 %v838_v18  ;;  %v884_v50 = vld [vmem:[%s1220_s1 + $0x1b4] ss:$8 sps:$4 sm:$0xff]   ;;  %499 = vmatprep.mubr.bf16.mxu0 %v908_v49  ;;  %v890_v55 = vld [vmem:[%s1220_s1 + $0x1a4] ss:$8 sps:$4 sm:$0xff]   ;;  %v892_v56 = vld [vmem:[%s1220_s1 + $0xa0] ss:$8 sps:$4 sm:$0xff]  }
  0x14   :  { %529 = vmatpush1.bf16.msra.mxu1 %v839_v19  ;;  %477 = vmatprep.subr.bf16.mxu0 %v840_v20  ;;  %v893_v57 = vld [vmem:[%s1220_s1 + $0x1a0] ss:$8 sps:$4 sm:$0xff]   ;;  %v894_v58 = vld [vmem:[%s1220_s1 + $0x94] ss:$8 sps:$4 sm:$0xff]   ;;  %v898_v60 = vld [vmem:[%s1220_s1 + $0x90] ss:$8 sps:$4 sm:$0xff]  }
  0x15   :  { %530 = vmatprep.subr.bf16.mxu1 %v842_v21  ;;  %552 = vmatprep.mubr.bf16.mxu1 %v911_v51  ;;  %v896_v59 = vld [vmem:[%s1220_s1 + $0x194] ss:$8 sps:$4 sm:$0xff]   ;;  %v899_v61 = vld [vmem:[%s1220_s1 + $0x190] ss:$8 sps:$4 sm:$0xff]   ;;  %v900_v62 = vld [vmem:[%s1220_s1 + $0x84] ss:$8 sps:$4 sm:$0xff]  }
  0x16   :  { %v902_v63 = vld [vmem:[%s1220_s1 + $0x184] ss:$8 sps:$4 sm:$0xff]   ;;  %v904_v0 = vld [vmem:[%s1220_s1 + $0x80] ss:$8 sps:$4 sm:$0xff]   ;;  %v98_v9 = vshrl.u32 %v97_v8, 7 }
  0x17   :  { %478 = vmatpush1.bf16.msra.mxu0 %v844_v22  ;;  %v905_v1 = vld [vmem:[%s1220_s1 + $0x180] ss:$8 sps:$4 sm:$0xff]   ;;  %v912_v4 = vld [vmem:[%s1221_s0 + $0x24] ss:$16 sps:$4 sm:$0xff]   ;;  %v914_v5 = vld [vmem:[%s1221_s0 + $0x2c] ss:$16 sps:$4 sm:$0xff]  }
  0x18   :  { %531 = vmatpush1.bf16.msra.mxu1 %v845_v23  ;;  %479 = vmatprep.subr.bf16.mxu0 %v846_v24  ;;  %v906_v2 = vld [vmem:[%s1221_s0] ss:$16 sps:$4 sm:$0xff]   ;;  %v909_v3 = vld [vmem:[%s1221_s0 + $0x8] ss:$16 sps:$4 sm:$0xff]   ;;  %v1177_v10 = vsub.s32 0, %v98_v9  ;;  %v1182_v12 = vsub.s32 1, %v98_v9 }
  0x19   :  { %532 = vmatprep.subr.bf16.mxu1 %v848_v25  ;;  %v916_v6 = vld [vmem:[%s1221_s0 + $0x20] ss:$16 sps:$4 sm:$0xff]   ;;  %v917_v7 = vld [vmem:[%s1221_s0 + $0x28] ss:$16 sps:$4 sm:$0xff]  }
  0x1a   :  { %v95_v11 = vld [vmem:[%s1222_s2] sm:$0x3]  ;;  %v574_v23 = vld [vmem:[%s1223_s3 + $0x8] sm:$0xff] }
  0x1b   :  { %480 = vmatpush1.bf16.msra.mxu0 %v850_v26  ;;  %v100_v13 = vrot.slane %v95_v11, %v1177_v10  ;;  %v104_v14 = vrot.slane %v95_v11, %v1182_v12  ;;  %v573_v17 = vld [vmem:[%s1223_s3] sm:$0xff] }
  0x1c   :  { %533 = vmatpush1.bf16.msra.mxu1 %v851_v27  ;;  %481 = vmatprep.subr.bf16.mxu0 %v852_v28  ;;  %v577_v24 = vunpack.c.l.bf16 %v573_v17  ;;  %v578_v25 = vunpack.c.h.bf16 %v573_v17 }
  0x1d   :  { %534 = vmatprep.subr.bf16.mxu1 %v854_v29 }
  0x1f   :  { %482 = vmatpush1.bf16.msra.mxu0 %v856_v30  ;;  %v579_v30 = vunpack.c.l.bf16 %v574_v23 }
  0x20   :  { %535 = vmatpush1.bf16.msra.mxu1 %v857_v31  ;;  %483 = vmatprep.subr.bf16.mxu0 %v858_v32 }
  0x21   :  { %536 = vmatprep.subr.bf16.mxu1 %v860_v33  ;;  %v580_v33 = vunpack.c.h.bf16 %v574_v23 }
  0x23   :  { %484 = vmatpush2.bf16.msra.mxu0 %v862_v34 }
  0x24   :  { %537 = vmatpush2.bf16.msra.mxu1 %v863_v35  ;;  %485 = vmatprep.subr.bf16.mxu0 %v864_v36 }
  0x25   :  { %538 = vmatprep.subr.bf16.mxu1 %v866_v37 }
  0x27   :  { %486 = vmatpush2.bf16.msra.mxu0 %v868_v38  ;;  %v575_v38 = vld [vmem:[%s1223_s3 + $0x10] sm:$0xff] }
  0x28   :  { %539 = vmatpush2.bf16.msra.mxu1 %v869_v39  ;;  %487 = vmatprep.subr.bf16.mxu0 %v870_v40 }
  0x29   :  { %540 = vmatprep.subr.bf16.mxu1 %v872_v41 }
  0x2b   :  { %488 = vmatpush2.bf16.msra.mxu0 %v874_v42 }
  0x2c   :  { %541 = vmatpush2.bf16.msra.mxu1 %v875_v43  ;;  %489 = vmatprep.subr.bf16.mxu0 %v876_v44 }
  0x2d   :  { %542 = vmatprep.subr.bf16.mxu1 %v878_v45 }
  0x2f   :  { %490 = vmatpush2.bf16.msra.mxu0 %v880_v46  ;;  %v581_v46 = vunpack.c.l.bf16 %v575_v38 }
  0x30   :  { %543 = vmatpush2.bf16.msra.mxu1 %v881_v47  ;;  %491 = vmatprep.subr.bf16.mxu0 %v882_v48  ;;  %v582_v47 = vunpack.c.h.bf16 %v575_v38 }
  0x31   :  { %544 = vmatprep.subr.bf16.mxu1 %v884_v50 }
  0x33   :  { %492 = vmatpush2.bf16.msra.mxu0 %v886_v52  ;;  %v576_v52 = vld [vmem:[%s1223_s3 + $0x18] sm:$0xff] }
  0x34   :  { %545 = vmatpush2.bf16.msra.mxu1 %v887_v53  ;;  %493 = vmatprep.subr.bf16.mxu0 %v888_v54 }
  0x35   :  { %546 = vmatprep.subr.bf16.mxu1 %v890_v55 }
  0x37   :  { %494 = vmatpush2.bf16.msra.mxu0 %v892_v56 }
  0x38   :  { %547 = vmatpush2.bf16.msra.mxu1 %v893_v57  ;;  %495 = vmatprep.subr.bf16.mxu0 %v894_v58  ;;  %v583_v58 = vunpack.c.l.bf16 %v576_v52 }
  0x39   :  { %548 = vmatprep.subr.bf16.mxu1 %v896_v59 }
  0x3b   :  { %496 = vmatpush2.bf16.msra.mxu0 %v898_v60  ;;  %v584_v60 = vunpack.c.h.bf16 %v576_v52 }
  0x3c   :  { %549 = vmatpush2.bf16.msra.mxu1 %v899_v61  ;;  %497 = vmatprep.subr.bf16.mxu0 %v900_v62 }
  0x3d   :  { %550 = vmatprep.subr.bf16.mxu1 %v902_v63 }
  0x3f   :  { %498 = vmatpush2.bf16.msra.mxu0 %v904_v0 }
  0x40   :  { %551 = vmatpush2.bf16.msra.mxu1 %v905_v1 }
  0x42   :  { %500 = vmatmul.mubr.bf16.vlgmr.msra.gmra.mxu0 %v906_v2 }
  0x43   :  { %553 = vmatmul.mubr.bf16.vlgmr.msra.gmra.mxu1 %v909_v3  ;;  %509 = vmatprep.mubr.bf16.mxu0 %v912_v4 }
  0x44   :  { %562 = vmatprep.mubr.bf16.mxu1 %v914_v5 }
  0x4a   :  { %510 = vmatmul.mubr.bf16.gmra.mxu0 %v916_v6 }
  0x4b   :  { %563 = vmatmul.mubr.bf16.gmra.mxu1 %v917_v7 }
 0x102   :  { %v501_v15 = vpop.f32.mrf.mxu0 }
 0x103   :  { %v554_v16 = vpop.f32.mrf.mxu1  ;;  %v502_v18 = vadd.f32 %v501_v15, %v100_v13 }
 0x104   :  { %v503_v19 = vpop.f32.mrf.mxu0 }
 0x105   :  { %v556_v20 = vpop.f32.mrf.mxu1  ;;  %v555_v21 = vadd.f32 %v554_v16, %v502_v18  ;;  %v504_v22 = vadd.f32 %v503_v19, %v104_v14 }
 0x106   :  { %v505_v26 = vpop.f32.mrf.mxu0 }
 0x107   :  { %v558_v27 = vpop.f32.mrf.mxu1  ;;  %v557_v28 = vadd.f32 %v556_v20, %v504_v22  ;;  %v506_v29 = vadd.f32 %v505_v26, %v100_v13  ;;  %v585_v36 = vadd.f32 %v577_v24, %v555_v21 }
 0x108   :  { %v507_v31 = vpop.f32.mrf.mxu0 }
 0x109   :  { %v560_v32 = vpop.f32.mrf.mxu1  ;;  %v559_v34 = vadd.f32 %v558_v27, %v506_v29  ;;  %v508_v35 = vadd.f32 %v507_v31, %v104_v14  ;;  %v586_v37 = vadd.f32 %v578_v25, %v557_v28 }
 0x10a   :  { %v511_v39 = vpop.f32.mrf.mxu0 }
 0x10b   :  { %v564_v40 = vpop.f32.mrf.mxu1  ;;  %v561_v41 = vadd.f32 %v560_v32, %v508_v35  ;;  %v512_v42 = vadd.f32 %v511_v39, %v100_v13  ;;  %v593_v43 = vadd.f32 %v586_v37, %v585_v36  ;;  %v587_v48 = vadd.f32 %v579_v30, %v559_v34 }
 0x10c   :  { %v513_v44 = vpop.f32.mrf.mxu0 }
 0x10d   :  { %v566_v45 = vpop.f32.mrf.mxu1  ;;  %v588_v49 = vadd.f32 %v580_v33, %v561_v41  ;;  %v565_v50 = vadd.f32 %v564_v40, %v512_v42  ;;  %v514_v51 = vadd.f32 %v513_v44, %v104_v14  ;;  %594 = vadd.xlane.f32.xlu0 %v593_v43 }
 0x10e   :  { %v515_v53 = vpop.f32.mrf.mxu0 }
 0x10f   :  { %v568_v54 = vpop.f32.mrf.mxu1  ;;  %v567_v55 = vadd.f32 %v566_v45, %v514_v51  ;;  %v516_v56 = vadd.f32 %v515_v53, %v100_v13  ;;  %v596_v57 = vadd.f32 %v588_v49, %v587_v48  ;;  %v589_v63 = vadd.f32 %v581_v46, %v565_v50  ;;  %v678_v50 = vld [vmem:[%s1225_s5] sm:$0x3] }
 0x110   :  { %v517_v59 = vpop.f32.mrf.mxu0 }
 0x111   :  { %v569_v61 = vadd.f32 %v568_v54, %v516_v56  ;;  %v518_v62 = vadd.f32 %v517_v59, %v104_v14  ;;  %597 = vadd.xlane.f32.xlu0 %v596_v57  ;;  %v590_v0 = vadd.f32 %v582_v47, %v567_v55  ;;  %v570_v1 = vpop.f32.mrf.mxu1  ;;  %v683_v54 = vrot.slane %v678_v50, %v1177_v10 }
 0x112   :  { %v687_v55 = vrot.slane %v678_v50, %v1182_v12 }
 0x113   :  { %v571_v2 = vadd.f32 %v570_v1, %v518_v62  ;;  %v599_v3 = vadd.f32 %v590_v0, %v589_v63  ;;  %v591_v4 = vadd.f32 %v583_v58, %v569_v61 }
 0x115   :  { %v592_v5 = vadd.f32 %v584_v60, %v571_v2  ;;  %600 = vadd.xlane.f32.xlu1 %v599_v3 }
 0x117   :  { %v602_v6 = vadd.f32 %v592_v5, %v591_v4 }
 0x119   :  { %603 = vadd.xlane.f32.xlu1 %v602_v6 }
 0x196   :  { %v595_v7 = vpop.xlane.xlu0 %594 }
 0x197   :  { %v606_v8 = vmul.f32 0.00390625, %v595_v7 }
 0x199   :  { %v610_v9 = vsub.f32 %v585_v36, %v606_v8  ;;  %v611_v11 = vsub.f32 %v586_v37, %v606_v8 }
 0x19a   :  { %v598_v13 = vpop.xlane.xlu0 %597 }
 0x19b   :  { %v607_v15 = vmul.f32 0.00390625, %v598_v13  ;;  %v618_v16 = vmul.f32 %v610_v9, %v610_v9  ;;  %v619_v17 = vmul.f32 %v611_v11, %v611_v11 }
 0x19d   :  { %v612_v14 = vsub.f32 %v587_v48, %v607_v15  ;;  %v613_v18 = vsub.f32 %v588_v49, %v607_v15  ;;  %v626_v19 = vadd.f32 %v619_v17, %v618_v16  ;;  %v658_v48 = vld [vmem:[%s1224_s4] sm:$0x3] }
 0x19e   :  { %v601_v20 = vpop.xlane.xlu1 %600  ;;  %v663_v51 = vrot.slane %v658_v48, %v1177_v10  ;;  %v667_v52 = vrot.slane %v658_v48, %v1182_v12 }
 0x19f   :  { %v608_v21 = vmul.f32 0.00390625, %v601_v20  ;;  %627 = vadd.xlane.f32.xlu0 %v626_v19  ;;  %v620_v22 = vmul.f32 %v612_v14, %v612_v14  ;;  %v621_v23 = vmul.f32 %v613_v18, %v613_v18 }
 0x1a1   :  { %v614_v24 = vsub.f32 %v589_v63, %v608_v21  ;;  %v615_v25 = vsub.f32 %v590_v0, %v608_v21  ;;  %v629_v26 = vadd.f32 %v621_v23, %v620_v22 }
 0x1a2   :  { %v604_v27 = vpop.xlane.xlu1 %603 }
 0x1a3   :  { %v609_v28 = vmul.f32 0.00390625, %v604_v27  ;;  %630 = vadd.xlane.f32.xlu1 %v629_v26  ;;  %v622_v29 = vmul.f32 %v614_v24, %v614_v24  ;;  %v623_v30 = vmul.f32 %v615_v25, %v615_v25 }
 0x1a5   :  { %v616_v31 = vsub.f32 %v591_v4, %v609_v28  ;;  %v617_v32 = vsub.f32 %v592_v5, %v609_v28  ;;  %v632_v33 = vadd.f32 %v623_v30, %v622_v29 }
 0x1a7   :  { %633 = vadd.xlane.f32.xlu0 %v632_v33  ;;  %v624_v34 = vmul.f32 %v616_v31, %v616_v31  ;;  %v625_v35 = vmul.f32 %v617_v32, %v617_v32 }
 0x1a9   :  { %v635_v36 = vadd.f32 %v625_v35, %v624_v34 }
 0x1ab   :  { %636 = vadd.xlane.f32.xlu1 %v635_v36 }
 0x228   :  { %v628_v37 = vpop.xlane.xlu0 %627 }
 0x229   :  { %v638_v38 = vmul.f32 0.00390625, %v628_v37 }
 0x22b   :  { %v642_v39 = vadd.f32 1e-12, %v638_v38 }
 0x22c   :  { %v631_v40 = vpop.xlane.xlu1 %630 }
 0x22d   :  { %918 = vrsqrt.f32 %v642_v39  ;;  %v639_v41 = vmul.f32 0.00390625, %v631_v40 }
 0x22f   :  { %v643_v42 = vadd.f32 1e-12, %v639_v41 }
 0x230   :  { %v634_v43 = vpop.xlane.xlu0 %633 }
 0x231   :  { %920 = vrsqrt.f32 %v643_v42  ;;  %v640_v44 = vmul.f32 0.00390625, %v634_v43 }
 0x233   :  { %v644_v45 = vadd.f32 1e-12, %v640_v44 }
 0x234   :  { %v637_v46 = vpop.xlane.xlu1 %636 }
 0x235   :  { %922 = vrsqrt.f32 %v644_v45  ;;  %v641_v47 = vmul.f32 0.00390625, %v637_v46 }
 0x237   :  { %v645_v49 = vadd.f32 1e-12, %v641_v47 }
 0x239   :  { %924 = vrsqrt.f32 %v645_v49 }
 0x23a   :  { %v919_v53 = vpop.eup %918 }
 0x23b   :  { %v650_v56 = vmul.f32 %v919_v53, %v610_v9  ;;  %v651_v57 = vmul.f32 %v919_v53, %v611_v11 }
 0x23d   :  { %v670_v58 = vmul.f32 %v663_v51, %v650_v56  ;;  %v671_v59 = vmul.f32 %v667_v52, %v651_v57 }
 0x23e   :  { %v921_v60 = vpop.eup %920 }
 0x23f   :  { %v690_v61 = vadd.f32 %v683_v54, %v670_v58  ;;  %v691_v62 = vadd.f32 %v687_v55, %v671_v59  ;;  %v652_v63 = vmul.f32 %v921_v60, %v612_v14  ;;  %v653_v0 = vmul.f32 %v921_v60, %v613_v18 }
 0x241   :  { %v806_v1 = vpack.c.bf16 %v691_v62, %v690_v61  ;;  %v672_v2 = vmul.f32 %v663_v51, %v652_v63  ;;  %v673_v3 = vmul.f32 %v667_v52, %v653_v0 }
 0x242   :  { %v923_v4 = vpop.eup %922 }
 0x243   :  { %722 = vst [vmem:[%s1226_s6] sm:$0xff] %v806_v1  ;;  %v692_v10 = vadd.f32 %v683_v54, %v672_v2  ;;  %v693_v5 = vadd.f32 %v687_v55, %v673_v3  ;;  %v654_v12 = vmul.f32 %v923_v4, %v614_v24  ;;  %v655_v6 = vmul.f32 %v923_v4, %v615_v25 }
 0x245   :  { %v807_v7 = vpack.c.bf16 %v693_v5, %v692_v10  ;;  %v674_v8 = vmul.f32 %v663_v51, %v654_v12  ;;  %v675_v9 = vmul.f32 %v667_v52, %v655_v6 }
 0x246   :  { %v925_v11 = vpop.eup %924 }
 0x247   :  { %723 = vst [vmem:[%s1226_s6 + $0x8] sm:$0xff] %v807_v7  ;;  %v694_v13 = vadd.f32 %v683_v54, %v674_v8  ;;  %v695_v15 = vadd.f32 %v687_v55, %v675_v9  ;;  %v656_v16 = vmul.f32 %v925_v11, %v616_v31  ;;  %v657_v17 = vmul.f32 %v925_v11, %v617_v32 }
 0x249   :  { %v808_v14 = vpack.c.bf16 %v695_v15, %v694_v13  ;;  %v676_v18 = vmul.f32 %v663_v51, %v656_v16  ;;  %v677_v19 = vmul.f32 %v667_v52, %v657_v17 }
 0x24b   :  { %724 = vst [vmem:[%s1226_s6 + $0x10] sm:$0xff] %v808_v14  ;;  %v696_v20 = vadd.f32 %v683_v54, %v676_v18  ;;  %v697_v21 = vadd.f32 %v687_v55, %v677_v19 }
 0x24d   :  { %v809_v22 = vpack.c.bf16 %v697_v21, %v696_v20 }
 0x24f   :  { %725 = vst [vmem:[%s1226_s6 + $0x18] sm:$0xff] %v809_v22 }

</bundles_post_ra>
